<compile_context>
chip_gen: v7x
topology: tpu7x:2x2x1
jax: 0.10.0
libtpu: 0.0.40
codegen_flags: <defaults>
</compile_context>

<pallas_src>
import functools

import jax
import jax.numpy as jnp
from jax import lax
from jax.experimental import pallas as pl
from jax.experimental.pallas import tpu as pltpu

_SQRT1_2 = 0.7071067811865475
_VMEM_CAPS_CACHE = None


# ----------------------------------------------------------------------------
# helpers
# ----------------------------------------------------------------------------
def _round_up(x, m):
    return (x + m - 1) // m * m


def _vmem_caps():
    """(scoped vmem limit, per-call block budget), derived from the chip."""
    global _VMEM_CAPS_CACHE
    if _VMEM_CAPS_CACHE is None:
        phys = 64 * 1024 * 1024
        try:
            info = pltpu.get_tpu_info()
            phys = int(getattr(info, "vmem_capacity_bytes", phys)) or phys
        except Exception:
            pass
        # leave headroom for compiler-internal scratch / regalloc
        limit = min(phys - 16 * 1024 * 1024, (phys * 3) // 4)
        limit = max(limit, 32 * 1024 * 1024)
        budget = max(12 * 1024 * 1024, limit // 2)
        _VMEM_CAPS_CACHE = (int(limit), int(budget))
    return _VMEM_CAPS_CACHE


def _gelu(y):
    # exact (erf-based) GELU, matching torch.nn.GELU default; computed in f32
    return 0.5 * y * (1.0 + lax.erf(y * _SQRT1_2))


def _pick_tile_mm(m0, k, n, out_bytes, budget):
    """Pick a row tile first, then pad M up to a multiple of it."""
    mp8 = _round_up(max(m0, 8), 8)
    tm = 8
    for cand in (2048, 1024, 512, 256, 128, 64, 32, 16, 8):
        if cand > mp8:
            continue
        blk = 2 * (cand * k * 2 + cand * n * out_bytes) + k * n * 2 + 4 * n * 4
        if blk <= budget:
            tm = cand
            break
    # keep >= 2 grid blocks when tiles are already comfortably MXU-sized (v7x: 2 TCs)
    if mp8 // tm <= 1 and tm >= 512:
        tm //= 2
    mp = _round_up(mp8, tm)
    return tm, mp


def _pick_tile_convt(rows, wd, cin, ncol, out_bytes, budget):
    """Row tile (in image rows) for the conv-transpose kernel + padded row count."""
    tr = 1
    for cand in (512, 256, 128, 64, 32, 16, 8, 4, 2, 1):
        if cand > rows and cand > 1:
            continue
        blk = (2 * (cand * wd * cin * 2 + cand * 2 * wd * ncol * out_bytes)
               + 2 * cin * ncol * 2 + cand * wd * ncol * 4)
        if blk <= budget:
            tr = cand
            break
    if rows // max(tr, 1) <= 1 and tr * wd >= 512 and tr % 2 == 0:
        tr //= 2
    rp = _round_up(rows, tr)
    return tr, rp


def _pick_th_conv3(n, h, wd, cin, cout, out_bytes, budget):
    """H-row tile for the 3x3 conv kernel (must divide H)."""
    def fits(th):
        blk = (2 * (th * wd * cin * 2 + th * wd * cout * out_bytes)
               + (th + 2) * (wd + 2) * cin * 2 + th * wd * cout * 4
               + 9 * cin * cout * 2 + 4 * cout * 4)
        return blk <= budget and th * wd <= 4096
    divs = [d for d in range(h, 0, -1) if h % d == 0]
    # prefer >= 2 grid blocks (v7x has 2 TCs) as long as blocks stay reasonably big
    for d in divs:
        if fits(d) and n * (h // d) >= 2 and d * wd >= 128:
            return d
    for d in divs:
        if fits(d):
            return d
    return 1


# ----------------------------------------------------------------------------
# fused matmul (+bias, +per-group LayerNorm, +GELU) kernel  (used for 1x1 conv)
# ----------------------------------------------------------------------------
def _mm_fused_kernel(*refs, has_bias, has_ln, gelu, n_groups, eps):
    x_ref, w_ref = refs[0], refs[1]
    idx = 2
    b_ref = g_ref = bt_ref = None
    if has_bias:
        b_ref = refs[idx]
        idx += 1
    if has_ln:
        g_ref, bt_ref = refs[idx], refs[idx + 1]
        idx += 2
    o_ref = refs[idx]

    y = jnp.dot(x_ref[...].astype(jnp.bfloat16), w_ref[...],
                preferred_element_type=jnp.float32)
    if has_bias:
        y = y + b_ref[...]

    if has_ln:
        gs = y.shape[-1] // n_groups
        for g in range(n_groups):
            s = g * gs
            yg = y[:, s:s + gs]
            mu = jnp.mean(yg, axis=-1, keepdims=True)
            yc = yg - mu
            var = jnp.mean(yc * yc, axis=-1, keepdims=True)
            yg = yc * lax.rsqrt(var + eps) * g_ref[:, s:s + gs] + bt_ref[:, s:s + gs]
            if gelu:
                yg = _gelu(yg)
            o_ref[:, s:s + gs] = yg.astype(o_ref.dtype)
    else:
        if gelu:
            y = _gelu(y)
        o_ref[...] = y.astype(o_ref.dtype)


def matmul_fused(x2d, w, *, bias=None, gamma=None, beta=None, n_groups=1,
                 gelu=False, eps=1e-6, out_dtype=jnp.float32):
    """(M, K) @ (K, N) with optional fused bias, per-group channel LayerNorm, GELU."""
    m0, k = x2d.shape
    n = w.shape[1]
    out_bytes = jnp.dtype(out_dtype).itemsize
    limit, budget = _vmem_caps()
    tm, mp = _pick_tile_mm(m0, k, n, out_bytes, budget)
    if mp != m0:
        x2d = jnp.pad(x2d, ((0, mp - m0), (0, 0)))

    has_bias = bias is not None
    has_ln = gamma is not None

    in_specs = [pl.BlockSpec((tm, k), lambda i: (i, 0)),
                pl.BlockSpec((k, n), lambda i: (0, 0))]   # weights resident across grid
    args = [x2d, w.astype(jnp.bfloat16)]
    if has_bias:
        in_specs.append(pl.BlockSpec((1, n), lambda i: (0, 0)))
        args.append(bias.reshape(1, n).astype(jnp.float32))
    if has_ln:
        in_specs += [pl.BlockSpec((1, n), lambda i: (0, 0)),
                     pl.BlockSpec((1, n), lambda i: (0, 0))]
        args += [gamma.reshape(1, n).astype(jnp.float32),
                 beta.reshape(1, n).astype(jnp.float32)]

    kern = functools.partial(_mm_fused_kernel, has_bias=has_bias, has_ln=has_ln,
                             gelu=gelu, n_groups=n_groups, eps=eps)
    cost = pl.CostEstimate(
        flops=2 * mp * k * n,
        transcendentals=(mp * n) if gelu else 0,
        bytes_accessed=int(x2d.size) * x2d.dtype.itemsize + k * n * 2 + mp * n * out_bytes)

    out = pl.pallas_call(
        kern,
        out_shape=jax.ShapeDtypeStruct((mp, n), out_dtype),
        grid=(mp // tm,),
        in_specs=in_specs,
        out_specs=pl.BlockSpec((tm, n), lambda i: (i, 0)),
        compiler_params=pltpu.CompilerParams(
            dimension_semantics=("parallel",),
            vmem_limit_bytes=limit),
        cost_estimate=cost,
    )(*args)
    return out[:m0] if mp != m0 else out


# ----------------------------------------------------------------------------
# conv-transpose 2x2 (stride 2) + optional LayerNorm2d + GELU
# output written directly in interleave-friendly layout (no HBM transpose pass)
# ----------------------------------------------------------------------------
def _convt_kernel(*refs, has_ln, gelu, eps):
    x_ref, w_ref, b_ref = refs[0], refs[1], refs[2]
    idx = 3
    g_ref = bt_ref = None
    if has_ln:
        g_ref, bt_ref = refs[3], refs[4]
        idx = 5
    o_ref = refs[idx]

    tr, wd, cin = x_ref.shape
    ncol = w_ref.shape[-1]            # 2 * cout   (columns ordered (kw, cout))
    cout = ncol // 2
    x = x_ref[...].reshape(tr * wd, cin)

    for a in range(2):                # a = output-row parity (kh tap)
        y = jnp.dot(x, w_ref[a], preferred_element_type=jnp.float32)
        y = y + b_ref[...]
        if has_ln:
            parts = []
            for g in range(2):        # per-output-pixel LayerNorm over Cout channels
                s = g * cout
                yg = y[:, s:s + cout]
                mu = jnp.mean(yg, axis=-1, keepdims=True)
                yc = yg - mu
                var = jnp.mean(yc * yc, axis=-1, keepdims=True)
                yg = yc * lax.rsqrt(var + eps) * g_ref[:, s:s + cout] + bt_ref[:, s:s + cout]
                if gelu:
                    yg = _gelu(yg)
                parts.append(yg)
            y = jnp.concatenate(parts, axis=-1)
        elif gelu:
            y = _gelu(y)
        o_ref[:, a, :, :] = y.reshape(tr, wd, ncol).astype(o_ref.dtype)


def conv_transpose2x2(x, w, b, *, gamma=None, beta=None, gelu=False, eps=1e-6,
                      out_dtype=jnp.float32):
    """ConvTranspose2d(kernel=2, stride=2), optionally fused with LN2d (+GELU).

    x: (N, H, W, Cin) NHWC; w: (Cin, Cout, 2, 2) torch layout; b: (Cout,).
    The kernel writes an (N*H, 2, W, 2*Cout) output whose (N, 2H, 2W, Cout) view is
    a free row-major reshape (no post-kernel interleave transpose).
    """
    n, h, wd, cin = x.shape
    cout = w.shape[1]
    rows = n * h
    xr = x.reshape(rows, wd, cin).astype(jnp.bfloat16)
    # (Cin, Cout, kh, kw) -> (kh, Cin, kw*Cout)
    w2 = jnp.transpose(w, (2, 0, 3, 1)).reshape(2, cin, 2 * cout).astype(jnp.bfloat16)
    b2 = jnp.tile(b, 2).reshape(1, 2 * cout).astype(jnp.float32)
    has_ln = gamma is not None
    out_bytes = jnp.dtype(out_dtype).itemsize
    limit, budget = _vmem_caps()
    tr, rp = _pick_tile_convt(rows, wd, cin, 2 * cout, out_bytes, budget)
    if rp != rows:
        xr = jnp.pad(xr, ((0, rp - rows), (0, 0), (0, 0)))

    in_specs = [pl.BlockSpec((tr, wd, cin), lambda i: (i, 0, 0)),
                pl.BlockSpec((2, cin, 2 * cout), lambda i: (0, 0, 0)),
                pl.BlockSpec((1, 2 * cout), lambda i: (0, 0))]
    args = [xr, w2, b2]
    if has_ln:
        in_specs += [pl.BlockSpec((1, 2 * cout), lambda i: (0, 0)),
                     pl.BlockSpec((1, 2 * cout), lambda i: (0, 0))]
        args += [jnp.tile(gamma, 2).reshape(1, 2 * cout).astype(jnp.float32),
                 jnp.tile(beta, 2).reshape(1, 2 * cout).astype(jnp.float32)]

    kern = functools.partial(_convt_kernel, has_ln=has_ln, gelu=gelu, eps=eps)
    cost = pl.CostEstimate(
        flops=2 * rp * wd * cin * 4 * cout,
        transcendentals=(rp * wd * 4 * cout) if gelu else 0,
        bytes_accessed=rp * wd * cin * 2 + cin * 4 * cout * 2
                       + rp * wd * 4 * cout * out_bytes)

    out = pl.pallas_call(
        kern,
        out_shape=jax.ShapeDtypeStruct((rp, 2, wd, 2 * cout), out_dtype),
        grid=(rp // tr,),
        in_specs=in_specs,
        out_specs=pl.BlockSpec((tr, 2, wd, 2 * cout), lambda i: (i, 0, 0, 0)),
        compiler_params=pltpu.CompilerParams(
            dimension_semantics=("parallel",),
            vmem_limit_bytes=limit),
        cost_estimate=cost,
    )(*args)
    if rp != rows:
        out = out[:rows]
    # (N*H, 2, W, 2*Cout) -> (N, 2H, 2W, Cout): element-order preserving (free) reshape
    return out.reshape(n, 2 * h, 2 * wd, cout)


# ----------------------------------------------------------------------------
# 3x3 conv (pad=1, no bias) + LayerNorm2d — all 9 taps per grid step,
# multi-row H blocks, padding built in VMEM (no HBM pad pass)
# ----------------------------------------------------------------------------
def _conv3_ln_kernel(xm_ref, xa_ref, xb_ref, w_ref, g_ref, bt_ref, o_ref,
                     *, th, wd, eps, n_hblocks):
    hi = pl.program_id(1)
    cin = xm_ref.shape[-1]
    cout = w_ref.shape[-1]

    mid = xm_ref[0]                                   # (th, wd, cin) bf16
    top = xa_ref[0, 0]                                # (wd, cin)
    bot = xb_ref[0, 0]
    # zero the halo rows at the image top / bottom (clamped index maps re-read
    # in-range rows there; mask them out)
    top = top * (hi > 0).astype(top.dtype)
    bot = bot * (hi < n_hblocks - 1).astype(bot.dtype)

    rows = jnp.concatenate([top[None], mid, bot[None]], axis=0)       # (th+2, wd, cin)
    zcol = jnp.zeros((th + 2, 1, cin), rows.dtype)
    halo = jnp.concatenate([zcol, rows, zcol], axis=1)                # (th+2, wd+2, cin)

    acc = jnp.zeros((th * wd, cout), jnp.float32)
    for kh in range(3):
        for kw in range(3):
            patch = halo[kh:kh + th, kw:kw + wd, :].reshape(th * wd, cin)
            acc = acc + jnp.dot(patch, w_ref[3 * kh + kw],
                                preferred_element_type=jnp.float32)

    mu = jnp.mean(acc, axis=-1, keepdims=True)
    yc = acc - mu
    var = jnp.mean(yc * yc, axis=-1, keepdims=True)
    y = yc * lax.rsqrt(var + eps) * g_ref[...] + bt_ref[...]
    o_ref[0] = y.reshape(th, wd, cout).astype(o_ref.dtype)


def conv3x3_ln(x, w, gamma, beta, *, eps=1e-6, out_dtype=jnp.float32):
    """3x3 conv (padding=1, no bias) fused with LayerNorm2d.

    x: (N, H, W, Cin) NHWC; w: (Cout, Cin, 3, 3) torch layout.
    No im2col and no HBM pad pass: each grid step reads a TH-row block plus two
    halo rows (clamped index maps), builds the zero-padded halo in VMEM, and runs
    all 9 taps as MXU matmuls in one invocation.
    """
    n, h, wd, cin = x.shape
    cout = w.shape[0]
    x = x.astype(jnp.bfloat16)
    w9 = jnp.transpose(w, (2, 3, 1, 0)).reshape(9, cin, cout).astype(jnp.bfloat16)
    out_bytes = jnp.dtype(out_dtype).itemsize
    limit, budget = _vmem_caps()
    th = _pick_th_conv3(n, h, wd, cin, cout, out_bytes, budget)
    n_hb = h // th

    kern = functools.partial(_conv3_ln_kernel, th=th, wd=wd, eps=eps, n_hblocks=n_hb)
    cost = pl.CostEstimate(
        flops=2 * n * h * wd * 9 * cin * cout,
        transcendentals=0,
        bytes_accessed=n * h * wd * cin * 2 + 9 * cin * cout * 2
                       + n * h * wd * cout * out_bytes)

    # TODO(synk): fuse the 1x1 lateral conv + LN into this kernel to also remove the
    # lateral tensor's HBM round-trip, and lane-pad tiny Cout paths.
    return pl.pallas_call(
        kern,
        out_shape=jax.ShapeDtypeStruct((n, h, wd, cout), out_dtype),
        grid=(n, n_hb),
        in_specs=[
            pl.BlockSpec((1, th, wd, cin), lambda ni, hi: (ni, hi, 0, 0)),
            pl.BlockSpec((1, 1, wd, cin),
                         lambda ni, hi: (ni, jnp.maximum(hi * th - 1, 0), 0, 0)),
            pl.BlockSpec((1, 1, wd, cin),
                         lambda ni, hi: (ni, jnp.minimum((hi + 1) * th, h - 1), 0, 0)),
            pl.BlockSpec((9, cin, cout), lambda ni, hi: (0, 0, 0)),
            pl.BlockSpec((1, cout), lambda ni, hi: (0, 0)),
            pl.BlockSpec((1, cout), lambda ni, hi: (0, 0)),
        ],
        out_specs=pl.BlockSpec((1, th, wd, cout), lambda ni, hi: (ni, hi, 0, 0)),
        compiler_params=pltpu.CompilerParams(
            dimension_semantics=("parallel", "parallel"),
            vmem_limit_bytes=limit),
        cost_estimate=cost,
    )(x, x, x, w9,
      gamma.reshape(1, cout).astype(jnp.float32),
      beta.reshape(1, cout).astype(jnp.float32))


# ----------------------------------------------------------------------------
# 2x2 max pool: single kernel, reads the NHWC tensor once
# ----------------------------------------------------------------------------
def _maxpool_kernel(x_ref, o_ref, *, c):
    x = x_ref[...]                                    # (rb, 2, wh, 2*c)
    m = jnp.maximum(x[:, 0], x[:, 1])                 # max over the H pair
    o_ref[...] = jnp.maximum(m[:, :, :c], m[:, :, c:])  # max over the W pair


def maxpool2x2(x):
    """MaxPool2d(kernel=2, stride=2). x: (N, H, W, C) NHWC -> (N, H//2, W//2, C)."""
    n, h, w, c = x.shape
    hh, wh = h // 2, w // 2
    x4 = x.reshape(n * hh, 2, wh, 2 * c)              # free reshape
    r0 = n * hh
    itemsize = jnp.dtype(x.dtype).itemsize
    row_bytes = (2 * wh * 2 * c + wh * c) * itemsize
    limit, budget = _vmem_caps()
    rb = 1
    for cand in (2048, 1024, 512, 256, 128, 64, 32, 16, 8, 4, 2, 1):
        if 2 * cand * row_bytes <= budget:
            rb = cand
            break
    rb = min(rb, r0)
    rp = _round_up(r0, rb)
    if rp != r0:
        x4 = jnp.pad(x4, ((0, rp - r0), (0, 0), (0, 0), (0, 0)))
    out = pl.pallas_call(
        functools.partial(_maxpool_kernel, c=c),
        out_shape=jax.ShapeDtypeStruct((rp, wh, c), x.dtype),
        grid=(rp // rb,),
        in_specs=[pl.BlockSpec((rb, 2, wh, 2 * c), lambda i: (i, 0, 0, 0))],
        out_specs=pl.BlockSpec((rb, wh, c), lambda i: (i, 0, 0)),
        compiler_params=pltpu.CompilerParams(
            dimension_semantics=("parallel",),
            vmem_limit_bytes=limit),
    )(x4)
    if rp != r0:
        out = out[:r0]
    return out.reshape(n, hh, wh, c)


# ----------------------------------------------------------------------------
# conv building blocks (layout glue in JAX, compute in the fused kernels)
# ----------------------------------------------------------------------------
def conv1x1_ln(x, w, gamma, beta, *, eps=1e-6, out_dtype=jnp.float32):
    """1x1 conv (no bias) fused with LayerNorm2d. w: (Cout, Cin, 1, 1) torch layout."""
    n, h, wd, cin = x.shape
    cout = w.shape[0]
    y = matmul_fused(x.reshape(-1, cin), w.reshape(cout, cin).T,
                     gamma=gamma, beta=beta, n_groups=1, eps=eps, out_dtype=out_dtype)
    return y.reshape(n, h, wd, cout)


# ----------------------------------------------------------------------------
# modules (deterministic synthetic parameters; no checkpoint loading)
# ----------------------------------------------------------------------------
class TransposeConvUpSampleP:
    """ConvT(c->c/2, 2, 2) -> LN2d -> GELU -> ConvT(c/2->c/4, 2, 2)."""

    def __init__(self, key, backbone_channel):
        c = backbone_channel
        ks = iter(jax.random.split(key, 8))
        nrm = lambda shape, s=0.05: s * jax.random.normal(next(ks), shape, jnp.float32)
        self.w1 = nrm((c, c // 2, 2, 2))
        self.b1 = nrm((c // 2,))
        self.g1 = jnp.ones((c // 2,), jnp.float32)
        self.beta1 = jnp.zeros((c // 2,), jnp.float32)
        self.w2 = nrm((c // 2, c // 4, 2, 2))
        self.b2 = nrm((c // 4,))

    def __call__(self, x_nchw):
        x = jnp.transpose(x_nchw, (0, 2, 3, 1)).astype(jnp.bfloat16)   # NCHW -> NHWC
        y = conv_transpose2x2(x, self.w1, self.b1, gamma=self.g1, beta=self.beta1,
                              gelu=True, out_dtype=jnp.bfloat16)        # LN+GELU fused
        y = conv_transpose2x2(y, self.w2, self.b2, out_dtype=jnp.float32)
        return jnp.transpose(y, (0, 3, 1, 2))                           # NHWC -> NCHW


class SimpleFPNP:
    """Simple feature pyramid for ViTDet (backbone_channel must be 768 so the
    module's fixed in_channels=[192,384,768,768] matches the fpn branch outputs)."""

    def __init__(self, key, backbone_channel, in_channels=(192, 384, 768, 768),
                 out_channels=(256, 256, 256, 256), num_outs=4):
        c = backbone_channel
        self.in_channels = tuple(in_channels)
        self.out_channels = tuple(out_channels)
        self.num_ins = len(in_channels)
        self.num_outs = num_outs
        ks = iter(jax.random.split(key, 64))
        nrm = lambda shape, s=0.05: s * jax.random.normal(next(ks), shape, jnp.float32)

        # fpn1: ConvT(c->c/2), LN2d, GELU, ConvT(c/2->c/4)
        self.fpn1_w1 = nrm((c, c // 2, 2, 2)); self.fpn1_b1 = nrm((c // 2,))
        self.fpn1_g = jnp.ones((c // 2,), jnp.float32)
        self.fpn1_beta = jnp.zeros((c // 2,), jnp.float32)
        self.fpn1_w2 = nrm((c // 2, c // 4, 2, 2)); self.fpn1_b2 = nrm((c // 4,))
        # fpn2: ConvT(c->c/2)
        self.fpn2_w = nrm((c, c // 2, 2, 2)); self.fpn2_b = nrm((c // 2,))
        # lateral 1x1 ConvModules (conv bias=False + LN2d, no act)
        # fpn 3x3 ConvModules (bias=False + LN2d, no act)
        self.lat_w, self.lat_g, self.lat_beta = [], [], []
        self.fpn_w, self.fpn_g, self.fpn_beta = [], [], []
        for ic, oc in zip(self.in_channels, self.out_channels):
            self.lat_w.append(nrm((oc, ic, 1, 1)))
            self.lat_g.append(jnp.ones((oc,), jnp.float32))
            self.lat_beta.append(jnp.zeros((oc,), jnp.float32))
            self.fpn_w.append(nrm((oc, oc, 3, 3)))
            self.fpn_g.append(jnp.ones((oc,), jnp.float32))
            self.fpn_beta.append(jnp.zeros((oc,), jnp.float32))

    def __call__(self, x_nchw):
        x = jnp.transpose(x_nchw, (0, 2, 3, 1)).astype(jnp.bfloat16)   # NCHW -> NHWC
        # fpn branches (intermediate activations kept in bf16)
        t = conv_transpose2x2(x, self.fpn1_w1, self.fpn1_b1,
                              gamma=self.fpn1_g, beta=self.fpn1_beta, gelu=True,
                              out_dtype=jnp.bfloat16)
        f1 = conv_transpose2x2(t, self.fpn1_w2, self.fpn1_b2, out_dtype=jnp.bfloat16)
        f2 = conv_transpose2x2(x, self.fpn2_w, self.fpn2_b, out_dtype=jnp.bfloat16)
        f3 = x
        f4 = maxpool2x2(x)
        feats = [f1, f2, f3, f4]
        outs = []
        for i, f in enumerate(feats):
            lat = conv1x1_ln(f, self.lat_w[i], self.lat_g[i], self.lat_beta[i],
                             out_dtype=jnp.bfloat16)
            o = conv3x3_ln(lat, self.fpn_w[i], self.fpn_g[i], self.fpn_beta[i],
                           out_dtype=jnp.float32)
            outs.append(jnp.transpose(o, (0, 3, 1, 2)))                # NHWC -> NCHW
        if self.num_outs > len(outs):
            for _ in range(self.num_outs - self.num_ins):
                # F.max_pool2d(kernel=1, stride=2) == strided subsample (glue)
                outs.append(outs[-1][:, :, ::2, ::2])
        return tuple(outs)


class Neck:
    def __init__(self, neck_name, input_channels, out_channels, key):
        self.name = neck_name
        if neck_name == 'SimFPN':
            self.neck = SimpleFPNP(key, input_channels, out_channels=out_channels)
        elif neck_name == 'TransposeConvUpSample':
            self.neck = TransposeConvUpSampleP(key, input_channels)
        else:
            self.neck = lambda x: x  # nn.Identity()

    def __call__(self, x):
        return self.neck(x)


# ----------------------------------------------------------------------------
# demo
# ----------------------------------------------------------------------------
if __name__ == "__main__":
    key = jax.random.PRNGKey(0)
    k_x1, k_x2, k_p1, k_p2 = jax.random.split(key, 4)

    # --- TransposeConvUpSample neck, small shapes ---
    x1 = jax.random.normal(k_x1, (2, 32, 8, 8), jnp.float32)          # NCHW
    neck_t = Neck('TransposeConvUpSample', input_channels=32,
                  out_channels=[256, 256, 256, 256], key=k_p1)
    y1 = jax.jit(lambda x: neck_t(x))(x1)
    y1 = jax.block_until_ready(y1)
    assert y1.shape == (2, 8, 32, 32), y1.shape

    # --- SimFPN neck (backbone_channel=768 is the only config consistent with
    #     the module's fixed in_channels=[192,384,768,768]); small spatial ---
    x2 = jax.random.normal(k_x2, (1, 768, 4, 4), jnp.float32)          # NCHW
    neck_f = Neck('SimFPN', input_channels=768,
                  out_channels=[256, 256, 256, 256], key=k_p2)
    outs = jax.jit(lambda x: neck_f(x))(x2)
    outs = jax.block_until_ready(outs)
    expected = ((1, 256, 16, 16), (1, 256, 8, 8), (1, 256, 4, 4), (1, 256, 2, 2))
    assert tuple(o.shape for o in outs) == expected, [o.shape for o in outs]

    # --- Identity neck ---
    y3 = Neck('Identity', 32, [256, 256, 256, 256], key=key)(x1)
    assert jnp.allclose(jax.block_until_ready(y3), x1)

    print("KERNEL_OK")
</pallas_src>

<mosaic_0001>
module attributes {stable_mosaic.version = 11 : i64} {
  func.func @_convt_kernel(%arg0: i32, %arg1: memref<16x8x32xbf16, #tpu.memory_space<vmem>>, %arg2: memref<2x32x32xbf16, #tpu.memory_space<vmem>>, %arg3: memref<1x32xf32, #tpu.memory_space<vmem>>, %arg4: memref<1x32xf32, #tpu.memory_space<vmem>>, %arg5: memref<1x32xf32, #tpu.memory_space<vmem>>, %arg6: memref<16x2x8x32xbf16, #tpu.memory_space<vmem>>) attributes {dimension_semantics = [#tpu.dimension_semantics<parallel>], iteration_bounds = array<i64: 1>, scalar_prefetch = 0 : i64, scratch_operands = 0 : i64, tpu.core_type = #tpu.core_type<tc>, window_params = [{transform_indices = @transform_0, window_bounds = array<i64: 16, 8, 32>}, {pipeline_mode = #tpu.pipeline_mode<synchronous>, transform_indices = @transform_1, window_bounds = array<i64: 2, 32, 32>}, {pipeline_mode = #tpu.pipeline_mode<synchronous>, transform_indices = @transform_2, window_bounds = array<i64: 1, 32>}, {pipeline_mode = #tpu.pipeline_mode<synchronous>, transform_indices = @transform_3, window_bounds = array<i64: 1, 32>}, {pipeline_mode = #tpu.pipeline_mode<synchronous>, transform_indices = @transform_4, window_bounds = array<i64: 1, 32>}, {transform_indices = @transform_5, window_bounds = array<i64: 16, 2, 8, 32>}]} {
    %c0 = arith.constant 0 : index
    %c0_0 = arith.constant 0 : index
    %c0_1 = arith.constant 0 : index
    %0 = vector.load %arg1[%c0, %c0_0, %c0_1] : memref<16x8x32xbf16, #tpu.memory_space<vmem>>, vector<16x8x32xbf16>
    %1 = vector.shape_cast %0 : vector<16x8x32xbf16> to vector<128x32xbf16>
    %c0_2 = arith.constant 0 : index
    %c0_3 = arith.constant 0 : index
    %c0_4 = arith.constant 0 : index
    %2 = vector.load %arg2[%c0_2, %c0_3, %c0_4] : memref<2x32x32xbf16, #tpu.memory_space<vmem>>, vector<1x32x32xbf16>
    %3 = vector.shape_cast %2 : vector<1x32x32xbf16> to vector<32x32xbf16>
    %cst = arith.constant dense<0.000000e+00> : vector<128x32xf32>
    %4 = tpu.matmul %1, %3, %cst {dimension_numbers = #tpu.dot_dimension_numbers<[1], [0], [0], [1], [0, 0, 1, 1], [], []>} : vector<128x32xbf16>, vector<32x32xbf16>, vector<128x32xf32> -> vector<128x32xf32>
    %c0_5 = arith.constant 0 : index
    %c0_6 = arith.constant 0 : index
    %5 = vector.load %arg3[%c0_5, %c0_6] : memref<1x32xf32, #tpu.memory_space<vmem>>, vector<1x32xf32>
    %6 = vector.broadcast %5 : vector<1x32xf32> to vector<128x32xf32>
    %7 = arith.addf %4, %6 : vector<128x32xf32>
    %8 = vector.extract_strided_slice %7 {offsets = [0, 0], sizes = [128, 16], strides = [1, 1]} : vector<128x32xf32> to vector<128x16xf32>
    %cst_7 = arith.constant dense<0.000000e+00> : vector<128xf32>
    %9 = vector.multi_reduction <add>, %8, %cst_7 [1] : vector<128x16xf32> to vector<128xf32>
    %10 = vector.shape_cast %9 : vector<128xf32> to vector<128x1xf32>
    %cst_8 = arith.constant 1.600000e+01 : f32
    %11 = vector.broadcast %cst_8 : f32 to vector<128x1xf32>
    %12 = arith.divf %10, %11 : vector<128x1xf32>
    %13 = vector.broadcast %12 : vector<128x1xf32> to vector<128x16xf32>
    %14 = arith.subf %8, %13 : vector<128x16xf32>
    %15 = arith.mulf %14, %14 : vector<128x16xf32>
    %cst_9 = arith.constant dense<0.000000e+00> : vector<128xf32>
    %16 = vector.multi_reduction <add>, %15, %cst_9 [1] : vector<128x16xf32> to vector<128xf32>
    %17 = vector.shape_cast %16 : vector<128xf32> to vector<128x1xf32>
    %cst_10 = arith.constant 1.600000e+01 : f32
    %18 = vector.broadcast %cst_10 : f32 to vector<128x1xf32>
    %19 = arith.divf %17, %18 : vector<128x1xf32>
    %cst_11 = arith.constant 9.99999997E-7 : f32
    %20 = vector.broadcast %cst_11 : f32 to vector<128x1xf32>
    %21 = arith.addf %19, %20 : vector<128x1xf32>
    %22 = math.rsqrt %21 : vector<128x1xf32>
    %23 = vector.broadcast %22 : vector<128x1xf32> to vector<128x16xf32>
    %24 = arith.mulf %14, %23 : vector<128x16xf32>
    %c0_12 = arith.constant 0 : index
    %c0_13 = arith.constant 0 : index
    %25 = vector.load %arg4[%c0_12, %c0_13] : memref<1x32xf32, #tpu.memory_space<vmem>>, vector<1x16xf32>
    %26 = vector.broadcast %25 : vector<1x16xf32> to vector<128x16xf32>
    %27 = arith.mulf %24, %26 : vector<128x16xf32>
    %c0_14 = arith.constant 0 : index
    %c0_15 = arith.constant 0 : index
    %28 = vector.load %arg5[%c0_14, %c0_15] : memref<1x32xf32, #tpu.memory_space<vmem>>, vector<1x16xf32>
    %29 = vector.broadcast %28 : vector<1x16xf32> to vector<128x16xf32>
    %30 = arith.addf %27, %29 : vector<128x16xf32>
    %cst_16 = arith.constant 5.000000e-01 : f32
    %31 = vector.broadcast %cst_16 : f32 to vector<128x16xf32>
    %32 = arith.mulf %31, %30 : vector<128x16xf32>
    %cst_17 = arith.constant 0.707106769 : f32
    %33 = vector.broadcast %cst_17 : f32 to vector<128x16xf32>
    %34 = arith.mulf %30, %33 : vector<128x16xf32>
    %35 = math.erf %34 : vector<128x16xf32>
    %cst_18 = arith.constant 1.000000e+00 : f32
    %36 = vector.broadcast %cst_18 : f32 to vector<128x16xf32>
    %37 = arith.addf %36, %35 : vector<128x16xf32>
    %38 = arith.mulf %32, %37 : vector<128x16xf32>
    %39 = vector.extract_strided_slice %7 {offsets = [0, 16], sizes = [128, 16], strides = [1, 1]} : vector<128x32xf32> to vector<128x16xf32>
    %cst_19 = arith.constant dense<0.000000e+00> : vector<128xf32>
    %40 = vector.multi_reduction <add>, %39, %cst_19 [1] : vector<128x16xf32> to vector<128xf32>
    %41 = vector.shape_cast %40 : vector<128xf32> to vector<128x1xf32>
    %cst_20 = arith.constant 1.600000e+01 : f32
    %42 = vector.broadcast %cst_20 : f32 to vector<128x1xf32>
    %43 = arith.divf %41, %42 : vector<128x1xf32>
    %44 = vector.broadcast %43 : vector<128x1xf32> to vector<128x16xf32>
    %45 = arith.subf %39, %44 : vector<128x16xf32>
    %46 = arith.mulf %45, %45 : vector<128x16xf32>
    %cst_21 = arith.constant dense<0.000000e+00> : vector<128xf32>
    %47 = vector.multi_reduction <add>, %46, %cst_21 [1] : vector<128x16xf32> to vector<128xf32>
    %48 = vector.shape_cast %47 : vector<128xf32> to vector<128x1xf32>
    %cst_22 = arith.constant 1.600000e+01 : f32
    %49 = vector.broadcast %cst_22 : f32 to vector<128x1xf32>
    %50 = arith.divf %48, %49 : vector<128x1xf32>
    %cst_23 = arith.constant 9.99999997E-7 : f32
    %51 = vector.broadcast %cst_23 : f32 to vector<128x1xf32>
    %52 = arith.addf %50, %51 : vector<128x1xf32>
    %53 = math.rsqrt %52 : vector<128x1xf32>
    %54 = vector.broadcast %53 : vector<128x1xf32> to vector<128x16xf32>
    %55 = arith.mulf %45, %54 : vector<128x16xf32>
    %c0_24 = arith.constant 0 : index
    %c16 = arith.constant 16 : index
    %56 = vector.load %arg4[%c0_24, %c16] : memref<1x32xf32, #tpu.memory_space<vmem>>, vector<1x16xf32>
    %57 = vector.broadcast %56 : vector<1x16xf32> to vector<128x16xf32>
    %58 = arith.mulf %55, %57 : vector<128x16xf32>
    %c0_25 = arith.constant 0 : index
    %c16_26 = arith.constant 16 : index
    %59 = vector.load %arg5[%c0_25, %c16_26] : memref<1x32xf32, #tpu.memory_space<vmem>>, vector<1x16xf32>
    %60 = vector.broadcast %59 : vector<1x16xf32> to vector<128x16xf32>
    %61 = arith.addf %58, %60 : vector<128x16xf32>
    %cst_27 = arith.constant 5.000000e-01 : f32
    %62 = vector.broadcast %cst_27 : f32 to vector<128x16xf32>
    %63 = arith.mulf %62, %61 : vector<128x16xf32>
    %cst_28 = arith.constant 0.707106769 : f32
    %64 = vector.broadcast %cst_28 : f32 to vector<128x16xf32>
    %65 = arith.mulf %61, %64 : vector<128x16xf32>
    %66 = math.erf %65 : vector<128x16xf32>
    %cst_29 = arith.constant 1.000000e+00 : f32
    %67 = vector.broadcast %cst_29 : f32 to vector<128x16xf32>
    %68 = arith.addf %67, %66 : vector<128x16xf32>
    %69 = arith.mulf %63, %68 : vector<128x16xf32>
    %70 = tpu.concatenate %38, %69 in 1 : vector<128x16xf32>, vector<128x16xf32> -> vector<128x32xf32>
    %71 = vector.shape_cast %70 : vector<128x32xf32> to vector<16x8x32xf32>
    %72 = arith.truncf %71 : vector<16x8x32xf32> to vector<16x8x32xbf16>
    %c0_30 = arith.constant 0 : index
    %c0_31 = arith.constant 0 : index
    %c0_32 = arith.constant 0 : index
    %c0_33 = arith.constant 0 : index
    %73 = vector.load %arg6[%c0_30, %c0_31, %c0_32, %c0_33] : memref<16x2x8x32xbf16, #tpu.memory_space<vmem>>, vector<16x1x8x32xbf16>
    %74 = vector.shape_cast %73 : vector<16x1x8x32xbf16> to vector<16x8x32xbf16>
    %75 = vector.shape_cast %72 : vector<16x8x32xbf16> to vector<16x1x8x32xbf16>
    tpu.vector_store %arg6[%c0_30, %c0_31, %c0_32, %c0_33], %75 {strides = array<i32>} : memref<16x2x8x32xbf16, #tpu.memory_space<vmem>>, vector<16x1x8x32xbf16>,
    %c1 = arith.constant 1 : index
    %c0_34 = arith.constant 0 : index
    %c0_35 = arith.constant 0 : index
    %76 = vector.load %arg2[%c1, %c0_34, %c0_35] : memref<2x32x32xbf16, #tpu.memory_space<vmem>>, vector<1x32x32xbf16>
    %77 = vector.shape_cast %76 : vector<1x32x32xbf16> to vector<32x32xbf16>
    %cst_36 = arith.constant dense<0.000000e+00> : vector<128x32xf32>
    %78 = tpu.matmul %1, %77, %cst_36 {dimension_numbers = #tpu.dot_dimension_numbers<[1], [0], [0], [1], [0, 0, 1, 1], [], []>} : vector<128x32xbf16>, vector<32x32xbf16>, vector<128x32xf32> -> vector<128x32xf32>
    %c0_37 = arith.constant 0 : index
    %c0_38 = arith.constant 0 : index
    %79 = vector.load %arg3[%c0_37, %c0_38] : memref<1x32xf32, #tpu.memory_space<vmem>>, vector<1x32xf32>
    %80 = vector.broadcast %79 : vector<1x32xf32> to vector<128x32xf32>
    %81 = arith.addf %78, %80 : vector<128x32xf32>
    %82 = vector.extract_strided_slice %81 {offsets = [0, 0], sizes = [128, 16], strides = [1, 1]} : vector<128x32xf32> to vector<128x16xf32>
    %cst_39 = arith.constant dense<0.000000e+00> : vector<128xf32>
    %83 = vector.multi_reduction <add>, %82, %cst_39 [1] : vector<128x16xf32> to vector<128xf32>
    %84 = vector.shape_cast %83 : vector<128xf32> to vector<128x1xf32>
    %cst_40 = arith.constant 1.600000e+01 : f32
    %85 = vector.broadcast %cst_40 : f32 to vector<128x1xf32>
    %86 = arith.divf %84, %85 : vector<128x1xf32>
    %87 = vector.broadcast %86 : vector<128x1xf32> to vector<128x16xf32>
    %88 = arith.subf %82, %87 : vector<128x16xf32>
    %89 = arith.mulf %88, %88 : vector<128x16xf32>
    %cst_41 = arith.constant dense<0.000000e+00> : vector<128xf32>
    %90 = vector.multi_reduction <add>, %89, %cst_41 [1] : vector<128x16xf32> to vector<128xf32>
    %91 = vector.shape_cast %90 : vector<128xf32> to vector<128x1xf32>
    %cst_42 = arith.constant 1.600000e+01 : f32
    %92 = vector.broadcast %cst_42 : f32 to vector<128x1xf32>
    %93 = arith.divf %91, %92 : vector<128x1xf32>
    %cst_43 = arith.constant 9.99999997E-7 : f32
    %94 = vector.broadcast %cst_43 : f32 to vector<128x1xf32>
    %95 = arith.addf %93, %94 : vector<128x1xf32>
    %96 = math.rsqrt %95 : vector<128x1xf32>
    %97 = vector.broadcast %96 : vector<128x1xf32> to vector<128x16xf32>
    %98 = arith.mulf %88, %97 : vector<128x16xf32>
    %c0_44 = arith.constant 0 : index
    %c0_45 = arith.constant 0 : index
    %99 = vector.load %arg4[%c0_44, %c0_45] : memref<1x32xf32, #tpu.memory_space<vmem>>, vector<1x16xf32>
    %100 = vector.broadcast %99 : vector<1x16xf32> to vector<128x16xf32>
    %101 = arith.mulf %98, %100 : vector<128x16xf32>
    %c0_46 = arith.constant 0 : index
    %c0_47 = arith.constant 0 : index
    %102 = vector.load %arg5[%c0_46, %c0_47] : memref<1x32xf32, #tpu.memory_space<vmem>>, vector<1x16xf32>
    %103 = vector.broadcast %102 : vector<1x16xf32> to vector<128x16xf32>
    %104 = arith.addf %101, %103 : vector<128x16xf32>
    %cst_48 = arith.constant 5.000000e-01 : f32
    %105 = vector.broadcast %cst_48 : f32 to vector<128x16xf32>
    %106 = arith.mulf %105, %104 : vector<128x16xf32>
    %cst_49 = arith.constant 0.707106769 : f32
    %107 = vector.broadcast %cst_49 : f32 to vector<128x16xf32>
    %108 = arith.mulf %104, %107 : vector<128x16xf32>
    %109 = math.erf %108 : vector<128x16xf32>
    %cst_50 = arith.constant 1.000000e+00 : f32
    %110 = vector.broadcast %cst_50 : f32 to vector<128x16xf32>
    %111 = arith.addf %110, %109 : vector<128x16xf32>
    %112 = arith.mulf %106, %111 : vector<128x16xf32>
    %113 = vector.extract_strided_slice %81 {offsets = [0, 16], sizes = [128, 16], strides = [1, 1]} : vector<128x32xf32> to vector<128x16xf32>
    %cst_51 = arith.constant dense<0.000000e+00> : vector<128xf32>
    %114 = vector.multi_reduction <add>, %113, %cst_51 [1] : vector<128x16xf32> to vector<128xf32>
    %115 = vector.shape_cast %114 : vector<128xf32> to vector<128x1xf32>
    %cst_52 = arith.constant 1.600000e+01 : f32
    %116 = vector.broadcast %cst_52 : f32 to vector<128x1xf32>
    %117 = arith.divf %115, %116 : vector<128x1xf32>
    %118 = vector.broadcast %117 : vector<128x1xf32> to vector<128x16xf32>
    %119 = arith.subf %113, %118 : vector<128x16xf32>
    %120 = arith.mulf %119, %119 : vector<128x16xf32>
    %cst_53 = arith.constant dense<0.000000e+00> : vector<128xf32>
    %121 = vector.multi_reduction <add>, %120, %cst_53 [1] : vector<128x16xf32> to vector<128xf32>
    %122 = vector.shape_cast %121 : vector<128xf32> to vector<128x1xf32>
    %cst_54 = arith.constant 1.600000e+01 : f32
    %123 = vector.broadcast %cst_54 : f32 to vector<128x1xf32>
    %124 = arith.divf %122, %123 : vector<128x1xf32>
    %cst_55 = arith.constant 9.99999997E-7 : f32
    %125 = vector.broadcast %cst_55 : f32 to vector<128x1xf32>
    %126 = arith.addf %124, %125 : vector<128x1xf32>
    %127 = math.rsqrt %126 : vector<128x1xf32>
    %128 = vector.broadcast %127 : vector<128x1xf32> to vector<128x16xf32>
    %129 = arith.mulf %119, %128 : vector<128x16xf32>
    %c0_56 = arith.constant 0 : index
    %c16_57 = arith.constant 16 : index
    %130 = vector.load %arg4[%c0_56, %c16_57] : memref<1x32xf32, #tpu.memory_space<vmem>>, vector<1x16xf32>
    %131 = vector.broadcast %130 : vector<1x16xf32> to vector<128x16xf32>
    %132 = arith.mulf %129, %131 : vector<128x16xf32>
    %c0_58 = arith.constant 0 : index
    %c16_59 = arith.constant 16 : index
    %133 = vector.load %arg5[%c0_58, %c16_59] : memref<1x32xf32, #tpu.memory_space<vmem>>, vector<1x16xf32>
    %134 = vector.broadcast %133 : vector<1x16xf32> to vector<128x16xf32>
    %135 = arith.addf %132, %134 : vector<128x16xf32>
    %cst_60 = arith.constant 5.000000e-01 : f32
    %136 = vector.broadcast %cst_60 : f32 to vector<128x16xf32>
    %137 = arith.mulf %136, %135 : vector<128x16xf32>
    %cst_61 = arith.constant 0.707106769 : f32
    %138 = vector.broadcast %cst_61 : f32 to vector<128x16xf32>
    %139 = arith.mulf %135, %138 : vector<128x16xf32>
    %140 = math.erf %139 : vector<128x16xf32>
    %cst_62 = arith.constant 1.000000e+00 : f32
    %141 = vector.broadcast %cst_62 : f32 to vector<128x16xf32>
    %142 = arith.addf %141, %140 : vector<128x16xf32>
    %143 = arith.mulf %137, %142 : vector<128x16xf32>
    %144 = tpu.concatenate %112, %143 in 1 : vector<128x16xf32>, vector<128x16xf32> -> vector<128x32xf32>
    %145 = vector.shape_cast %144 : vector<128x32xf32> to vector<16x8x32xf32>
    %146 = arith.truncf %145 : vector<16x8x32xf32> to vector<16x8x32xbf16>
    %c0_63 = arith.constant 0 : index
    %c1_64 = arith.constant 1 : index
    %c0_65 = arith.constant 0 : index
    %c0_66 = arith.constant 0 : index
    %147 = vector.load %arg6[%c0_63, %c1_64, %c0_65, %c0_66] : memref<16x2x8x32xbf16, #tpu.memory_space<vmem>>, vector<16x1x8x32xbf16>
    %148 = vector.shape_cast %147 : vector<16x1x8x32xbf16> to vector<16x8x32xbf16>
    %149 = vector.shape_cast %146 : vector<16x8x32xbf16> to vector<16x1x8x32xbf16>
    tpu.vector_store %arg6[%c0_63, %c1_64, %c0_65, %c0_66], %149 {strides = array<i32>} : memref<16x2x8x32xbf16, #tpu.memory_space<vmem>>, vector<16x1x8x32xbf16>,
    return
  }
  func.func @transform_0(%arg0: i32) -> (i32, i32, i32) {
    %c0_i32 = arith.constant 0 : i32
    %c0_i32_0 = arith.constant 0 : i32
    %c0_i32_1 = arith.constant 0 : i32
    return %arg0, %c0_i32, %c0_i32_0 : i32, i32, i32
  }
  func.func @transform_1(%arg0: i32) -> (i32, i32, i32) {
    %c0_i32 = arith.constant 0 : i32
    %c0_i32_0 = arith.constant 0 : i32
    %c0_i32_1 = arith.constant 0 : i32
    %c0_i32_2 = arith.constant 0 : i32
    return %c0_i32, %c0_i32_0, %c0_i32_1 : i32, i32, i32
  }
  func.func @transform_2(%arg0: i32) -> (i32, i32) {
    %c0_i32 = arith.constant 0 : i32
    %c0_i32_0 = arith.constant 0 : i32
    %c0_i32_1 = arith.constant 0 : i32
    return %c0_i32, %c0_i32_0 : i32, i32
  }
  func.func @transform_3(%arg0: i32) -> (i32, i32) {
    %c0_i32 = arith.constant 0 : i32
    %c0_i32_0 = arith.constant 0 : i32
    %c0_i32_1 = arith.constant 0 : i32
    return %c0_i32, %c0_i32_0 : i32, i32
  }
  func.func @transform_4(%arg0: i32) -> (i32, i32) {
    %c0_i32 = arith.constant 0 : i32
    %c0_i32_0 = arith.constant 0 : i32
    %c0_i32_1 = arith.constant 0 : i32
    return %c0_i32, %c0_i32_0 : i32, i32
  }
  func.func @transform_5(%arg0: i32) -> (i32, i32, i32, i32) {
    %c0_i32 = arith.constant 0 : i32
    %c0_i32_0 = arith.constant 0 : i32
    %c0_i32_1 = arith.constant 0 : i32
    %c0_i32_2 = arith.constant 0 : i32
    return %arg0, %c0_i32, %c0_i32_0, %c0_i32_1 : i32, i32, i32, i32
  }
}

module attributes {stable_mosaic.version = 11 : i64} {
  func.func @_convt_kernel(%arg0: i32, %arg1: memref<16x16x16xbf16, #tpu.memory_space<vmem>>, %arg2: memref<2x16x16xbf16, #tpu.memory_space<vmem>>, %arg3: memref<1x16xf32, #tpu.memory_space<vmem>>, %arg4: memref<16x2x16x16xf32, #tpu.memory_space<vmem>>) attributes {dimension_semantics = [#tpu.dimension_semantics<parallel>], iteration_bounds = array<i64: 2>, scalar_prefetch = 0 : i64, scratch_operands = 0 : i64, tpu.core_type = #tpu.core_type<tc>, window_params = [{transform_indices = @transform_0, window_bounds = array<i64: 16, 16, 16>}, {pipeline_mode = #tpu.pipeline_mode<synchronous>, transform_indices = @transform_1, window_bounds = array<i64: 2, 16, 16>}, {pipeline_mode = #tpu.pipeline_mode<synchronous>, transform_indices = @transform_2, window_bounds = array<i64: 1, 16>}, {transform_indices = @transform_3, window_bounds = array<i64: 16, 2, 16, 16>}]} {
    %c0 = arith.constant 0 : index
    %c0_0 = arith.constant 0 : index
    %c0_1 = arith.constant 0 : index
    %0 = vector.load %arg1[%c0, %c0_0, %c0_1] : memref<16x16x16xbf16, #tpu.memory_space<vmem>>, vector<16x16x16xbf16>
    %1 = vector.shape_cast %0 : vector<16x16x16xbf16> to vector<256x16xbf16>
    %c0_2 = arith.constant 0 : index
    %c0_3 = arith.constant 0 : index
    %c0_4 = arith.constant 0 : index
    %2 = vector.load %arg2[%c0_2, %c0_3, %c0_4] : memref<2x16x16xbf16, #tpu.memory_space<vmem>>, vector<1x16x16xbf16>
    %3 = vector.shape_cast %2 : vector<1x16x16xbf16> to vector<16x16xbf16>
    %cst = arith.constant dense<0.000000e+00> : vector<256x16xf32>
    %4 = tpu.matmul %1, %3, %cst {dimension_numbers = #tpu.dot_dimension_numbers<[1], [0], [0], [1], [0, 0, 1, 1], [], []>} : vector<256x16xbf16>, vector<16x16xbf16>, vector<256x16xf32> -> vector<256x16xf32>
    %c0_5 = arith.constant 0 : index
    %c0_6 = arith.constant 0 : index
    %5 = vector.load %arg3[%c0_5, %c0_6] : memref<1x16xf32, #tpu.memory_space<vmem>>, vector<1x16xf32>
    %6 = vector.broadcast %5 : vector<1x16xf32> to vector<256x16xf32>
    %7 = arith.addf %4, %6 : vector<256x16xf32>
    %8 = vector.shape_cast %7 : vector<256x16xf32> to vector<16x16x16xf32>
    %c0_7 = arith.constant 0 : index
    %c0_8 = arith.constant 0 : index
    %c0_9 = arith.constant 0 : index
    %c0_10 = arith.constant 0 : index
    %9 = vector.load %arg4[%c0_7, %c0_8, %c0_9, %c0_10] : memref<16x2x16x16xf32, #tpu.memory_space<vmem>>, vector<16x1x16x16xf32>
    %10 = vector.shape_cast %9 : vector<16x1x16x16xf32> to vector<16x16x16xf32>
    %11 = vector.shape_cast %8 : vector<16x16x16xf32> to vector<16x1x16x16xf32>
    tpu.vector_store %arg4[%c0_7, %c0_8, %c0_9, %c0_10], %11 {strides = array<i32>} : memref<16x2x16x16xf32, #tpu.memory_space<vmem>>, vector<16x1x16x16xf32>,
    %c1 = arith.constant 1 : index
    %c0_11 = arith.constant 0 : index
    %c0_12 = arith.constant 0 : index
    %12 = vector.load %arg2[%c1, %c0_11, %c0_12] : memref<2x16x16xbf16, #tpu.memory_space<vmem>>, vector<1x16x16xbf16>
    %13 = vector.shape_cast %12 : vector<1x16x16xbf16> to vector<16x16xbf16>
    %cst_13 = arith.constant dense<0.000000e+00> : vector<256x16xf32>
    %14 = tpu.matmul %1, %13, %cst_13 {dimension_numbers = #tpu.dot_dimension_numbers<[1], [0], [0], [1], [0, 0, 1, 1], [], []>} : vector<256x16xbf16>, vector<16x16xbf16>, vector<256x16xf32> -> vector<256x16xf32>
    %c0_14 = arith.constant 0 : index
    %c0_15 = arith.constant 0 : index
    %15 = vector.load %arg3[%c0_14, %c0_15] : memref<1x16xf32, #tpu.memory_space<vmem>>, vector<1x16xf32>
    %16 = vector.broadcast %15 : vector<1x16xf32> to vector<256x16xf32>
    %17 = arith.addf %14, %16 : vector<256x16xf32>
    %18 = vector.shape_cast %17 : vector<256x16xf32> to vector<16x16x16xf32>
    %c0_16 = arith.constant 0 : index
    %c1_17 = arith.constant 1 : index
    %c0_18 = arith.constant 0 : index
    %c0_19 = arith.constant 0 : index
    %19 = vector.load %arg4[%c0_16, %c1_17, %c0_18, %c0_19] : memref<16x2x16x16xf32, #tpu.memory_space<vmem>>, vector<16x1x16x16xf32>
    %20 = vector.shape_cast %19 : vector<16x1x16x16xf32> to vector<16x16x16xf32>
    %21 = vector.shape_cast %18 : vector<16x16x16xf32> to vector<16x1x16x16xf32>
    tpu.vector_store %arg4[%c0_16, %c1_17, %c0_18, %c0_19], %21 {strides = array<i32>} : memref<16x2x16x16xf32, #tpu.memory_space<vmem>>, vector<16x1x16x16xf32>,
    return
  }
  func.func @transform_0(%arg0: i32) -> (i32, i32, i32) {
    %c0_i32 = arith.constant 0 : i32
    %c0_i32_0 = arith.constant 0 : i32
    %c0_i32_1 = arith.constant 0 : i32
    return %arg0, %c0_i32, %c0_i32_0 : i32, i32, i32
  }
  func.func @transform_1(%arg0: i32) -> (i32, i32, i32) {
    %c0_i32 = arith.constant 0 : i32
    %c0_i32_0 = arith.constant 0 : i32
    %c0_i32_1 = arith.constant 0 : i32
    %c0_i32_2 = arith.constant 0 : i32
    return %c0_i32, %c0_i32_0, %c0_i32_1 : i32, i32, i32
  }
  func.func @transform_2(%arg0: i32) -> (i32, i32) {
    %c0_i32 = arith.constant 0 : i32
    %c0_i32_0 = arith.constant 0 : i32
    %c0_i32_1 = arith.constant 0 : i32
    return %c0_i32, %c0_i32_0 : i32, i32
  }
  func.func @transform_3(%arg0: i32) -> (i32, i32, i32, i32) {
    %c0_i32 = arith.constant 0 : i32
    %c0_i32_0 = arith.constant 0 : i32
    %c0_i32_1 = arith.constant 0 : i32
    %c0_i32_2 = arith.constant 0 : i32
    return %arg0, %c0_i32, %c0_i32_0, %c0_i32_1 : i32, i32, i32, i32
  }
}

</mosaic_0001>

<bundles_post_ra>
// kernel: tile.18
= control target key start
LH: loop header
LB: loop body
LE: loop exit
PB: predicated region body
PF: predicated region fallthrough
CT: control target
= control target key end

     0   :  { %s22_s0 = inlined_call_operand.vmem [shape: f32[8], index: 0, kind: input, shape index: {}]   ;;  %s23_s1 = inlined_call_operand.vmem [shape: f32[2,8], index: 1, kind: output, shape index: {}]  }
   0x1   :  { %v4_v0 = vld [vmem:[%s22_s0] ss:$0 sm:$0xff] }
   0x2   :  { %5 = vst [vmem:[%s23_s1] sm:$0x3] %v4_v0 }

// kernel: tile.14
= control target key start
LH: loop header
LB: loop body
LE: loop exit
PB: predicated region body
PF: predicated region fallthrough
CT: control target
= control target key end

     0   :  { %s22_s0 = inlined_call_operand.vmem [shape: f32[16], index: 0, kind: input, shape index: {}]   ;;  %s23_s1 = inlined_call_operand.vmem [shape: f32[2,16], index: 1, kind: output, shape index: {}]  }
   0x1   :  { %v4_v0 = vld [vmem:[%s22_s0] ss:$0 sm:$0xff] }
   0x2   :  { %5 = vst [vmem:[%s23_s1] sm:$0x3] %v4_v0 }

// kernel: tile.15
= control target key start
LH: loop header
LB: loop body
LE: loop exit
PB: predicated region body
PF: predicated region fallthrough
CT: control target
= control target key end

     0   :  { %vm7_vm0 = vcmask 130048   ;;  %vm13_vm1 = vcmask 261248   ;;  %s39_s0 = inlined_call_operand.vmem [shape: f32[2,16], index: 0, kind: input, shape index: {}]   ;;  %s40_s1 = inlined_call_operand.vmem [shape: f32[1,32], index: 1, kind: output, shape index: {}]  }
   0x1   :  { %v4_v0 = vld [vmem:[%s39_s0] sm:$0x3]  ;;  %s22_s0 = smov 16  }
   0x2   :  { %5 = vst [vmem:[#allocation1] sm:$0x3] %v4_v0 }
   0x9   :  { %v10_v1 = vld [vmem:[#allocation1 + $0x1] sm:$0x1]   ;;  %v6_v2 = vld [vmem:[#allocation1] sm:$0x1]  }
   0xa   :  { %11 = vrot.lane.b32.xlu0 %v10_v1, %s22_s0  ;;  %8 = vst.msk [vmem:[#allocation0] sm:$0x1] %vm7_vm0, %v6_v2  }
  0x7c   :  { %v12_v3 = vpop.permute.xlu0 %11  }
  0x7d   :  { %14 = vst.msk [vmem:[#allocation0] sm:$0x1] %vm13_vm1, %v12_v3  }
  0x84   :  { %v18_v4 = vld [vmem:[#allocation0] sm:$0x1] }
  0x85   :  { %20 = vst [vmem:[%s40_s1] sm:$0x1] %v18_v4 }

// kernel: tile.19
= control target key start
LH: loop header
LB: loop body
LE: loop exit
PB: predicated region body
PF: predicated region fallthrough
CT: control target
= control target key end

     0   :  { %vm7_vm0 = vcmask 64512   ;;  %vm13_vm1 = vcmask 130112   ;;  %s39_s0 = inlined_call_operand.vmem [shape: f32[2,8], index: 0, kind: input, shape index: {}]   ;;  %s40_s1 = inlined_call_operand.vmem [shape: f32[1,16], index: 1, kind: output, shape index: {}]  }
   0x1   :  { %v4_v0 = vld [vmem:[%s39_s0] sm:$0x3]  ;;  %s22_s0 = smov 8  }
   0x2   :  { %5 = vst [vmem:[#allocation1] sm:$0x3] %v4_v0 }
   0x9   :  { %v10_v1 = vld [vmem:[#allocation1 + $0x1] sm:$0x1]   ;;  %v6_v2 = vld [vmem:[#allocation1] sm:$0x1]  }
   0xa   :  { %11 = vrot.lane.b32.xlu0 %v10_v1, %s22_s0  ;;  %8 = vst.msk [vmem:[#allocation0] sm:$0x1] %vm7_vm0, %v6_v2  }
  0x7c   :  { %v12_v3 = vpop.permute.xlu0 %11  }
  0x7d   :  { %14 = vst.msk [vmem:[#allocation0] sm:$0x1] %vm13_vm1, %v12_v3  }
  0x84   :  { %v18_v4 = vld [vmem:[#allocation0] sm:$0x1] }
  0x85   :  { %20 = vst [vmem:[%s40_s1] sm:$0x1] %v18_v4 }

// kernel: tile.10
= control target key start
LH: loop header
LB: loop body
LE: loop exit
PB: predicated region body
PF: predicated region fallthrough
CT: control target
= control target key end

     0   :  { %s20_s0 = inlined_call_operand.<no memory space> [shape: f32[], index: 0, kind: input, shape index: {}]   ;;  %s21_s1 = inlined_call_operand.vmem [shape: f32[1,32], index: 1, kind: output, shape index: {}]  }
   0x1   :  { %v2_v0 = vstv %s20_s0 }
   0x2   :  { %3 = vst [vmem:[%s21_s1] sm:$0x1] %v2_v0 }

// kernel: _lambda_.3
= control target key start
LH: loop header
LB: loop body
LE: loop exit
PB: predicated region body
PF: predicated region fallthrough
CT: control target
= control target key end

     0   :  { %s1074_s12 = smov 0   ;;  %s1350_s0 = inlined_call_operand.vmem [shape: bf16[32,16,16], index: 0, kind: input, shape index: {}]   ;;  %s1351_s1 = inlined_call_operand.vmem [shape: bf16[2,16,16], index: 1, kind: input, shape index: {}]   ;;  %s1352_s2 = inlined_call_operand.vmem [shape: f32[1,16], index: 2, kind: input, shape index: {}]   ;;  %s1353_s3 = inlined_call_operand.vmem [shape: f32[32,2,16,16], index: 3, kind: output, shape index: {}]  }
   0x1 LB: > { %s817_s13 = sadd.s32 4294967295, %s1052_s12   ;;  %p821_p0 = scmp.ge.s32.totalorder %s1052_s12, 1  ;;  %s1052_s12 = sphi %s1074_s12, %s13_s12  }
   0x2   : > { %p139_p1 = scmp.lt.s32.totalorder %s1052_s12, 3 }
   0x4   : > { %p140_p2 = pnand %p821_p0, %p139_p1 }
   0x5   : > { %v1028_v0 = vld [vmem:[%s1351_s1] sm:$0xff] (!%p140_p2)   ;;  %s822_s16 = sshll.u32 (!%p140_p2), %s817_s13, 4  ;;  %v1029_v1 = vld [vmem:[%s1351_s1 + $0x8] sm:$0xff] (!%p140_p2)   ;;  %vm307_vm0 = vcmask (!%p140_p2), 130048  }
   0x6   : > { %143 = sbr.rel (%p140_p2) target bundleno = 292 (0x124), region = 32  ;;  %p166_p3 = scmp.lt.s32.totalorder (!%p140_p2), %s822_s16, 31  ;;  %952 = vmatprep.subr.bf16.mxu0 (!%p140_p2), %v1028_v0  ;;  %986 = vmatprep.subr.bf16.mxu1 (!%p140_p2), %v1029_v1  ;;  %v1148_v18 = vld [vmem:[%s1352_s2] ss:$0 sm:$0xff] (!%p140_p2) }
   0x7   : > { %953 = vmatpush3.bf16.msra.mxu0 (!%p140_p2), %v1028_v0  ;;  %987 = vmatpush3.bf16.msra.mxu1 (!%p140_p2), %v1029_v1 }
   0xd   : > { %s1355_s16 = smov (!%p166_p3, %s822_s16), 31 }
   0xe   : > { %s916_s19 = sshll.u32 %s1355_s16, 3  ;;  %s917_s23 = sshll.u32 %s1355_s16, 5 }
   0xf   : > { %s1094_s22 = scalar_lea.vmem %s1350_s0, %s916_s19  ;;  %s1153_s28 = scalar_lea.vmem %s1353_s3, %s917_s23 }
  0x10   : > { %v1030_v2 = vld [vmem:[%s1094_s22] sm:$0xff]   ;;  %v1031_v3 = vld [vmem:[%s1094_s22 + $0x8] sm:$0xff]   ;;  %v1032_v4 = vld [vmem:[%s1094_s22 + $0x10] sm:$0xff]  }
  0x11   : > { %954 = vmatprep.mubr.msk.bf16.mxu0 %vm307_vm0, %v1030_v2  ;;  %988 = vmatprep.mubr.msk.bf16.mxu1 %vm307_vm0, %v1030_v2  ;;  %v1033_v5 = vld [vmem:[%s1094_s22 + $0x18] sm:$0xff]   ;;  %v1034_v6 = vld [vmem:[%s1094_s22 + $0x20] sm:$0xff]   ;;  %v1035_v7 = vld [vmem:[%s1094_s22 + $0x28] sm:$0xff]  }
  0x12   : > { %955 = vmatmul.mubr.msk.bf16.vlgmr.msra.gmra.mrb[0].mxu0 %vm307_vm0, %v1031_v3  ;;  %989 = vmatmul.mubr.msk.bf16.vlgmr.msra.gmra.mrb[0].mxu1 %vm307_vm0, %v1031_v3  ;;  %v1036_v8 = vld [vmem:[%s1094_s22 + $0x30] sm:$0xff]   ;;  %v1037_v9 = vld [vmem:[%s1094_s22 + $0x38] sm:$0xff]   ;;  %v1038_v10 = vld [vmem:[%s1094_s22 + $0x40] sm:$0xff]  }
  0x13   : > { %958 = vmatprep.mubr.msk.bf16.mxu0 %vm307_vm0, %v1032_v4  ;;  %992 = vmatprep.mubr.msk.bf16.mxu1 %vm307_vm0, %v1032_v4  ;;  %v1039_v11 = vld [vmem:[%s1094_s22 + $0x48] sm:$0xff]   ;;  %v1040_v12 = vld [vmem:[%s1094_s22 + $0x50] sm:$0xff]   ;;  %v1041_v13 = vld [vmem:[%s1094_s22 + $0x58] sm:$0xff]  }
  0x14   : > { %v1042_v14 = vld [vmem:[%s1094_s22 + $0x60] sm:$0xff]   ;;  %v1043_v15 = vld [vmem:[%s1094_s22 + $0x68] sm:$0xff]   ;;  %v1044_v16 = vld [vmem:[%s1094_s22 + $0x70] sm:$0xff]  }
  0x15   : > { %v1045_v17 = vld [vmem:[%s1094_s22 + $0x78] sm:$0xff]  }
  0x1a   : > { %959 = vmatmul.mubr.msk.bf16.gmra.mrb[4].mxu0 %vm307_vm0, %v1033_v5  ;;  %993 = vmatmul.mubr.msk.bf16.gmra.mrb[4].mxu1 %vm307_vm0, %v1033_v5 }
  0x1b   : > { %962 = vmatprep.mubr.msk.bf16.mxu0 %vm307_vm0, %v1034_v6  ;;  %996 = vmatprep.mubr.msk.bf16.mxu1 %vm307_vm0, %v1034_v6 }
  0x22   : > { %963 = vmatmul.mubr.msk.bf16.gmra.mrb[8].mxu0 %vm307_vm0, %v1035_v7  ;;  %997 = vmatmul.mubr.msk.bf16.gmra.mrb[8].mxu1 %vm307_vm0, %v1035_v7 }
  0x23   : > { %966 = vmatprep.mubr.msk.bf16.mxu0 %vm307_vm0, %v1036_v8  ;;  %1000 = vmatprep.mubr.msk.bf16.mxu1 %vm307_vm0, %v1036_v8 }
  0x2a   : > { %967 = vmatmul.mubr.msk.bf16.gmra.mrb[12].mxu0 %vm307_vm0, %v1037_v9  ;;  %1001 = vmatmul.mubr.msk.bf16.gmra.mrb[12].mxu1 %vm307_vm0, %v1037_v9 }
  0x2b   : > { %970 = vmatprep.mubr.msk.bf16.mxu0 %vm307_vm0, %v1038_v10  ;;  %1004 = vmatprep.mubr.msk.bf16.mxu1 %vm307_vm0, %v1038_v10 }
  0x32   : > { %971 = vmatmul.mubr.msk.bf16.gmra.mrb[16].mxu0 %vm307_vm0, %v1039_v11  ;;  %1005 = vmatmul.mubr.msk.bf16.gmra.mrb[16].mxu1 %vm307_vm0, %v1039_v11 }
  0x33   : > { %974 = vmatprep.mubr.msk.bf16.mxu0 %vm307_vm0, %v1040_v12  ;;  %1008 = vmatprep.mubr.msk.bf16.mxu1 %vm307_vm0, %v1040_v12 }
  0x3a   : > { %975 = vmatmul.mubr.msk.bf16.gmra.mrb[20].mxu0 %vm307_vm0, %v1041_v13  ;;  %1009 = vmatmul.mubr.msk.bf16.gmra.mrb[20].mxu1 %vm307_vm0, %v1041_v13 }
  0x3b   : > { %978 = vmatprep.mubr.msk.bf16.mxu0 %vm307_vm0, %v1042_v14  ;;  %1012 = vmatprep.mubr.msk.bf16.mxu1 %vm307_vm0, %v1042_v14 }
  0x42   : > { %979 = vmatmul.mubr.msk.bf16.gmra.mrb[24].mxu0 %vm307_vm0, %v1043_v15  ;;  %1013 = vmatmul.mubr.msk.bf16.gmra.mrb[24].mxu1 %vm307_vm0, %v1043_v15 }
  0x43   : > { %982 = vmatprep.mubr.msk.bf16.mxu0 %vm307_vm0, %v1044_v16  ;;  %1016 = vmatprep.mubr.msk.bf16.mxu1 %vm307_vm0, %v1044_v16 }
  0x4a   : > { %983 = vmatmul.mubr.msk.bf16.gmra.mrb[28].mxu0 %vm307_vm0, %v1045_v17  ;;  %1017 = vmatmul.mubr.msk.bf16.gmra.mrb[28].mxu1 %vm307_vm0, %v1045_v17 }
  0xe5   : > { %v956_v19 = vpop.f32.mrb[0].mxu0  ;;  %v990_v20 = vpop.f32.mrb[0].mxu1 }
  0xe6   : > { %v399_v21 = vadd.f32 %v956_v19, %v1148_v18  ;;  %v608_v22 = vadd.f32 %v990_v20, %v1148_v18  ;;  %v390_v23 = vpop.f32.mrb[1].mxu0  ;;  %v599_v24 = vpop.f32.mrb[1].mxu1 }
  0xe7   : > { %v391_v25 = vadd.f32 %v1148_v18, %v390_v23  ;;  %v600_v26 = vadd.f32 %v1148_v18, %v599_v24  ;;  %v957_v27 = vpop.f32.mrb[2].mxu0  ;;  %v991_v28 = vpop.f32.mrb[2].mxu1 }
  0xe8   : > { %519 = vst.msk [vmem:[%s1153_s28 + $0x20] sm:$0xff] %vm307_vm0, %v399_v21  ;;  %884 = vst.msk [vmem:[%s1153_s28 + $0x30] sm:$0xff] %vm307_vm0, %v608_v22  ;;  %v402_v29 = vadd.f32 %v957_v27, %v1148_v18  ;;  %v611_v30 = vadd.f32 %v991_v28, %v1148_v18  ;;  %v393_v31 = vpop.f32.mrb[3].mxu0  ;;  %v602_v32 = vpop.f32.mrb[3].mxu1 }
  0xe9   : > { %517 = vst.msk [vmem:[%s1153_s28] sm:$0xff] %vm307_vm0, %v391_v25  ;;  %882 = vst.msk [vmem:[%s1153_s28 + $0x10] sm:$0xff] %vm307_vm0, %v600_v26  ;;  %v394_v33 = vadd.f32 %v1148_v18, %v393_v31  ;;  %v603_v34 = vadd.f32 %v1148_v18, %v602_v32 }
  0xea   : > { %520 = vst.msk [vmem:[%s1153_s28 + $0x28] sm:$0xff] %vm307_vm0, %v402_v29  ;;  %885 = vst.msk [vmem:[%s1153_s28 + $0x38] sm:$0xff] %vm307_vm0, %v611_v30 }
  0xeb   : > { %518 = vst.msk [vmem:[%s1153_s28 + $0x8] sm:$0xff] %vm307_vm0, %v394_v33  ;;  %883 = vst.msk [vmem:[%s1153_s28 + $0x18] sm:$0xff] %vm307_vm0, %v603_v34 }
  0xed   : > { %v960_v35 = vpop.f32.mrb[4].mxu0  ;;  %v994_v36 = vpop.f32.mrb[4].mxu1 }
  0xee   : > { %v415_v37 = vadd.f32 %v960_v35, %v1148_v18  ;;  %v624_v38 = vadd.f32 %v994_v36, %v1148_v18  ;;  %v406_v39 = vpop.f32.mrb[5].mxu0  ;;  %v615_v40 = vpop.f32.mrb[5].mxu1 }
  0xef   : > { %v407_v41 = vadd.f32 %v1148_v18, %v406_v39  ;;  %v616_v42 = vadd.f32 %v1148_v18, %v615_v40  ;;  %v961_v43 = vpop.f32.mrb[6].mxu0  ;;  %v995_v44 = vpop.f32.mrb[6].mxu1 }
  0xf0   : > { %523 = vst.msk [vmem:[%s1153_s28 + $0x60] sm:$0xff] %vm307_vm0, %v415_v37  ;;  %888 = vst.msk [vmem:[%s1153_s28 + $0x70] sm:$0xff] %vm307_vm0, %v624_v38  ;;  %v418_v45 = vadd.f32 %v961_v43, %v1148_v18  ;;  %v627_v46 = vadd.f32 %v995_v44, %v1148_v18  ;;  %v409_v47 = vpop.f32.mrb[7].mxu0  ;;  %v618_v48 = vpop.f32.mrb[7].mxu1 }
  0xf1   : > { %521 = vst.msk [vmem:[%s1153_s28 + $0x40] sm:$0xff] %vm307_vm0, %v407_v41  ;;  %886 = vst.msk [vmem:[%s1153_s28 + $0x50] sm:$0xff] %vm307_vm0, %v616_v42  ;;  %v410_v49 = vadd.f32 %v1148_v18, %v409_v47  ;;  %v619_v50 = vadd.f32 %v1148_v18, %v618_v48 }
  0xf2   : > { %524 = vst.msk [vmem:[%s1153_s28 + $0x68] sm:$0xff] %vm307_vm0, %v418_v45  ;;  %889 = vst.msk [vmem:[%s1153_s28 + $0x78] sm:$0xff] %vm307_vm0, %v627_v46 }
  0xf3   : > { %522 = vst.msk [vmem:[%s1153_s28 + $0x48] sm:$0xff] %vm307_vm0, %v410_v49  ;;  %887 = vst.msk [vmem:[%s1153_s28 + $0x58] sm:$0xff] %vm307_vm0, %v619_v50 }
  0xf5   : > { %v964_v51 = vpop.f32.mrb[8].mxu0  ;;  %v998_v52 = vpop.f32.mrb[8].mxu1 }
  0xf6   : > { %v431_v53 = vadd.f32 %v964_v51, %v1148_v18  ;;  %v640_v54 = vadd.f32 %v998_v52, %v1148_v18  ;;  %v422_v55 = vpop.f32.mrb[9].mxu0  ;;  %v631_v56 = vpop.f32.mrb[9].mxu1 }
  0xf7   : > { %v423_v57 = vadd.f32 %v1148_v18, %v422_v55  ;;  %v632_v58 = vadd.f32 %v1148_v18, %v631_v56  ;;  %v965_v59 = vpop.f32.mrb[10].mxu0  ;;  %v999_v60 = vpop.f32.mrb[10].mxu1 }
  0xf8   : > { %527 = vst.msk [vmem:[%s1153_s28 + $0xa0] sm:$0xff] %vm307_vm0, %v431_v53  ;;  %892 = vst.msk [vmem:[%s1153_s28 + $0xb0] sm:$0xff] %vm307_vm0, %v640_v54  ;;  %v434_v61 = vadd.f32 %v965_v59, %v1148_v18  ;;  %v643_v62 = vadd.f32 %v999_v60, %v1148_v18  ;;  %v425_v63 = vpop.f32.mrb[11].mxu0  ;;  %v634_v0 = vpop.f32.mrb[11].mxu1 }
  0xf9   : > { %525 = vst.msk [vmem:[%s1153_s28 + $0x80] sm:$0xff] %vm307_vm0, %v423_v57  ;;  %890 = vst.msk [vmem:[%s1153_s28 + $0x90] sm:$0xff] %vm307_vm0, %v632_v58  ;;  %v426_v1 = vadd.f32 %v1148_v18, %v425_v63  ;;  %v635_v2 = vadd.f32 %v1148_v18, %v634_v0 }
  0xfa   : > { %528 = vst.msk [vmem:[%s1153_s28 + $0xa8] sm:$0xff] %vm307_vm0, %v434_v61  ;;  %893 = vst.msk [vmem:[%s1153_s28 + $0xb8] sm:$0xff] %vm307_vm0, %v643_v62 }
  0xfb   : > { %526 = vst.msk [vmem:[%s1153_s28 + $0x88] sm:$0xff] %vm307_vm0, %v426_v1  ;;  %891 = vst.msk [vmem:[%s1153_s28 + $0x98] sm:$0xff] %vm307_vm0, %v635_v2 }
  0xfd   : > { %v968_v3 = vpop.f32.mrb[12].mxu0  ;;  %v1002_v4 = vpop.f32.mrb[12].mxu1 }
  0xfe   : > { %v447_v5 = vadd.f32 %v968_v3, %v1148_v18  ;;  %v656_v6 = vadd.f32 %v1002_v4, %v1148_v18  ;;  %v438_v7 = vpop.f32.mrb[13].mxu0  ;;  %v647_v8 = vpop.f32.mrb[13].mxu1 }
  0xff   : > { %v439_v9 = vadd.f32 %v1148_v18, %v438_v7  ;;  %v648_v10 = vadd.f32 %v1148_v18, %v647_v8  ;;  %v969_v11 = vpop.f32.mrb[14].mxu0  ;;  %v1003_v12 = vpop.f32.mrb[14].mxu1 }
 0x100   : > { %531 = vst.msk [vmem:[%s1153_s28 + $0xe0] sm:$0xff] %vm307_vm0, %v447_v5  ;;  %896 = vst.msk [vmem:[%s1153_s28 + $0xf0] sm:$0xff] %vm307_vm0, %v656_v6  ;;  %v450_v13 = vadd.f32 %v969_v11, %v1148_v18  ;;  %v659_v14 = vadd.f32 %v1003_v12, %v1148_v18  ;;  %v441_v15 = vpop.f32.mrb[15].mxu0  ;;  %v650_v16 = vpop.f32.mrb[15].mxu1 }
 0x101   : > { %529 = vst.msk [vmem:[%s1153_s28 + $0xc0] sm:$0xff] %vm307_vm0, %v439_v9  ;;  %894 = vst.msk [vmem:[%s1153_s28 + $0xd0] sm:$0xff] %vm307_vm0, %v648_v10  ;;  %v442_v17 = vadd.f32 %v1148_v18, %v441_v15  ;;  %v651_v19 = vadd.f32 %v1148_v18, %v650_v16 }
 0x102   : > { %532 = vst.msk [vmem:[%s1153_s28 + $0xe8] sm:$0xff] %vm307_vm0, %v450_v13  ;;  %897 = vst.msk [vmem:[%s1153_s28 + $0xf8] sm:$0xff] %vm307_vm0, %v659_v14 }
 0x103   : > { %530 = vst.msk [vmem:[%s1153_s28 + $0xc8] sm:$0xff] %vm307_vm0, %v442_v17  ;;  %895 = vst.msk [vmem:[%s1153_s28 + $0xd8] sm:$0xff] %vm307_vm0, %v651_v19 }
 0x105   : > { %v972_v20 = vpop.f32.mrb[16].mxu0  ;;  %v1006_v21 = vpop.f32.mrb[16].mxu1 }
 0x106   : > { %v463_v22 = vadd.f32 %v972_v20, %v1148_v18  ;;  %v672_v23 = vadd.f32 %v1006_v21, %v1148_v18  ;;  %v454_v24 = vpop.f32.mrb[17].mxu0  ;;  %v663_v25 = vpop.f32.mrb[17].mxu1 }
 0x107   : > { %v455_v26 = vadd.f32 %v1148_v18, %v454_v24  ;;  %v664_v27 = vadd.f32 %v1148_v18, %v663_v25  ;;  %v973_v28 = vpop.f32.mrb[18].mxu0  ;;  %v1007_v29 = vpop.f32.mrb[18].mxu1 }
 0x108   : > { %535 = vst.msk [vmem:[%s1153_s28 + $0x120] sm:$0xff] %vm307_vm0, %v463_v22  ;;  %900 = vst.msk [vmem:[%s1153_s28 + $0x130] sm:$0xff] %vm307_vm0, %v672_v23  ;;  %v466_v30 = vadd.f32 %v973_v28, %v1148_v18  ;;  %v675_v31 = vadd.f32 %v1007_v29, %v1148_v18  ;;  %v457_v32 = vpop.f32.mrb[19].mxu0  ;;  %v666_v33 = vpop.f32.mrb[19].mxu1 }
 0x109   : > { %533 = vst.msk [vmem:[%s1153_s28 + $0x100] sm:$0xff] %vm307_vm0, %v455_v26  ;;  %898 = vst.msk [vmem:[%s1153_s28 + $0x110] sm:$0xff] %vm307_vm0, %v664_v27  ;;  %v458_v34 = vadd.f32 %v1148_v18, %v457_v32  ;;  %v667_v35 = vadd.f32 %v1148_v18, %v666_v33 }
 0x10a   : > { %536 = vst.msk [vmem:[%s1153_s28 + $0x128] sm:$0xff] %vm307_vm0, %v466_v30  ;;  %901 = vst.msk [vmem:[%s1153_s28 + $0x138] sm:$0xff] %vm307_vm0, %v675_v31 }
 0x10b   : > { %534 = vst.msk [vmem:[%s1153_s28 + $0x108] sm:$0xff] %vm307_vm0, %v458_v34  ;;  %899 = vst.msk [vmem:[%s1153_s28 + $0x118] sm:$0xff] %vm307_vm0, %v667_v35 }
 0x10d   : > { %v976_v36 = vpop.f32.mrb[20].mxu0  ;;  %v1010_v37 = vpop.f32.mrb[20].mxu1 }
 0x10e   : > { %v479_v38 = vadd.f32 %v976_v36, %v1148_v18  ;;  %v688_v39 = vadd.f32 %v1010_v37, %v1148_v18  ;;  %v470_v40 = vpop.f32.mrb[21].mxu0  ;;  %v679_v41 = vpop.f32.mrb[21].mxu1 }
 0x10f   : > { %v471_v42 = vadd.f32 %v1148_v18, %v470_v40  ;;  %v680_v43 = vadd.f32 %v1148_v18, %v679_v41  ;;  %v977_v44 = vpop.f32.mrb[22].mxu0  ;;  %v1011_v45 = vpop.f32.mrb[22].mxu1 }
 0x110   : > { %539 = vst.msk [vmem:[%s1153_s28 + $0x160] sm:$0xff] %vm307_vm0, %v479_v38  ;;  %904 = vst.msk [vmem:[%s1153_s28 + $0x170] sm:$0xff] %vm307_vm0, %v688_v39  ;;  %v482_v46 = vadd.f32 %v977_v44, %v1148_v18  ;;  %v691_v47 = vadd.f32 %v1011_v45, %v1148_v18  ;;  %v473_v48 = vpop.f32.mrb[23].mxu0  ;;  %v682_v49 = vpop.f32.mrb[23].mxu1 }
 0x111   : > { %537 = vst.msk [vmem:[%s1153_s28 + $0x140] sm:$0xff] %vm307_vm0, %v471_v42  ;;  %902 = vst.msk [vmem:[%s1153_s28 + $0x150] sm:$0xff] %vm307_vm0, %v680_v43  ;;  %v474_v50 = vadd.f32 %v1148_v18, %v473_v48  ;;  %v683_v51 = vadd.f32 %v1148_v18, %v682_v49 }
 0x112   : > { %540 = vst.msk [vmem:[%s1153_s28 + $0x168] sm:$0xff] %vm307_vm0, %v482_v46  ;;  %905 = vst.msk [vmem:[%s1153_s28 + $0x178] sm:$0xff] %vm307_vm0, %v691_v47 }
 0x113   : > { %538 = vst.msk [vmem:[%s1153_s28 + $0x148] sm:$0xff] %vm307_vm0, %v474_v50  ;;  %903 = vst.msk [vmem:[%s1153_s28 + $0x158] sm:$0xff] %vm307_vm0, %v683_v51 }
 0x115   : > { %v980_v52 = vpop.f32.mrb[24].mxu0  ;;  %v1014_v53 = vpop.f32.mrb[24].mxu1 }
 0x116   : > { %v495_v54 = vadd.f32 %v980_v52, %v1148_v18  ;;  %v704_v55 = vadd.f32 %v1014_v53, %v1148_v18  ;;  %v486_v56 = vpop.f32.mrb[25].mxu0  ;;  %v695_v57 = vpop.f32.mrb[25].mxu1 }
 0x117   : > { %v487_v58 = vadd.f32 %v1148_v18, %v486_v56  ;;  %v696_v59 = vadd.f32 %v1148_v18, %v695_v57  ;;  %v981_v60 = vpop.f32.mrb[26].mxu0  ;;  %v1015_v61 = vpop.f32.mrb[26].mxu1 }
 0x118   : > { %543 = vst.msk [vmem:[%s1153_s28 + $0x1a0] sm:$0xff] %vm307_vm0, %v495_v54  ;;  %908 = vst.msk [vmem:[%s1153_s28 + $0x1b0] sm:$0xff] %vm307_vm0, %v704_v55  ;;  %v498_v62 = vadd.f32 %v981_v60, %v1148_v18  ;;  %v707_v63 = vadd.f32 %v1015_v61, %v1148_v18  ;;  %v489_v0 = vpop.f32.mrb[27].mxu0  ;;  %v698_v1 = vpop.f32.mrb[27].mxu1 }
 0x119   : > { %541 = vst.msk [vmem:[%s1153_s28 + $0x180] sm:$0xff] %vm307_vm0, %v487_v58  ;;  %906 = vst.msk [vmem:[%s1153_s28 + $0x190] sm:$0xff] %vm307_vm0, %v696_v59  ;;  %v490_v2 = vadd.f32 %v1148_v18, %v489_v0  ;;  %v699_v3 = vadd.f32 %v1148_v18, %v698_v1 }
 0x11a   : > { %544 = vst.msk [vmem:[%s1153_s28 + $0x1a8] sm:$0xff] %vm307_vm0, %v498_v62  ;;  %909 = vst.msk [vmem:[%s1153_s28 + $0x1b8] sm:$0xff] %vm307_vm0, %v707_v63 }
 0x11b   : > { %542 = vst.msk [vmem:[%s1153_s28 + $0x188] sm:$0xff] %vm307_vm0, %v490_v2  ;;  %907 = vst.msk [vmem:[%s1153_s28 + $0x198] sm:$0xff] %vm307_vm0, %v699_v3 }
 0x11d   : > { %v984_v4 = vpop.f32.mrb[28].mxu0  ;;  %v1018_v5 = vpop.f32.mrb[28].mxu1 }
 0x11e   : > { %v511_v6 = vadd.f32 %v984_v4, %v1148_v18  ;;  %v720_v7 = vadd.f32 %v1018_v5, %v1148_v18  ;;  %v502_v8 = vpop.f32.mrb[29].mxu0  ;;  %v711_v9 = vpop.f32.mrb[29].mxu1 }
 0x11f   : > { %v503_v10 = vadd.f32 %v1148_v18, %v502_v8  ;;  %v712_v11 = vadd.f32 %v1148_v18, %v711_v9  ;;  %v985_v12 = vpop.f32.mrb[30].mxu0  ;;  %v1019_v13 = vpop.f32.mrb[30].mxu1 }
 0x120   : > { %547 = vst.msk [vmem:[%s1153_s28 + $0x1e0] sm:$0xff] %vm307_vm0, %v511_v6  ;;  %912 = vst.msk [vmem:[%s1153_s28 + $0x1f0] sm:$0xff] %vm307_vm0, %v720_v7  ;;  %v514_v14 = vadd.f32 %v985_v12, %v1148_v18  ;;  %v723_v15 = vadd.f32 %v1019_v13, %v1148_v18  ;;  %v505_v16 = vpop.f32.mrb[31].mxu0  ;;  %v714_v17 = vpop.f32.mrb[31].mxu1 }
 0x121   : > { %545 = vst.msk [vmem:[%s1153_s28 + $0x1c0] sm:$0xff] %vm307_vm0, %v503_v10  ;;  %910 = vst.msk [vmem:[%s1153_s28 + $0x1d0] sm:$0xff] %vm307_vm0, %v712_v11  ;;  %v506_v19 = vadd.f32 %v1148_v18, %v505_v16  ;;  %v715_v20 = vadd.f32 %v1148_v18, %v714_v17 }
 0x122   : > { %548 = vst.msk [vmem:[%s1153_s28 + $0x1e8] sm:$0xff] %vm307_vm0, %v514_v14  ;;  %913 = vst.msk [vmem:[%s1153_s28 + $0x1f8] sm:$0xff] %vm307_vm0, %v723_v15 }
 0x123   : > { %546 = vst.msk [vmem:[%s1153_s28 + $0x1c8] sm:$0xff] %vm307_vm0, %v506_v19  ;;  %911 = vst.msk [vmem:[%s1153_s28 + $0x1d8] sm:$0xff] %vm307_vm0, %v715_v20 }
 0x124 PF: > { %s13_s12 = sadd.s32 1, %s1052_s12  }
 0x125   : > { %p10_p4 = scmp.ge.s32.totalorder %s13_s12, 4  }
 0x127   :  { %12 = sbr.rel (!%p10_p4) target bundleno = 1 (0x1), region = 64 }

// kernel: _lambda_.2
= control target key start
LH: loop header
LB: loop body
LE: loop exit
PB: predicated region body
PF: predicated region fallthrough
CT: control target
= control target key end

     0   :  { %vm100_vm0 = vcmask 261120   ;;  %vm222_vm1 = vcmask 130048   ;;  %vm1038_vm2 = vcmask 257024   ;;  %s4012_s1 = inlined_call_operand.vmem [shape: bf16[2,32,32], index: 1, kind: input, shape index: {}]   ;;  %s4013_s0 = inlined_call_operand.vmem [shape: bf16[16,8,32], index: 0, kind: input, shape index: {}]   ;;  %s4014_s2 = inlined_call_operand.vmem [shape: f32[1,32], index: 2, kind: input, shape index: {}]   ;;  %s4015_s3 = inlined_call_operand.vmem [shape: f32[1,32], index: 3, kind: input, shape index: {}]   ;;  %s4016_s4 = inlined_call_operand.vmem [shape: f32[1,32], index: 4, kind: input, shape index: {}]   ;;  %s4017_s5 = inlined_call_operand.vmem [shape: bf16[16,2,8,32], index: 5, kind: output, shape index: {}]  }
   0x1   :  { %v2126_v0 = vld [vmem:[%s4012_s1] sm:$0xff]   ;;  %v2127_v1 = vld [vmem:[%s4012_s1 + $0x10] sm:$0xff]   ;;  %v2128_v2 = vld [vmem:[%s4012_s1 + $0x8] sm:$0xff]  }
   0x2   :  { %2085 = vmatprep.subr.bf16.mxu0 %v2126_v0  ;;  %2105 = vmatprep.subr.bf16.mxu1 %v2127_v1  ;;  %v2129_v3 = vld [vmem:[%s4012_s1 + $0x18] sm:$0xff]   ;;  %v2130_v4 = vld [vmem:[%s4013_s0] sm:$0xff]   ;;  %v2131_v5 = vld [vmem:[%s4013_s0 + $0x8] sm:$0xff]  }
   0x3   :  { %2086 = vmatpush3.bf16.msra.mxu0 %v2126_v0  ;;  %2106 = vmatpush3.bf16.msra.mxu1 %v2127_v1  ;;  %v2132_v6 = vld [vmem:[%s4013_s0 + $0x10] sm:$0xff]   ;;  %v2133_v7 = vld [vmem:[%s4013_s0 + $0x18] sm:$0xff]   ;;  %v2134_v8 = vld [vmem:[%s4013_s0 + $0x20] sm:$0xff]  }
   0x4   :  { %2087 = vmatprep.subr.bf16.mxu0 %v2128_v2  ;;  %2107 = vmatprep.subr.bf16.mxu1 %v2129_v3  ;;  %v2135_v9 = vld [vmem:[%s4013_s0 + $0x28] sm:$0xff]   ;;  %v2136_v10 = vld [vmem:[%s4013_s0 + $0x30] sm:$0xff]   ;;  %v2137_v11 = vld [vmem:[%s4013_s0 + $0x38] sm:$0xff]   ;;  %s2396_s0 = smov 112  }
   0x5   :  { %2089 = vmatprep.mubr.msk.bf16.mxu0 %vm100_vm0, %v2130_v4  ;;  %2109 = vmatprep.mubr.msk.bf16.mxu1 %vm100_vm0, %v2130_v4  ;;  %v2482_v12 = vld [vmem:[%s4014_s2] ss:$0 sm:$0xff] }
   0x7   :  { %2088 = vmatpush3.bf16.msra.mxu0 %v2128_v2  ;;  %2108 = vmatpush3.bf16.msra.mxu1 %v2129_v3 }
   0xa   :  { %2090 = vmatmul.mubr.msk.bf16.vlgmr.msra.gmra.mrb[0].mxu0 %vm100_vm0, %v2131_v5  ;;  %2110 = vmatmul.mubr.msk.bf16.vlgmr.msra.gmra.mrb[0].mxu1 %vm100_vm0, %v2131_v5 }
   0xb   :  { %2093 = vmatprep.mubr.msk.bf16.mxu0 %vm100_vm0, %v2132_v6  ;;  %2113 = vmatprep.mubr.msk.bf16.mxu1 %vm100_vm0, %v2132_v6 }
  0x12   :  { %2094 = vmatmul.mubr.msk.bf16.gmra.mrb[4].mxu0 %vm100_vm0, %v2133_v7  ;;  %2114 = vmatmul.mubr.msk.bf16.gmra.mrb[4].mxu1 %vm100_vm0, %v2133_v7 }
  0x13   :  { %2097 = vmatprep.mubr.msk.bf16.mxu0 %vm100_vm0, %v2134_v8  ;;  %2117 = vmatprep.mubr.msk.bf16.mxu1 %vm100_vm0, %v2134_v8 }
  0x1a   :  { %2098 = vmatmul.mubr.msk.bf16.gmra.mrb[8].mxu0 %vm100_vm0, %v2135_v9  ;;  %2118 = vmatmul.mubr.msk.bf16.gmra.mrb[8].mxu1 %vm100_vm0, %v2135_v9 }
  0x1b   :  { %2101 = vmatprep.mubr.msk.bf16.mxu0 %vm100_vm0, %v2136_v10  ;;  %2121 = vmatprep.mubr.msk.bf16.mxu1 %vm100_vm0, %v2136_v10 }
  0x22   :  { %2102 = vmatmul.mubr.msk.bf16.gmra.mrb[12].mxu0 %vm100_vm0, %v2137_v11  ;;  %2122 = vmatmul.mubr.msk.bf16.gmra.mrb[12].mxu1 %vm100_vm0, %v2137_v11 }
  0xdd   :  { %v2091_v13 = vpop.f32.mrb[0].mxu0  ;;  %v2111_v15 = vpop.f32.mrb[0].mxu1 }
  0xde   :  { %v2485_v14 = vadd.f32 %v2091_v13, %v2482_v12  ;;  %v159_v16 = vpop.f32.mrb[1].mxu0  ;;  %v2488_v17 = vadd.f32 %v2111_v15, %v2482_v12  ;;  %v1113_v19 = vpop.f32.mrb[1].mxu1 }
  0xdf   :  { %v2092_v18 = vpop.f32.mrb[2].mxu0  ;;  %v2112_v21 = vpop.f32.mrb[2].mxu1  ;;  %v2495_v23 = vadd.f32 %v2482_v12, %v159_v16  ;;  %v2500_v24 = vadd.f32 %v2482_v12, %v1113_v19 }
  0xe0   :  { %578 = vrot.lane.b32.xlu1 %v2485_v14, %s2396_s0  ;;  %v162_v20 = vpop.f32.mrb[3].mxu0  ;;  %1530 = vrot.lane.b32.xlu0 %v2488_v17, %s2396_s0  ;;  %v1116_v22 = vpop.f32.mrb[3].mxu1  ;;  %v229_v31 = vsel %vm222_vm1, %v2485_v14, 0.0  ;;  %v1182_v32 = vsel %vm222_vm1, %v2488_v17, 0.0  ;;  %v2509_v34 = vadd.f32 %v2112_v21, %v2482_v12  ;;  %v2528_v42 = vadd.f32 %v2092_v18, %v2482_v12 }
  0xe1   :  { %v223_v35 = vsel %vm222_vm1, %v2495_v23, 0.0  ;;  %v2516_v37 = vadd.f32 %v2482_v12, %v162_v20  ;;  %v2521_v39 = vadd.f32 %v2482_v12, %v1116_v22  ;;  %v1176_v47 = vsel %vm222_vm1, %v2500_v24, 0.0 }
  0xe2   :  { %v1185_v38 = vsel %vm222_vm1, %v2509_v34, 0.0  ;;  %v232_v48 = vsel %vm222_vm1, %v2528_v42, 0.0 }
  0xe3   :  { %v226_v40 = vsel %vm222_vm1, %v2516_v37, 0.0  ;;  %v1179_v41 = vsel %vm222_vm1, %v2521_v39, 0.0 }
  0xe4   :  { %574 = vrot.lane.b32.xlu0 %v2495_v23, %s2396_s0 }
  0xe5   :  { %v2095_v25 = vpop.f32.mrb[4].mxu0  ;;  %v2115_v26 = vpop.f32.mrb[4].mxu1 }
  0xe6   :  { %v175_v27 = vpop.f32.mrb[5].mxu0  ;;  %v1129_v28 = vpop.f32.mrb[5].mxu1  ;;  %v2535_v45 = vadd.f32 %v2095_v25, %v2482_v12  ;;  %v2540_v46 = vadd.f32 %v2115_v26, %v2482_v12 }
  0xe7   :  { %v2116_v29 = vpop.f32.mrb[6].mxu1  ;;  %v2096_v33 = vpop.f32.mrb[6].mxu0  ;;  %v2555_v52 = vadd.f32 %v2482_v12, %v175_v27  ;;  %v2560_v54 = vadd.f32 %v2482_v12, %v1129_v28 }
  0xe8   :  { %1526 = vrot.lane.b32.xlu0 %v2500_v24, %s2396_s0  ;;  %v1132_v30 = vpop.f32.mrb[7].mxu1  ;;  %v2513_v36 = vpop.f32.mrb[7].mxu0  ;;  %v241_v49 = vsel %vm222_vm1, %v2535_v45, 0.0  ;;  %v1194_v56 = vsel %vm222_vm1, %v2540_v46, 0.0  ;;  %v2569_v60 = vadd.f32 %v2116_v29, %v2482_v12  ;;  %v2577_v63 = vadd.f32 %v2096_v33, %v2482_v12 }
  0xe9   :  { %v235_v59 = vsel %vm222_vm1, %v2555_v52, 0.0  ;;  %v2572_v61 = vadd.f32 %v2482_v12, %v1132_v30  ;;  %v1188_v5 = vsel %vm222_vm1, %v2560_v54, 0.0  ;;  %v2603_v8 = vadd.f32 %v2482_v12, %v2513_v36 }
  0xea   :  { %v1197_v62 = vsel %vm222_vm1, %v2569_v60, 0.0  ;;  %v244_v6 = vsel %vm222_vm1, %v2577_v63, 0.0 }
  0xeb   :  { %v1191_v0 = vsel %vm222_vm1, %v2572_v61, 0.0  ;;  %v238_v18 = vsel %vm222_vm1, %v2603_v8, 0.0 }
  0xed   :  { %v2099_v43 = vpop.f32.mrb[8].mxu0  ;;  %v2119_v44 = vpop.f32.mrb[8].mxu1 }
  0xee   :  { %v191_v50 = vpop.f32.mrb[9].mxu0  ;;  %v1145_v51 = vpop.f32.mrb[9].mxu1  ;;  %v2586_v3 = vadd.f32 %v2099_v43, %v2482_v12  ;;  %v2591_v4 = vadd.f32 %v2119_v44, %v2482_v12 }
  0xef   :  { %v2120_v53 = vpop.f32.mrb[10].mxu1  ;;  %v2100_v57 = vpop.f32.mrb[10].mxu0  ;;  %v2610_v11 = vadd.f32 %v2482_v12, %v191_v50  ;;  %v2615_v15 = vadd.f32 %v2482_v12, %v1145_v51 }
  0xf0   :  { %v1148_v55 = vpop.f32.mrb[11].mxu1  ;;  %v194_v58 = vpop.f32.mrb[11].mxu0  ;;  %v253_v7 = vsel %vm222_vm1, %v2586_v3, 0.0  ;;  %v1206_v19 = vsel %vm222_vm1, %v2591_v4, 0.0  ;;  %v2630_v25 = vadd.f32 %v2120_v53, %v2482_v12  ;;  %v2638_v28 = vadd.f32 %v2100_v57, %v2482_v12 }
  0xf1   :  { %4094 = vst [vmem:[#allocation2_spill] sm:$0xff] %v2610_v11  ;;  %4095 = vst [vmem:[#allocation3_spill] sm:$0xff] %v2615_v15  ;;  %v247_v22 = vsel %vm222_vm1, %v2610_v11, 0.0  ;;  %v2633_v26 = vadd.f32 %v2482_v12, %v1148_v55  ;;  %v2663_v36 = vadd.f32 %v2482_v12, %v194_v58 }
  0xf2   :  { %v1209_v27 = vsel %vm222_vm1, %v2630_v25, 0.0  ;;  %v256_v33 = vsel %vm222_vm1, %v2638_v28, 0.0 }
  0xf3   :  { %4096 = vst [vmem:[#allocation4_spill] sm:$0xff] %v2633_v26  ;;  %v1203_v29 = vsel %vm222_vm1, %v2633_v26, 0.0 }
  0xf5   :  { %v2103_v1 = vpop.f32.mrb[12].mxu0  ;;  %v2123_v2 = vpop.f32.mrb[12].mxu1 }
  0xf6   :  { %v207_v9 = vpop.f32.mrb[13].mxu0  ;;  %v1161_v10 = vpop.f32.mrb[13].mxu1  ;;  %v2647_v30 = vadd.f32 %v2103_v1, %v2482_v12 }
  0xf7   :  { %v2124_v13 = vpop.f32.mrb[14].mxu1  ;;  %v2104_v20 = vpop.f32.mrb[14].mxu0  ;;  %v2672_v44 = vadd.f32 %v2482_v12, %v207_v9 }
  0xf8   :  { %v2617_v16 = vpop.f32.mrb[15].mxu1  ;;  %v2625_v21 = vpop.f32.mrb[15].mxu0  ;;  %4097 = vst [vmem:[#allocation5_spill] sm:$0xff] %v2647_v30  ;;  %v2708_v9 = vadd.f32 %v2124_v13, %v2482_v12 }
  0xf9   :  { %4099 = vst [vmem:[#allocation7_spill] sm:$0xff] %v2672_v44 }
  0xfa   :  { %4101 = vst [vmem:[#allocation9_spill] sm:$0xff] %v2708_v9 }
 0x104   :  { %230 = vadd.xlane.f32.xlu1 %v229_v31  ;;  %v2652_v31 = vadd.f32 %v2123_v2, %v2482_v12 }
 0x106   :  { %4098 = vst [vmem:[#allocation6_spill] sm:$0xff] %v2652_v31  ;;  %v1218_v1 = vsel %vm222_vm1, %v2652_v31, 0.0 }
 0x107   :  { %224 = vadd.xlane.f32.xlu0 %v223_v35  ;;  %v265_v35 = vsel %vm222_vm1, %v2647_v30, 0.0 }
 0x108   :  { %1183 = vadd.xlane.f32.xlu1 %v1182_v32  ;;  %v1200_v32 = vsel %vm222_vm1, %v2615_v15, 0.0 }
 0x10b   :  { %1186 = vadd.xlane.f32.xlu0 %v1185_v38 }
 0x10f   :  { %227 = vadd.xlane.f32.xlu0 %v226_v40 }
 0x113   :  { %1180 = vadd.xlane.f32.xlu0 %v1179_v41 }
 0x119   :  { %580 = vrot.lane.b32.xlu1 %v2528_v42, %s2396_s0 }
 0x11d   :  { %1532 = vrot.lane.b32.xlu1 %v2509_v34, %s2396_s0 }
 0x129   :  { %586 = vrot.lane.b32.xlu0 %v2535_v45, %s2396_s0 }
 0x12d   :  { %1538 = vrot.lane.b32.xlu0 %v2540_v46, %s2396_s0 }
 0x141   :  { %1177 = vadd.xlane.f32.xlu1 %v1176_v47 }
 0x145   :  { %233 = vadd.xlane.f32.xlu1 %v232_v48 }
 0x14c   :  { %242 = vadd.xlane.f32.xlu0 %v241_v49  ;;  %v2681_v49 = vadd.f32 %v2482_v12, %v1161_v10 }
 0x14e   :  { %4100 = vst [vmem:[#allocation8_spill] sm:$0xff] %v2681_v49 }
 0x152   :  { %v1531_v38 = vpop.permute.xlu0 %1530  ;;  %v579_v40 = vpop.permute.xlu1 %578 }
 0x156   :  { %576 = vrot.lane.b32.xlu1 %v2516_v37, %s2396_s0  ;;  %v575_v43 = vpop.permute.xlu0 %574 }
 0x15a   :  { %1528 = vrot.lane.b32.xlu1 %v2521_v39, %s2396_s0  ;;  %v2674_v47 = vpop.permute.xlu0 %1526 }
 0x162   :  { %582 = vrot.lane.b32.xlu0 %v2555_v52, %s2396_s0 }
 0x166   :  { %1534 = vrot.lane.b32.xlu0 %v2560_v54, %s2396_s0 }
 0x17e   :  { %1195 = vadd.xlane.f32.xlu1 %v1194_v56 }
 0x185   :  { %236 = vadd.xlane.f32.xlu0 %v235_v59 }
 0x189   :  { %1198 = vadd.xlane.f32.xlu0 %v1197_v62  ;;  %v250_v62 = vsel %vm222_vm1, %v2663_v36, 0.0 }
 0x18d   :  { %1192 = vadd.xlane.f32.xlu0 %v1191_v0 }
 0x18f   :  { %588 = vrot.lane.b32.xlu1 %v2577_v63, %s2396_s0 }
 0x191   :  { %v2669_v41 = vpop.xlane.xlu1 %230 }
 0x193   :  { %1540 = vrot.lane.b32.xlu1 %v2569_v60, %s2396_s0 }
 0x194   :  { %v2683_v50 = vpop.xlane.xlu0 %224 }
 0x195   :  { %v2676_v48 = vpop.xlane.xlu1 %1183 }
 0x198   :  { %v2687_v53 = vpop.xlane.xlu0 %1186 }
 0x199   :  { %v581_v51 = vpop.permute.xlu1 %580 }
 0x19c   :  { %v2689_v56 = vpop.xlane.xlu0 %227 }
 0x19d   :  { %v1533_v55 = vpop.permute.xlu1 %1532 }
 0x1a0   :  { %v2693_v58 = vpop.xlane.xlu0 %1180 }
 0x1a3   :  { %594 = vrot.lane.b32.xlu0 %v2586_v3, %s2396_s0 }
 0x1a4   :  { %v587_v0 = vpop.permute.xlu0 %586 }
 0x1a7   :  { %1546 = vrot.lane.b32.xlu0 %v2591_v4, %s2396_s0 }
 0x1b7   :  { %1189 = vadd.xlane.f32.xlu1 %v1188_v5  ;;  %v2703_v5 = vpop.permute.xlu0 %1538 }
 0x1bb   :  { %245 = vadd.xlane.f32.xlu1 %v244_v6 }
 0x1c6   :  { %254 = vadd.xlane.f32.xlu0 %v253_v7  ;;  %v259_v7 = vsel %vm222_vm1, %v2672_v44, 0.0 }
 0x1cc   :  { %584 = vrot.lane.b32.xlu1 %v2603_v8, %s2396_s0 }
 0x1ce   :  { %v2691_v57 = vpop.xlane.xlu1 %1177 }
 0x1d0   :  { %1536 = vrot.lane.b32.xlu1 %v2572_v61, %s2396_s0 }
 0x1d2   :  { %v2695_v59 = vpop.xlane.xlu1 %233 }
 0x1d6   :  { %v2701_v2 = vpop.permute.xlu1 %576 }
 0x1d9   :  { %v2710_v10 = vpop.xlane.xlu0 %242 }
 0x1da   :  { %v1529_v6 = vpop.permute.xlu1 %1528 }
 0x1dc   :  { %590 = vrot.lane.b32.xlu0 %v2610_v11, %s2396_s0 }
 0x1e0   :  { %1542 = vrot.lane.b32.xlu0 %v2615_v15, %s2396_s0 }
 0x1f4   :  { %239 = vadd.xlane.f32.xlu1 %v238_v18 }
 0x1f8   :  { %1207 = vadd.xlane.f32.xlu1 %v1206_v19  ;;  %v2716_v19 = vadd.f32 %v2482_v12, %v2617_v16  ;;  %v628_v16 = vsel %vm222_vm1, %v579_v40, 0.0  ;;  %v631_v40 = vsel %vm222_vm1, %v581_v51, 0.0 }
 0x1fa   :  { %4102 = vst [vmem:[#allocation10_spill] sm:$0xff] %v2716_v19  ;;  %v1215_v13 = vsel %vm222_vm1, %v2716_v19, 0.0 }
 0x1ff   :  { %248 = vadd.xlane.f32.xlu0 %v247_v22  ;;  %v1221_v22 = vsel %vm222_vm1, %v2708_v9, 0.0 }
 0x203   :  { %1210 = vadd.xlane.f32.xlu0 %v1209_v27  ;;  %v583_v27 = vpop.permute.xlu0 %582 }
 0x204   :  { %v634_v51 = vsel %vm222_vm1, %v583_v27, 0.0 }
 0x207   :  { %1204 = vadd.xlane.f32.xlu0 %v1203_v29 }
 0x209   :  { %596 = vrot.lane.b32.xlu1 %v2638_v28, %s2396_s0 }
 0x20b   :  { %v2712_v18 = vpop.xlane.xlu1 %1195 }
 0x20d   :  { %1548 = vrot.lane.b32.xlu1 %v2630_v25, %s2396_s0 }
 0x20f   :  { %v2720_v29 = vpop.permute.xlu1 %588 }
 0x21d   :  { %602 = vrot.lane.b32.xlu0 %v2647_v30, %s2396_s0 }
 0x221   :  { %1554 = vrot.lane.b32.xlu0 %v2652_v31, %s2396_s0 }
 0x231   :  { %1201 = vadd.xlane.f32.xlu1 %v1200_v32  ;;  %v2723_v32 = vadd.f32 %v2104_v20, %v2482_v12  ;;  %v1580_v20 = vsel %vm222_vm1, %v1531_v38, 0.0 }
 0x233   :  { %4103 = vst [vmem:[#allocation11_spill] sm:$0xff] %v2723_v32 }
 0x235   :  { %257 = vadd.xlane.f32.xlu1 %v256_v33  ;;  %v2729_v33 = vpop.permute.xlu0 %1534 }
 0x240   :  { %266 = vadd.xlane.f32.xlu0 %v265_v35  ;;  %v1541_v35 = vpop.permute.xlu1 %1540 }
 0x246   :  { %592 = vrot.lane.b32.xlu1 %v2663_v36, %s2396_s0 }
 0x24a   :  { %1544 = vrot.lane.b32.xlu1 %v2633_v26, %s2396_s0 }
 0x256   :  { %598 = vrot.lane.b32.xlu0 %v2672_v44, %s2396_s0  ;;  %v1583_v44 = vsel %vm222_vm1, %v1533_v55, 0.0  ;;  %v1595_v55 = vsel %vm222_vm1, %v1541_v35, 0.0 }
 0x25a   :  { %1550 = vrot.lane.b32.xlu0 %v2681_v49, %s2396_s0 }
 0x26e   :  { %251 = vadd.xlane.f32.xlu1 %v250_v62  ;;  %v2734_v62 = vpop.xlane.xlu0 %236 }
 0x272   :  { %1219 = vadd.xlane.f32.xlu1 %v1218_v1  ;;  %v2737_v1 = vpop.xlane.xlu1 %1189 }
 0x279   :  { %260 = vadd.xlane.f32.xlu0 %v259_v7  ;;  %v622_v7 = vsel %vm222_vm1, %v575_v43, 0.0 }
 0x27d   :  { %1222 = vadd.xlane.f32.xlu0 %v1221_v22  ;;  %v2740_v22 = vpop.xlane.xlu0 %1198 }
 0x281   :  { %1216 = vadd.xlane.f32.xlu0 %v1215_v13  ;;  %v2742_v13 = vpop.xlane.xlu1 %245 }
 0x283   :  { %604 = vrot.lane.b32.xlu1 %v2723_v32, %s2396_s0 }
 0x285   :  { %629 = vadd.xlane.f32.xlu0 %v628_v16  ;;  %v2745_v16 = vpop.xlane.xlu0 %1192  ;;  %v2748_v31 = vpop.permute.xlu1 %584 }
 0x287   :  { %1556 = vrot.lane.b32.xlu1 %v2708_v9, %s2396_s0  ;;  %v640_v9 = vsel %vm222_vm1, %v587_v0, 0.0  ;;  %v1212_v0 = vsel %vm222_vm1, %v2681_v49, 0.0 }
 0x289   :  { %1581 = vadd.xlane.f32.xlu0 %v1580_v20  ;;  %v595_v38 = vpop.permute.xlu0 %594  ;;  %v1577_v20 = vsel %vm222_vm1, %v1529_v6, 0.0  ;;  %v1537_v43 = vpop.permute.xlu1 %1536 }
 0x28a   :  { %v1589_v6 = vsel %vm222_vm1, %v1537_v43, 0.0 }
 0x28d   :  { %623 = vadd.xlane.f32.xlu0 %v622_v7  ;;  %v1547_v7 = vpop.permute.xlu0 %1546  ;;  %v2752_v30 = vpop.xlane.xlu1 %239 }
 0x291   :  { %632 = vadd.xlane.f32.xlu0 %v631_v40  ;;  %v2755_v40 = vpop.xlane.xlu0 %254  ;;  %v2758_v15 = vpop.xlane.xlu1 %1207 }
 0x295   :  { %1584 = vadd.xlane.f32.xlu0 %v1583_v44  ;;  %v591_v44 = vpop.permute.xlu0 %590 }
 0x296   :  { %v646_v35 = vsel %vm222_vm1, %v591_v44, 0.0 }
 0x299   :  { %1578 = vadd.xlane.f32.xlu0 %v1577_v20  ;;  %v652_v20 = vsel %vm222_vm1, %v595_v38, 0.0  ;;  %v1543_v27 = vpop.permute.xlu0 %1542  ;;  %v2774_v38 = vadd.f32 %v2482_v12, %v2625_v21 }
 0x29b   :  { %v262_v11 = vsel %vm222_vm1, %v2774_v38, 0.0 }
 0x29d   :  { %641 = vadd.xlane.f32.xlu0 %v640_v9  ;;  %v597_v9 = vpop.permute.xlu1 %596 }
 0x2a1   :  { %635 = vadd.xlane.f32.xlu0 %v634_v51  ;;  %v268_v51 = vsel %vm222_vm1, %v2723_v32, 0.0  ;;  %v1549_v26 = vpop.permute.xlu1 %1548 }
 0x2a2   :  { %v1607_v43 = vsel %vm222_vm1, %v1549_v26, 0.0 }
 0x2a5   :  { %1596 = vadd.xlane.f32.xlu0 %v1595_v55  ;;  %v2767_v55 = vpop.xlane.xlu0 %248 }
 0x2a9   :  { %1590 = vadd.xlane.f32.xlu0 %v1589_v6  ;;  %v2770_v6 = vpop.xlane.xlu0 %1210 }
 0x2ab   :  { %1213 = vadd.xlane.f32.xlu1 %v1212_v0 }
 0x2ad   :  { %653 = vadd.xlane.f32.xlu0 %v652_v20  ;;  %v2776_v0 = vpop.xlane.xlu0 %1204 }
 0x2af   :  { %269 = vadd.xlane.f32.xlu1 %v268_v51 }
 0x2b1   :  { %647 = vadd.xlane.f32.xlu0 %v646_v35  ;;  %v603_v51 = vpop.permute.xlu0 %602 }
 0x2b2   :  { %v664_v12 = vsel %vm222_vm1, %v603_v51, 0.0  ;;  %v1592_v51 = vsel %vm222_vm1, %v2703_v5, 0.0  ;;  %v1604_v5 = vsel %vm222_vm1, %v1547_v7, 0.0 }
 0x2b5   :  { %1608 = vadd.xlane.f32.xlu0 %v1607_v43  ;;  %v1555_v35 = vpop.permute.xlu0 %1554 }
 0x2be   :  { %v2778_v20 = vpop.xlane.xlu1 %1201 }
 0x2bf   :  { %4104 = vst [vmem:[#allocation12_spill] sm:$0xff] %v2778_v20 }
 0x2c0   :  { %600 = vrot.lane.b32.xlu1 %v2774_v38, %s2396_s0 }
 0x2c2   :  { %v2782_v44 = vpop.xlane.xlu1 %257 }
 0x2c4   :  { %1552 = vrot.lane.b32.xlu1 %v2716_v19, %s2396_s0  ;;  %v1574_v19 = vsel %vm222_vm1, %v2674_v47, 0.0 }
 0x2c6   :  { %v593_v26 = vpop.permute.xlu1 %592 }
 0x2ca   :  { %v1545_v43 = vpop.permute.xlu1 %1544 }
 0x2cb   :  { %v1601_v49 = vsel %vm222_vm1, %v1545_v43, 0.0 }
 0x2cc   :  { %1602 = vadd.xlane.f32.xlu0 %v1601_v49  ;;  %v625_v49 = vsel %vm222_vm1, %v2701_v2, 0.0  ;;  %v637_v2 = vsel %vm222_vm1, %v2748_v31, 0.0  ;;  %v1616_v31 = vsel %vm222_vm1, %v1555_v35, 0.0 }
 0x2cd   :  { %v2788_v21 = vpop.xlane.xlu0 %266 }
 0x2d0   :  { %665 = vadd.xlane.f32.xlu0 %v664_v12 }
 0x2d1   :  { %v599_v32 = vpop.permute.xlu0 %598 }
 0x2d2   :  { %v658_v20 = vsel %vm222_vm1, %v599_v32, 0.0  ;;  %v1586_v32 = vsel %vm222_vm1, %v2729_v33, 0.0  ;;  %v1598_v33 = vsel %vm222_vm1, %v1543_v27, 0.0 }
 0x2d4   :  { %659 = vadd.xlane.f32.xlu0 %v658_v20 }
 0x2e8   :  { %263 = vadd.xlane.f32.xlu1 %v262_v11  ;;  %v643_v11 = vsel %vm222_vm1, %v2720_v29, 0.0  ;;  %v655_v29 = vsel %vm222_vm1, %v597_v9, 0.0  ;;  %v274_v9 = vmul.f32 0.0625, %v2669_v41 }
 0x2ec   :  { %1575 = vadd.xlane.f32.xlu1 %v1574_v19 }
 0x2f0   :  { %626 = vadd.xlane.f32.xlu1 %v625_v49  ;;  %v649_v49 = vsel %vm222_vm1, %v593_v26, 0.0 }
 0x2f4   :  { %1593 = vadd.xlane.f32.xlu1 %v1592_v51  ;;  %v1551_v51 = vpop.permute.xlu0 %1550 }
 0x2f5   :  { %v1610_v7 = vsel %vm222_vm1, %v1551_v51, 0.0  ;;  %v1225_v51 = vmul.f32 0.0625, %v2693_v58  ;;  %v279_v58 = vmul.f32 0.0625, %v2742_v13 }
 0x2f7   :  { %v2875_v13 = vsub.f32 %v2577_v63, %v279_v58 }
 0x2f8   :  { %1587 = vadd.xlane.f32.xlu1 %v1586_v32 }
 0x2f9   :  { %v311_v58 = vmul.f32 %v2875_v13, %v2875_v13 }
 0x2fb   :  { %v2801_v20 = vpop.xlane.xlu1 %251 }
 0x2fc   :  { %644 = vadd.xlane.f32.xlu1 %v643_v11  ;;  %v275_v11 = vmul.f32 0.0625, %v2695_v59  ;;  %v273_v59 = vmul.f32 0.0625, %v2689_v56 }
 0x2fe   :  { %v2825_v35 = vsub.f32 %v2528_v42, %v275_v11  ;;  %v2847_v56 = vsub.f32 %v2516_v37, %v273_v59  ;;  %v1224_v11 = vmul.f32 0.0625, %v2691_v57  ;;  %v278_v57 = vmul.f32 0.0625, %v2710_v10 }
 0x2ff   :  { %v2805_v47 = vpop.xlane.xlu1 %1219  ;;  %v1230_v10 = vmul.f32 0.0625, %v2712_v18 }
 0x300   :  { %638 = vadd.xlane.f32.xlu1 %v637_v2  ;;  %v1227_v2 = vmul.f32 0.0625, %v2687_v53  ;;  %v307_v53 = vmul.f32 %v2825_v35, %v2825_v35  ;;  %v305_v59 = vmul.f32 %v2847_v56, %v2847_v56 }
 0x301   :  { %v2897_v18 = vsub.f32 %v2540_v46, %v1230_v10 }
 0x303   :  { %v605_v19 = vpop.permute.xlu1 %604  ;;  %4105 = vst [vmem:[#allocation13_spill] sm:$0xff] %v2897_v18 }
 0x304   :  { %1605 = vadd.xlane.f32.xlu1 %v1604_v5  ;;  %v667_v32 = vsel %vm222_vm1, %v605_v19, 0.0  ;;  %v2828_v5 = vsub.f32 %v2485_v14, %v274_v9  ;;  %v2832_v19 = vsub.f32 %v2509_v34, %v1227_v2 }
 0x307   :  { %v1557_v43 = vpop.permute.xlu1 %1556 }
 0x308   :  { %1599 = vadd.xlane.f32.xlu1 %v1598_v33  ;;  %v1619_v12 = vsel %vm222_vm1, %v1557_v43, 0.0  ;;  %v1226_v43 = vmul.f32 0.0625, %v2676_v48  ;;  %v306_v48 = vmul.f32 %v2828_v5, %v2828_v5 }
 0x309   :  { %1620 = vadd.xlane.f32.xlu0 %v1619_v12  ;;  %v272_v12 = vmul.f32 0.0625, %v2683_v50 }
 0x30a   :  { %v326_v9 = vsel %vm222_vm1, %v306_v48, 0.0  ;;  %v323_v48 = vsel %vm222_vm1, %v305_v59, 0.0 }
 0x30b   :  { %v2853_v50 = vsub.f32 %v2495_v23, %v272_v12 }
 0x30c   :  { %656 = vadd.xlane.f32.xlu1 %v655_v29  ;;  %v2840_v29 = vsub.f32 %v2488_v17, %v1226_v43  ;;  %v2860_v43 = vsub.f32 %v2521_v39, %v1225_v51  ;;  %v2881_v51 = vsub.f32 %v2535_v45, %v278_v57 }
 0x30d   :  { %v304_v12 = vmul.f32 %v2853_v50, %v2853_v50 }
 0x30e   :  { %v1258_v2 = vmul.f32 %v2840_v29, %v2840_v29  ;;  %v310_v57 = vmul.f32 %v2881_v51, %v2881_v51 }
 0x310   :  { %650 = vadd.xlane.f32.xlu1 %v649_v49  ;;  %v338_v10 = vsel %vm222_vm1, %v310_v57, 0.0  ;;  %v1235_v57 = vmul.f32 0.0625, %v2770_v6 }
 0x314   :  { %1617 = vadd.xlane.f32.xlu1 %v1616_v31  ;;  %v1259_v31 = vmul.f32 %v2832_v19, %v2832_v19 }
 0x318   :  { %1611 = vadd.xlane.f32.xlu1 %v1610_v7 }
 0x31c   :  { %668 = vadd.xlane.f32.xlu1 %v667_v32  ;;  %v329_v32 = vsel %vm222_vm1, %v307_v53, 0.0  ;;  %v1278_v53 = vsel %vm222_vm1, %v1258_v2, 0.0 }
 0x338   :  { %v2817_v27 = vpop.xlane.xlu1 %1213 }
 0x33c   :  { %v2822_v26 = vpop.xlane.xlu1 %269 }
 0x340   :  { %v601_v33 = vpop.permute.xlu1 %600 }
 0x341   :  { %v661_v41 = vsel %vm222_vm1, %v601_v33, 0.0  ;;  %v1281_v33 = vsel %vm222_vm1, %v1259_v31, 0.0  ;;  %v1257_v31 = vmul.f32 %v2860_v43, %v2860_v43 }
 0x342   :  { %662 = vadd.xlane.f32.xlu1 %v661_v41  ;;  %v2867_v41 = vsub.f32 %v2500_v24, %v1224_v11  ;;  %v277_v11 = vmul.f32 0.0625, %v2752_v30  ;;  %v1229_v30 = vmul.f32 0.0625, %v2745_v16  ;;  %v1262_v16 = vmul.f32 %v2897_v18, %v2897_v18 }
 0x343   :  { %v1275_v2 = vsel %vm222_vm1, %v1257_v31, 0.0  ;;  %v1228_v31 = vmul.f32 0.0625, %v2737_v1  ;;  %v282_v1 = vmul.f32 0.0625, %v2755_v40 }
 0x344   :  { %v1553_v49 = vpop.permute.xlu1 %1552 }
 0x345   :  { %v1613_v7 = vsel %vm222_vm1, %v1553_v49, 0.0  ;;  %v1231_v49 = vmul.f32 0.0625, %v2740_v22  ;;  %v1256_v22 = vmul.f32 %v2867_v41, %v2867_v41  ;;  %v2939_v40 = vsub.f32 %v2586_v3, %v282_v1 }
 0x346   :  { %1614 = vadd.xlane.f32.xlu0 %v1613_v7  ;;  %330 = vadd.xlane.f32.xlu1 %v329_v32  ;;  %v320_v7 = vsel %vm222_vm1, %v304_v12, 0.0  ;;  %v341_v12 = vsel %vm222_vm1, %v311_v58, 0.0  ;;  %v2925_v58 = vsub.f32 %v2560_v54, %v1228_v31  ;;  %v1234_v31 = vmul.f32 0.0625, %v2758_v15 }
 0x347   :  { %v2888_v32 = vsub.f32 %v2569_v60, %v1231_v49  ;;  %v1272_v59 = vsel %vm222_vm1, %v1256_v22, 0.0  ;;  %v283_v22 = vmul.f32 0.0625, %v2782_v44  ;;  %4111 = vst [vmem:[#allocation19_spill] sm:$0xff] %v2939_v40 }
 0x348   :  { %4109 = vst [vmem:[#allocation17_spill] sm:$0xff] %v2925_v58  ;;  %v1260_v6 = vmul.f32 %v2925_v58, %v2925_v58  ;;  %v2955_v15 = vsub.f32 %v2591_v4, %v1234_v31  ;;  %v4115_v31 = vld [vmem:[#allocation2_spill] sm:$0xff] }
 0x349   :  { %v1263_v49 = vmul.f32 %v2888_v32, %v2888_v32  ;;  %v2933_v44 = vsub.f32 %v2638_v28, %v283_v22  ;;  %v281_v22 = vmul.f32 0.0625, %v2801_v20  ;;  %v1233_v20 = vmul.f32 0.0625, %v2776_v0 }
 0x34a   :  { %327 = vadd.xlane.f32.xlu0 %v326_v9  ;;  %1282 = vadd.xlane.f32.xlu1 %v1281_v33  ;;  %v2891_v9 = vpop.xlane.xlu0 %260  ;;  %v276_v33 = vmul.f32 0.0625, %v2734_v62  ;;  %4113 = vst [vmem:[#allocation21_spill] sm:$0xff] %v2955_v15  ;;  %v1266_v0 = vmul.f32 %v2955_v15, %v2955_v15 }
 0x34b   :  { %4110 = vst [vmem:[#allocation18_spill] sm:$0xff] %v2933_v44 }
 0x34c   :  { %v2911_v62 = vsub.f32 %v2555_v52, %v276_v33  ;;  %v1290_v33 = vsel %vm222_vm1, %v1262_v16, 0.0  ;;  %v2946_v16 = vsub.f32 %v2630_v25, %v1235_v57  ;;  %v314_v57 = vmul.f32 %v2939_v40, %v2939_v40  ;;  %v4118_v40 = vld [vmem:[#allocation4_spill] sm:$0xff] }
 0x34d   :  { %v1302_v15 = vsel %vm222_vm1, %v1266_v0, 0.0 }
 0x34e   :  { %1279 = vadd.xlane.f32.xlu0 %v1278_v53  ;;  %324 = vadd.xlane.f32.xlu1 %v323_v48  ;;  %v2905_v53 = vsub.f32 %v2603_v8, %v277_v11  ;;  %v1223_v48 = vpop.xlane.xlu0 %1222  ;;  %4107 = vst [vmem:[#allocation15_spill] sm:$0xff] %v2911_v62  ;;  %v1293_v11 = vsel %vm222_vm1, %v1263_v49, 0.0  ;;  %4112 = vst [vmem:[#allocation20_spill] sm:$0xff] %v2946_v16  ;;  %v350_v58 = vsel %vm222_vm1, %v314_v57, 0.0  ;;  %v286_v57 = vmul.f32 0.0625, %v2788_v21 }
 0x34f   :  { %v1238_v21 = vmul.f32 0.0625, %v2805_v47 }
 0x350   :  { %4106 = vst [vmem:[#allocation14_spill] sm:$0xff] %v2905_v53 }
 0x352   :  { %321 = vadd.xlane.f32.xlu0 %v320_v7  ;;  %1276 = vadd.xlane.f32.xlu1 %v1275_v2  ;;  %v2918_v7 = vsub.f32 %v2572_v61, %v1229_v30  ;;  %v309_v2 = vmul.f32 %v2905_v53, %v2905_v53  ;;  %v1217_v30 = vpop.xlane.xlu0 %1216 }
 0x354   :  { %4108 = vst [vmem:[#allocation16_spill] sm:$0xff] %v2918_v7  ;;  %v1261_v49 = vmul.f32 %v2918_v7, %v2918_v7 }
 0x356   :  { %1273 = vadd.xlane.f32.xlu0 %v1272_v59  ;;  %342 = vadd.xlane.f32.xlu1 %v341_v12  ;;  %v308_v59 = vmul.f32 %v2911_v62, %v2911_v62  ;;  %v335_v12 = vsel %vm222_vm1, %v309_v2, 0.0  ;;  %v315_v2 = vmul.f32 %v2933_v44, %v2933_v44  ;;  %v2952_v1 = vpop.xlane.xlu0 %629  ;;  %v4122_v62 = vld [vmem:[#allocation11_spill] sm:$0xff] }
 0x35a   :  { %339 = vadd.xlane.f32.xlu0 %v338_v10  ;;  %1294 = vadd.xlane.f32.xlu1 %v1293_v11  ;;  %v332_v10 = vsel %vm222_vm1, %v308_v59, 0.0  ;;  %v1287_v11 = vsel %vm222_vm1, %v1261_v49, 0.0  ;;  %v1284_v59 = vsel %vm222_vm1, %v1260_v6, 0.0  ;;  %v353_v49 = vsel %vm222_vm1, %v315_v2, 0.0  ;;  %v2978_v44 = vpop.xlane.xlu0 %1581 }
 0x35b   :  { %v287_v2 = vmul.f32 0.0625, %v2822_v26 }
 0x35d   :  { %v2992_v26 = vsub.f32 %v4122_v62, %v287_v2 }
 0x35e   :  { %1291 = vadd.xlane.f32.xlu0 %v1290_v33  ;;  %336 = vadd.xlane.f32.xlu1 %v335_v12  ;;  %v280_v33 = vmul.f32 0.0625, %v2767_v55  ;;  %v2963_v12 = vsub.f32 %v2663_v36, %v281_v22  ;;  %v4117_v55 = vld [vmem:[#allocation12_spill] sm:$0xff]  ;;  %v2976_v22 = vsub.f32 %v4118_v40, %v1233_v20 }
 0x35f   :  { %v1232_v6 = vmul.f32 0.0625, %v4117_v55 }
 0x360   :  { %4114 = vst [vmem:[#allocation22_spill] sm:$0xff] %v2963_v12  ;;  %4119 = vst [vmem:[#allocation12_spill] sm:$0xff] %v2976_v22 }
 0x362   :  { %333 = vadd.xlane.f32.xlu0 %v332_v10  ;;  %1288 = vadd.xlane.f32.xlu1 %v1287_v11  ;;  %v1267_v10 = vmul.f32 %v2946_v16, %v2946_v16  ;;  %v2969_v11 = vsub.f32 %v4115_v31, %v280_v33  ;;  %v313_v33 = vmul.f32 %v2963_v12, %v2963_v12  ;;  %v1239_v16 = vmul.f32 0.0625, %v1223_v48  ;;  %v4126_v48 = vld [vmem:[#allocation9_spill] sm:$0xff] }
 0x364   :  { %4116 = vst [vmem:[#allocation2_spill] sm:$0xff] %v2969_v11  ;;  %v312_v20 = vmul.f32 %v2969_v11, %v2969_v11  ;;  %v3004_v11 = vsub.f32 %v4126_v48, %v1239_v16  ;;  %v284_v16 = vmul.f32 0.0625, %v2891_v9  ;;  %v4131_v9 = vld [vmem:[#allocation7_spill] sm:$0xff] }
 0x366   :  { %1285 = vadd.xlane.f32.xlu0 %v1284_v59  ;;  %354 = vadd.xlane.f32.xlu1 %v353_v49  ;;  %v1305_v59 = vsel %vm222_vm1, %v1267_v10, 0.0  ;;  %v4120_v49 = vld [vmem:[#allocation3_spill] sm:$0xff]  ;;  %v347_v10 = vsel %vm222_vm1, %v313_v33, 0.0  ;;  %v344_v2 = vsel %vm222_vm1, %v312_v20, 0.0 }
 0x367   :  { %v2985_v55 = vsub.f32 %v4120_v49, %v1232_v6  ;;  %4123 = vst [vmem:[#allocation3_spill] sm:$0xff] %v2992_v26  ;;  %v624_v6 = vpop.xlane.xlu0 %623 }
 0x369   :  { %4121 = vst [vmem:[#allocation4_spill] sm:$0xff] %v2985_v55  ;;  %v1264_v0 = vmul.f32 %v2985_v55, %v2985_v55 }
 0x36a   :  { %351 = vadd.xlane.f32.xlu0 %v350_v58  ;;  %1306 = vadd.xlane.f32.xlu1 %v1305_v59  ;;  %v1265_v58 = vmul.f32 %v2976_v22, %v2976_v22  ;;  %v4124_v59 = vld [vmem:[#allocation5_spill] sm:$0xff]  ;;  %v1237_v22 = vmul.f32 0.0625, %v1217_v30  ;;  %v3027_v30 = vsub.f32 %v4131_v9, %v284_v16 }
 0x36b   :  { %v2998_v12 = vsub.f32 %v4124_v59, %v286_v57  ;;  %4127 = vst [vmem:[#allocation5_spill] sm:$0xff] %v3004_v11  ;;  %v1296_v47 = vsel %vm222_vm1, %v1264_v0, 0.0  ;;  %v633_v7 = vpop.xlane.xlu0 %632 }
 0x36c   :  { %v1299_v33 = vsel %vm222_vm1, %v1265_v58, 0.0  ;;  %4132 = vst [vmem:[#allocation7_spill] sm:$0xff] %v3027_v30 }
 0x36d   :  { %4125 = vst [vmem:[#allocation11_spill] sm:$0xff] %v2998_v12  ;;  %v318_v55 = vmul.f32 %v2998_v12, %v2998_v12  ;;  %v4133_v12 = vld [vmem:[#allocation10_spill] sm:$0xff] }
 0x36e   :  { %1303 = vadd.xlane.f32.xlu0 %v1302_v15  ;;  %348 = vadd.xlane.f32.xlu1 %v347_v10  ;;  %v319_v15 = vmul.f32 %v2992_v26, %v2992_v26  ;;  %v4128_v10 = vld [vmem:[#allocation6_spill] sm:$0xff]  ;;  %v1271_v26 = vmul.f32 %v3004_v11, %v3004_v11  ;;  %v3030_v18 = vsub.f32 %v4133_v12, %v1237_v22 }
 0x36f   :  { %v3011_v57 = vsub.f32 %v4128_v10, %v1238_v21  ;;  %v362_v0 = vsel %vm222_vm1, %v318_v55, 0.0  ;;  %v316_v22 = vmul.f32 %v3027_v30, %v3027_v30 }
 0x370   :  { %v365_v58 = vsel %vm222_vm1, %v319_v15, 0.0  ;;  %4134 = vst [vmem:[#allocation10_spill] sm:$0xff] %v3030_v18  ;;  %v1236_v15 = vmul.f32 0.0625, %v2817_v27  ;;  %v1269_v27 = vmul.f32 %v3030_v18, %v3030_v18  ;;  %v672_v18 = vmul.f32 0.0625, %v2952_v1 }
 0x371   :  { %4129 = vst [vmem:[#allocation9_spill] sm:$0xff] %v3011_v57 }
 0x372   :  { %345 = vadd.xlane.f32.xlu0 %v344_v2  ;;  %1300 = vadd.xlane.f32.xlu1 %v1299_v33  ;;  %v1270_v33 = vmul.f32 %v3011_v57, %v3011_v57 }
 0x374   :  { %v1314_v16 = vsel %vm222_vm1, %v1270_v33, 0.0 }
 0x375   :  { %v264_v20 = vpop.xlane.xlu1 %263 }
 0x376   :  { %v285_v2 = vmul.f32 0.0625, %v264_v20  ;;  %1297 = vadd.xlane.f32.xlu0 %v1296_v47  ;;  %366 = vadd.xlane.f32.xlu1 %v365_v58  ;;  %v1317_v20 = vsel %vm222_vm1, %v1271_v26, 0.0  ;;  %v1585_v58 = vpop.xlane.xlu0 %1584 }
 0x378   :  { %v3021_v21 = vsub.f32 %v2774_v38, %v285_v2  ;;  %v4135_v2 = vld [vmem:[#allocation8_spill] sm:$0xff] }
 0x379   :  { %v3038_v57 = vsub.f32 %v4135_v2, %v1236_v15  ;;  %v1576_v26 = vpop.xlane.xlu1 %1575 }
 0x37a   :  { %4130 = vst [vmem:[#allocation6_spill] sm:$0xff] %v3021_v21  ;;  %363 = vadd.xlane.f32.xlu0 %v362_v0  ;;  %1318 = vadd.xlane.f32.xlu1 %v1317_v20  ;;  %v317_v47 = vmul.f32 %v3021_v21, %v3021_v21  ;;  %v1579_v0 = vpop.xlane.xlu0 %1578  ;;  %v356_v20 = vsel %vm222_vm1, %v316_v22, 0.0  ;;  %v1311_v21 = vsel %vm222_vm1, %v1269_v27, 0.0 }
 0x37b   :  { %4136 = vst [vmem:[#allocation8_spill] sm:$0xff] %v3038_v57  ;;  %v1268_v15 = vmul.f32 %v3038_v57, %v3038_v57  ;;  %v1623_v53 = vmul.f32 0.0625, %v1579_v0 }
 0x37c   :  { %v359_v55 = vsel %vm222_vm1, %v317_v47, 0.0 }
 0x37d   :  { %v627_v33 = vpop.xlane.xlu1 %626  ;;  %v1308_v47 = vsel %vm222_vm1, %v1268_v15, 0.0  ;;  %v670_v15 = vmul.f32 0.0625, %v624_v6  ;;  %v1625_v6 = vmul.f32 0.0625, %v1585_v58 }
 0x37e   :  { %1315 = vadd.xlane.f32.xlu0 %v1314_v16  ;;  %360 = vadd.xlane.f32.xlu1 %v359_v55  ;;  %v642_v30 = vpop.xlane.xlu0 %641  ;;  %v3052_v55 = vsub.f32 %v2485_v14, %v672_v18  ;;  %v1624_v16 = vmul.f32 0.0625, %v2978_v44  ;;  %v673_v14 = vmul.f32 0.0625, %v633_v7 }
 0x37f   :  { %v3067_v44 = vsub.f32 %v2495_v23, %v670_v15  ;;  %v676_v23 = vmul.f32 0.0625, %v642_v30  ;;  %v3085_v58 = vsub.f32 %v2509_v34, %v1625_v6 }
 0x380   :  { %4137 = vst [vmem:[#allocation23_spill] sm:$0xff] %v3052_v55  ;;  %v704_v57 = vmul.f32 %v3052_v55, %v3052_v55 }
 0x381   :  { %v1594_v11 = vpop.xlane.xlu1 %1593  ;;  %4140 = vst [vmem:[#allocation26_spill] sm:$0xff] %v3067_v44  ;;  %v702_v7 = vmul.f32 %v3067_v44, %v3067_v44  ;;  %4143 = vst [vmem:[#allocation29_spill] sm:$0xff] %v3085_v58  ;;  %v3090_v15 = vsub.f32 %v2535_v45, %v676_v23  ;;  %v1657_v30 = vmul.f32 %v3085_v58, %v3085_v58 }
 0x382   :  { %357 = vadd.xlane.f32.xlu0 %v356_v20  ;;  %1312 = vadd.xlane.f32.xlu1 %v1311_v21  ;;  %v636_v22 = vpop.xlane.xlu0 %635  ;;  %v3058_v21 = vsub.f32 %v2488_v17, %v1624_v16  ;;  %v1622_v20 = vmul.f32 0.0625, %v1576_v26  ;;  %v3071_v17 = vsub.f32 %v2528_v42, %v673_v14  ;;  %v671_v16 = vmul.f32 0.0625, %v627_v33 }
 0x383   :  { %4144 = vst [vmem:[#allocation30_spill] sm:$0xff] %v3090_v15  ;;  %v1628_v34 = vmul.f32 0.0625, %v1594_v11  ;;  %v708_v33 = vmul.f32 %v3090_v15, %v3090_v15 }
 0x384   :  { %4138 = vst [vmem:[#allocation24_spill] sm:$0xff] %v3058_v21  ;;  %v1656_v1 = vmul.f32 %v3058_v21, %v3058_v21  ;;  %v3064_v18 = vsub.f32 %v2500_v24, %v1622_v20  ;;  %4141 = vst [vmem:[#allocation27_spill] sm:$0xff] %v3071_v17  ;;  %v3078_v24 = vsub.f32 %v2521_v39, %v1623_v53  ;;  %v674_v39 = vmul.f32 0.0625, %v636_v22 }
 0x385   :  { %v1588_v27 = vpop.xlane.xlu1 %1587  ;;  %v705_v42 = vmul.f32 %v3071_v17, %v3071_v17 }
 0x386   :  { %1309 = vadd.xlane.f32.xlu0 %v1308_v47  ;;  %v1597_v47 = vpop.xlane.xlu0 %1596  ;;  %4139 = vst [vmem:[#allocation25_spill] sm:$0xff] %v3064_v18  ;;  %4142 = vst [vmem:[#allocation28_spill] sm:$0xff] %v3078_v24  ;;  %v1655_v20 = vmul.f32 %v3078_v24, %v3078_v24  ;;  %v3102_v14 = vsub.f32 %v2555_v52, %v674_v39  ;;  %v1626_v11 = vmul.f32 0.0625, %v1588_v27 }
 0x387   :  { %v1629_v45 = vmul.f32 0.0625, %v1597_v47 }
 0x388   :  { %4146 = vst [vmem:[#allocation32_spill] sm:$0xff] %v3102_v14 }
 0x389   :  { %v645_v55 = vpop.xlane.xlu1 %644  ;;  %v3114_v52 = vsub.f32 %v2569_v60, %v1629_v45 }
 0x38a   :  { %v1591_v26 = vpop.xlane.xlu0 %1590 }
 0x38b   :  { %4148 = vst [vmem:[#allocation34_spill] sm:$0xff] %v3114_v52  ;;  %v1627_v47 = vmul.f32 0.0625, %v1591_v26  ;;  %v1661_v27 = vmul.f32 %v3114_v52, %v3114_v52 }
 0x38d   :  { %v639_v0 = vpop.xlane.xlu1 %638 }
 0x38e   :  { %v654_v53 = vpop.xlane.xlu0 %653 }
 0x38f   :  { %v680_v60 = vmul.f32 0.0625, %v654_v53 }
 0x391   :  { %v1606_v22 = vpop.xlane.xlu1 %1605 }
 0x392   :  { %v648_v6 = vpop.xlane.xlu0 %647 }
 0x393   :  { %738 = vrot.lane.b32.xlu1 %v704_v57, %s2396_s0  ;;  %v1654_v57 = vmul.f32 %v3064_v18, %v3064_v18 }
 0x395   :  { %v1600_v23 = vpop.xlane.xlu1 %1599 }
 0x396   :  { %v1609_v26 = vpop.xlane.xlu0 %1608 }
 0x397   :  { %1690 = vrot.lane.b32.xlu1 %v1656_v1, %s2396_s0  ;;  %v3097_v1 = vsub.f32 %v2516_v37, %v671_v16  ;;  %v3109_v37 = vsub.f32 %v2540_v46, %v1628_v34  ;;  %v3121_v16 = vsub.f32 %v2560_v54, %v1626_v11  ;;  %v677_v46 = vmul.f32 0.0625, %v645_v55 }
 0x398   :  { %v675_v54 = vmul.f32 0.0625, %v639_v0  ;;  %v3138_v34 = vsub.f32 %v2586_v3, %v680_v60  ;;  %v1632_v0 = vmul.f32 0.0625, %v1606_v22  ;;  %v1630_v22 = vmul.f32 0.0625, %v1600_v23 }
 0x399   :  { %4145 = vst [vmem:[#allocation31_spill] sm:$0xff] %v3097_v1  ;;  %4147 = vst [vmem:[#allocation33_spill] sm:$0xff] %v3109_v37  ;;  %v1658_v39 = vmul.f32 %v3121_v16, %v3121_v16  ;;  %v657_v53 = vpop.xlane.xlu1 %656 }
 0x39a   :  { %4149 = vst [vmem:[#allocation35_spill] sm:$0xff] %v3121_v16  ;;  %4152 = vst [vmem:[#allocation38_spill] sm:$0xff] %v3138_v34  ;;  %v3169_v60 = vsub.f32 %v4120_v49, %v1630_v22 }
 0x39b   :  { %1686 = vrot.lane.b32.xlu1 %v1654_v57, %s2396_s0  ;;  %v703_v57 = vmul.f32 %v3097_v1, %v3097_v1 }
 0x39c   :  { %734 = vrot.lane.b32.xlu0 %v702_v7, %s2396_s0  ;;  %v706_v7 = vmul.f32 %v3102_v14, %v3102_v14  ;;  %4157 = vst [vmem:[#allocation43_spill] sm:$0xff] %v3169_v60 }
 0x39d   :  { %v651_v11 = vpop.xlane.xlu1 %650 }
 0x39f   :  { %740 = vrot.lane.b32.xlu1 %v705_v42, %s2396_s0  ;;  %v1660_v42 = vmul.f32 %v3109_v37, %v3109_v37 }
 0x3a0   :  { %1688 = vrot.lane.b32.xlu0 %v1655_v20, %s2396_s0  ;;  %v3126_v20 = vsub.f32 %v2572_v61, %v1627_v47  ;;  %v678_v61 = vmul.f32 0.0625, %v648_v6  ;;  %v1633_v6 = vmul.f32 0.0625, %v1609_v26 }
 0x3a2   :  { %4150 = vst [vmem:[#allocation36_spill] sm:$0xff] %v3126_v20  ;;  %v1659_v55 = vmul.f32 %v3126_v20, %v3126_v20  ;;  %v3150_v3 = vsub.f32 %v4115_v31, %v678_v61  ;;  %v3162_v31 = vsub.f32 %v2630_v25, %v1633_v6  ;;  %v679_v61 = vmul.f32 0.0625, %v651_v11 }
 0x3a3   :  { %1692 = vrot.lane.b32.xlu1 %v1657_v30, %s2396_s0  ;;  %v3133_v30 = vsub.f32 %v2577_v63, %v677_v46  ;;  %v3145_v63 = vsub.f32 %v2603_v8, %v675_v54  ;;  %v3157_v8 = vsub.f32 %v2591_v4, %v1632_v0  ;;  %v681_v4 = vmul.f32 0.0625, %v657_v53 }
 0x3a4   :  { %746 = vrot.lane.b32.xlu0 %v708_v33, %s2396_s0  ;;  %v1603_v33 = vpop.xlane.xlu0 %1602  ;;  %4154 = vst [vmem:[#allocation40_spill] sm:$0xff] %v3150_v3  ;;  %4156 = vst [vmem:[#allocation42_spill] sm:$0xff] %v3162_v31  ;;  %v1665_v23 = vmul.f32 %v3162_v31, %v3162_v31 }
 0x3a5   :  { %4151 = vst [vmem:[#allocation37_spill] sm:$0xff] %v3133_v30  ;;  %v709_v45 = vmul.f32 %v3133_v30, %v3133_v30  ;;  %4153 = vst [vmem:[#allocation39_spill] sm:$0xff] %v3145_v63  ;;  %v707_v47 = vmul.f32 %v3145_v63, %v3145_v63  ;;  %v1631_v46 = vmul.f32 0.0625, %v1603_v33  ;;  %v3181_v49 = vsub.f32 %v2638_v28, %v681_v4 }
 0x3a6   :  { %4155 = vst [vmem:[#allocation41_spill] sm:$0xff] %v3157_v8  ;;  %v3193_v28 = vsub.f32 %v2663_v36, %v679_v61 }
 0x3a7   :  { %736 = vrot.lane.b32.xlu1 %v703_v57, %s2396_s0  ;;  %v712_v57 = vmul.f32 %v3138_v34, %v3138_v34  ;;  %v3174_v26 = vsub.f32 %v4118_v40, %v1631_v46  ;;  %4159 = vst [vmem:[#allocation45_spill] sm:$0xff] %v3181_v49 }
 0x3a8   :  { %742 = vrot.lane.b32.xlu0 %v706_v7, %s2396_s0  ;;  %v666_v7 = vpop.xlane.xlu0 %665  ;;  %4161 = vst [vmem:[#allocation47_spill] sm:$0xff] %v3193_v28 }
 0x3a9   :  { %4158 = vst [vmem:[#allocation44_spill] sm:$0xff] %v3174_v26  ;;  %v684_v25 = vmul.f32 0.0625, %v666_v7  ;;  %v1663_v53 = vmul.f32 %v3174_v26, %v3174_v26 }
 0x3ab   :  { %1698 = vrot.lane.b32.xlu1 %v1660_v42, %s2396_s0  ;;  %v710_v42 = vmul.f32 %v3150_v3, %v3150_v3  ;;  %v3186_v40 = vsub.f32 %v4124_v59, %v684_v25 }
 0x3ac   :  { %1700 = vrot.lane.b32.xlu0 %v1661_v27, %s2396_s0  ;;  %v1664_v27 = vmul.f32 %v3157_v8, %v3157_v8  ;;  %v660_v54 = vpop.xlane.xlu0 %659 }
 0x3ad   :  { %4160 = vst [vmem:[#allocation46_spill] sm:$0xff] %v3186_v40  ;;  %v682_v33 = vmul.f32 0.0625, %v660_v54  ;;  %v716_v11 = vmul.f32 %v3186_v40, %v3186_v40 }
 0x3af   :  { %1694 = vrot.lane.b32.xlu1 %v1658_v39, %s2396_s0  ;;  %v1618_v39 = vpop.xlane.xlu1 %1617  ;;  %v3198_v59 = vsub.f32 %v4131_v9, %v682_v33 }
 0x3b0   :  { %1696 = vrot.lane.b32.xlu0 %v1659_v55, %s2396_s0  ;;  %v1662_v55 = vmul.f32 %v3169_v60, %v3169_v60  ;;  %v1636_v6 = vmul.f32 0.0625, %v1618_v39 }
 0x3b1   :  { %4162 = vst [vmem:[#allocation48_spill] sm:$0xff] %v3198_v59 }
 0x3b2   :  { %v3205_v22 = vsub.f32 %v4128_v10, %v1636_v6 }
 0x3b3   :  { %748 = vrot.lane.b32.xlu1 %v709_v45, %s2396_s0  ;;  %v1621_v45 = vpop.xlane.xlu0 %1620  ;;  %v1612_v0 = vpop.xlane.xlu1 %1611 }
 0x3b4   :  { %754 = vrot.lane.b32.xlu0 %v712_v57, %s2396_s0  ;;  %v713_v57 = vmul.f32 %v3181_v49, %v3181_v49  ;;  %v1637_v7 = vmul.f32 0.0625, %v1621_v45  ;;  %4163 = vst [vmem:[#allocation49_spill] sm:$0xff] %v3205_v22  ;;  %v1634_v36 = vmul.f32 0.0625, %v1612_v0 }
 0x3b6   :  { %v3210_v46 = vsub.f32 %v4126_v48, %v1637_v7  ;;  %v3217_v4 = vsub.f32 %v4135_v2, %v1634_v36 }
 0x3b7   :  { %744 = vrot.lane.b32.xlu1 %v707_v47, %s2396_s0  ;;  %v711_v47 = vmul.f32 %v3193_v28, %v3193_v28  ;;  %v669_v9 = vpop.xlane.xlu1 %668 }
 0x3b8   :  { %750 = vrot.lane.b32.xlu0 %v710_v42, %s2396_s0  ;;  %v714_v42 = vmul.f32 %v3198_v59, %v3198_v59  ;;  %4164 = vst [vmem:[#allocation50_spill] sm:$0xff] %v3210_v46  ;;  %4165 = vst [vmem:[#allocation51_spill] sm:$0xff] %v3217_v4  ;;  %v685_v10 = vmul.f32 0.0625, %v669_v9  ;;  %v1666_v48 = vmul.f32 %v3217_v4, %v3217_v4 }
 0x3ba   :  { %v3226_v25 = vsub.f32 %v4122_v62, %v685_v10 }
 0x3bb   :  { %1706 = vrot.lane.b32.xlu1 %v1664_v27, %s2396_s0  ;;  %v1668_v27 = vmul.f32 %v3205_v22, %v3205_v22 }
 0x3bc   :  { %1708 = vrot.lane.b32.xlu0 %v1665_v23, %s2396_s0  ;;  %v1669_v23 = vmul.f32 %v3210_v46, %v3210_v46  ;;  %4166 = vst [vmem:[#allocation52_spill] sm:$0xff] %v3226_v25  ;;  %v717_v2 = vmul.f32 %v3226_v25, %v3226_v25 }
 0x3bf   :  { %1702 = vrot.lane.b32.xlu1 %v1662_v55, %s2396_s0 }
 0x3c0   :  { %1704 = vrot.lane.b32.xlu0 %v1663_v53, %s2396_s0 }
 0x3c3   :  { %756 = vrot.lane.b32.xlu1 %v713_v57, %s2396_s0 }
 0x3c4   :  { %762 = vrot.lane.b32.xlu0 %v716_v11, %s2396_s0 }
 0x3c7   :  { %752 = vrot.lane.b32.xlu1 %v711_v47, %s2396_s0 }
 0x3c8   :  { %758 = vrot.lane.b32.xlu0 %v714_v42, %s2396_s0 }
 0x3cb   :  { %1714 = vrot.lane.b32.xlu1 %v1668_v27, %s2396_s0 }
 0x3cc   :  { %1716 = vrot.lane.b32.xlu0 %v1669_v23, %s2396_s0 }
 0x3cf   :  { %v663_v39 = vpop.xlane.xlu1 %662  ;;  %1710 = vrot.lane.b32.xlu1 %v1666_v48, %s2396_s0 }
 0x3d0   :  { %v683_v54 = vmul.f32 0.0625, %v663_v39 }
 0x3d2   :  { %v3232_v55 = vsub.f32 %v2774_v38, %v683_v54 }
 0x3d3   :  { %v3234_v61 = vpop.xlane.xlu1 %330  ;;  %764 = vrot.lane.b32.xlu1 %v717_v2, %s2396_s0  ;;  %v1615_v53 = vpop.xlane.xlu0 %1614 }
 0x3d4   :  { %4167 = vst [vmem:[#allocation53_spill] sm:$0xff] %v3232_v55  ;;  %v715_v33 = vmul.f32 %v3232_v55, %v3232_v55  ;;  %v1635_v62 = vmul.f32 0.0625, %v1615_v53 }
 0x3d6   :  { %v3240_v45 = vsub.f32 %v4133_v12, %v1635_v62 }
 0x3d7   :  { %v3242_v0 = vpop.xlane.xlu1 %1282  ;;  %760 = vrot.lane.b32.xlu1 %v715_v33, %s2396_s0  ;;  %v3245_v57 = vpop.xlane.xlu0 %327 }
 0x3d8   :  { %4168 = vst [vmem:[#allocation54_spill] sm:$0xff] %v3240_v45  ;;  %v1667_v38 = vmul.f32 %v3240_v45, %v3240_v45 }
 0x3da   :  { %1712 = vrot.lane.b32.xlu0 %v1667_v38, %s2396_s0 }
 0x3db   :  { %v3250_v6 = vpop.xlane.xlu1 %324  ;;  %v3252_v11 = vpop.xlane.xlu0 %1279 }
 0x3df   :  { %v3254_v7 = vpop.xlane.xlu1 %1276  ;;  %v3256_v47 = vpop.xlane.xlu0 %321 }
 0x3e3   :  { %v3258_v12 = vpop.xlane.xlu1 %342  ;;  %v3260_v36 = vpop.xlane.xlu0 %1273 }
 0x3e7   :  { %v3262_v42 = vpop.xlane.xlu1 %1294  ;;  %v3264_v9 = vpop.xlane.xlu0 %339 }
 0x3eb   :  { %v3266_v27 = vpop.xlane.xlu1 %336  ;;  %v3268_v10 = vpop.xlane.xlu0 %1291 }
 0x3ef   :  { %v3270_v23 = vpop.xlane.xlu1 %1288  ;;  %v3272_v48 = vpop.xlane.xlu0 %333 }
 0x3f3   :  { %v3274_v39 = vpop.xlane.xlu1 %354  ;;  %v3276_v54 = vpop.xlane.xlu0 %1285 }
 0x3f7   :  { %v3278_v2 = vpop.xlane.xlu1 %1306  ;;  %v3280_v53 = vpop.xlane.xlu0 %351 }
 0x3fb   :  { %v3282_v33 = vpop.xlane.xlu1 %348  ;;  %v3284_v62 = vpop.xlane.xlu0 %1303 }
 0x3ff   :  { %v3286_v38 = vpop.xlane.xlu1 %1300  ;;  %v3288_v46 = vpop.xlane.xlu0 %345 }
 0x403   :  { %v3290_v45 = vpop.xlane.xlu1 %366  ;;  %v3292_v22 = vpop.xlane.xlu0 %1297 }
 0x407   :  { %v3294_v55 = vpop.xlane.xlu1 %1318  ;;  %v3296_v4 = vpop.xlane.xlu0 %363 }
 0x40b   :  { %v3298_v25 = vpop.xlane.xlu1 %360  ;;  %v3300_v59 = vpop.xlane.xlu0 %1315 }
 0x40f   :  { %v3302_v40 = vpop.xlane.xlu1 %1312  ;;  %v3304_v26 = vpop.xlane.xlu0 %357 }
 0x413   :  { %v739_v28 = vpop.permute.xlu1 %738  ;;  %v3306_v31 = vpop.xlane.xlu0 %1309 }
 0x414   :  { %v788_v16 = vsel %vm222_vm1, %v739_v28, 0.0 }
 0x415   :  { %789 = vadd.xlane.f32.xlu0 %v788_v16 }
 0x417   :  { %v1691_v60 = vpop.permute.xlu1 %1690  ;;  %v735_v49 = vpop.permute.xlu0 %734 }
 0x418   :  { %v1740_v37 = vsel %vm222_vm1, %v1691_v60, 0.0  ;;  %v782_v58 = vsel %vm222_vm1, %v735_v49, 0.0 }
 0x419   :  { %1741 = vadd.xlane.f32.xlu0 %v1740_v37 }
 0x41b   :  { %v1687_v3 = vpop.permute.xlu1 %1686  ;;  %v1689_v20 = vpop.permute.xlu0 %1688 }
 0x41c   :  { %v1734_v17 = vsel %vm222_vm1, %v1687_v3, 0.0 }
 0x41d   :  { %783 = vadd.xlane.f32.xlu0 %v782_v58 }
 0x41f   :  { %v741_v8 = vpop.permute.xlu1 %740  ;;  %v747_v63 = vpop.permute.xlu0 %746 }
 0x420   :  { %v791_v15 = vsel %vm222_vm1, %v741_v8, 0.0  ;;  %v800_v37 = vsel %vm222_vm1, %v747_v63, 0.0 }
 0x421   :  { %792 = vadd.xlane.f32.xlu1 %v791_v15  ;;  %1735 = vadd.xlane.f32.xlu0 %v1734_v17  ;;  %v1737_v15 = vsel %vm222_vm1, %v1689_v20, 0.0 }
 0x423   :  { %v1693_v34 = vpop.permute.xlu1 %1692  ;;  %v743_v52 = vpop.permute.xlu0 %742 }
 0x424   :  { %v1743_v18 = vsel %vm222_vm1, %v1693_v34, 0.0 }
 0x425   :  { %1744 = vadd.xlane.f32.xlu1 %v1743_v18  ;;  %801 = vadd.xlane.f32.xlu0 %v800_v37 }
 0x427   :  { %v737_v30 = vpop.permute.xlu1 %736  ;;  %v1701_v14 = vpop.permute.xlu0 %1700 }
 0x428   :  { %v785_v28 = vsel %vm222_vm1, %v737_v30, 0.0  ;;  %v794_v30 = vsel %vm222_vm1, %v743_v52, 0.0  ;;  %v1755_v49 = vsel %vm222_vm1, %v1701_v14, 0.0 }
 0x429   :  { %786 = vadd.xlane.f32.xlu1 %v785_v28 }
 0x42b   :  { %v1699_v24 = vpop.permute.xlu1 %1698  ;;  %v1697_v1 = vpop.permute.xlu0 %1696 }
 0x42c   :  { %v1752_v34 = vsel %vm222_vm1, %v1699_v24, 0.0 }
 0x42d   :  { %1738 = vadd.xlane.f32.xlu1 %v1737_v15  ;;  %1753 = vadd.xlane.f32.xlu0 %v1752_v34  ;;  %v1749_v15 = vsel %vm222_vm1, %v1697_v1, 0.0 }
 0x42f   :  { %v1695_v44 = vpop.permute.xlu1 %1694  ;;  %v755_v16 = vpop.permute.xlu0 %754 }
 0x430   :  { %v1746_v20 = vsel %vm222_vm1, %v1695_v44, 0.0 }
 0x431   :  { %795 = vadd.xlane.f32.xlu0 %v794_v30 }
 0x433   :  { %v749_v21 = vpop.permute.xlu1 %748  ;;  %v751_v60 = vpop.permute.xlu0 %750 }
 0x434   :  { %v803_v18 = vsel %vm222_vm1, %v749_v21, 0.0  ;;  %v812_v21 = vsel %vm222_vm1, %v755_v16, 0.0  ;;  %v806_v44 = vsel %vm222_vm1, %v751_v60, 0.0  ;;  %v371_v60 = vmul.f32 0.0625, %v3234_v61 }
 0x435   :  { %804 = vadd.xlane.f32.xlu1 %v803_v18  ;;  %1747 = vadd.xlane.f32.xlu0 %v1746_v20 }
 0x437   :  { %v745_v8 = vpop.permute.xlu1 %744  ;;  %v1709_v3 = vpop.permute.xlu0 %1708 }
 0x438   :  { %v797_v24 = vsel %vm222_vm1, %v745_v8, 0.0  ;;  %v1767_v30 = vsel %vm222_vm1, %v1709_v3, 0.0 }
 0x439   :  { %1756 = vadd.xlane.f32.xlu1 %v1755_v49  ;;  %813 = vadd.xlane.f32.xlu0 %v812_v21 }
 0x43b   :  { %v1707_v58 = vpop.permute.xlu1 %1706  ;;  %v1705_v28 = vpop.permute.xlu0 %1704 }
 0x43c   :  { %v1764_v52 = vsel %vm222_vm1, %v1707_v58, 0.0  ;;  %v1761_v58 = vsel %vm222_vm1, %v1705_v28, 0.0 }
 0x43d   :  { %798 = vadd.xlane.f32.xlu1 %v797_v24  ;;  %1765 = vadd.xlane.f32.xlu0 %v1764_v52  ;;  %v1323_v52 = vmul.f32 0.0625, %v3242_v0  ;;  %v1322_v0 = vmul.f32 0.0625, %v3252_v11 }
 0x43f   :  { %v1703_v17 = vpop.permute.xlu1 %1702  ;;  %v763_v34 = vpop.permute.xlu0 %762  ;;  %v1339_v61 = vadd.f32 1e-06, %v1323_v52  ;;  %v1320_v52 = vmul.f32 0.0625, %v3260_v36 }
 0x440   :  { %v1758_v1 = vsel %vm222_vm1, %v1703_v17, 0.0  ;;  %v387_v17 = vadd.f32 1e-06, %v371_v60 }
 0x441   :  { %1750 = vadd.xlane.f32.xlu1 %v1749_v15  ;;  %807 = vadd.xlane.f32.xlu0 %v806_v44  ;;  %v824_v15 = vsel %vm222_vm1, %v763_v34, 0.0 }
 0x442   :  { %2138 = vrsqrt.f32 %v387_v17 }
 0x443   :  { %v757_v63 = vpop.permute.xlu1 %756  ;;  %v759_v16 = vpop.permute.xlu0 %758  ;;  %2140 = vrsqrt.f32 %v1339_v61 }
 0x444   :  { %v815_v14 = vsel %vm222_vm1, %v757_v63, 0.0  ;;  %v818_v44 = vsel %vm222_vm1, %v759_v16, 0.0  ;;  %v1321_v16 = vmul.f32 0.0625, %v3254_v7 }
 0x445   :  { %816 = vadd.xlane.f32.xlu1 %v815_v14  ;;  %1759 = vadd.xlane.f32.xlu0 %v1758_v1  ;;  %v369_v14 = vmul.f32 0.0625, %v3250_v6  ;;  %v1338_v6 = vadd.f32 1e-06, %v1322_v0  ;;  %v373_v0 = vmul.f32 0.0625, %v3266_v27  ;;  %v1325_v27 = vmul.f32 0.0625, %v3270_v23 }
 0x447   :  { %v753_v37 = vpop.permute.xlu1 %752  ;;  %v1717_v24 = vpop.permute.xlu0 %1716  ;;  %v385_v34 = vadd.f32 1e-06, %v369_v14 }
 0x448   :  { %v809_v20 = vsel %vm222_vm1, %v753_v37, 0.0  ;;  %v370_v37 = vmul.f32 0.0625, %v3245_v57 }
 0x449   :  { %1768 = vadd.xlane.f32.xlu1 %v1767_v30  ;;  %810 = vadd.xlane.f32.xlu0 %v809_v20 }
 0x44a   :  { %v386_v1 = vadd.f32 1e-06, %v370_v37 }
 0x44b   :  { %v1715_v18 = vpop.permute.xlu1 %1714 }
 0x44c   :  { %v1713_v28 = vpop.permute.xlu0 %1712  ;;  %2142 = vrsqrt.f32 %v386_v1  ;;  %v1776_v57 = vsel %vm222_vm1, %v1715_v18, 0.0  ;;  %v2139_v20 = vpop.eup %2138  ;;  %v375_v18 = vmul.f32 0.0625, %v3258_v12  ;;  %v374_v1 = vmul.f32 0.0625, %v3264_v9 }
 0x44d   :  { %1762 = vadd.xlane.f32.xlu1 %v1761_v58  ;;  %825 = vadd.xlane.f32.xlu0 %v824_v15  ;;  %v1773_v30 = vsel %vm222_vm1, %v1713_v28, 0.0  ;;  %v1779_v58 = vsel %vm222_vm1, %v1717_v24, 0.0  ;;  %2144 = vrsqrt.f32 %v385_v34  ;;  %v2141_v11 = vpop.eup %2140  ;;  %v3351_v24 = vld [vmem:[%s4015_s3] ss:$0 sm:$0xff] }
 0x44e   :  { %2146 = vrsqrt.f32 %v1338_v6  ;;  %v1371_v17 = vmul.f32 %v2141_v11, %v2832_v19  ;;  %v391_v37 = vadd.f32 1e-06, %v375_v18  ;;  %v1327_v19 = vmul.f32 0.0625, %v3262_v42 }
 0x44f   :  { %v1711_v8 = vpop.permute.xlu1 %1710  ;;  %v390_v42 = vadd.f32 1e-06, %v374_v1  ;;  %v379_v18 = vmul.f32 0.0625, %v3274_v39  ;;  %v1331_v1 = vmul.f32 0.0625, %v3278_v2  ;;  %v377_v2 = vmul.f32 0.0625, %v3282_v33 }
 0x450   :  { %v1394_v14 = vmul.f32 %v3351_v24, %v1371_v17  ;;  %v1341_v17 = vadd.f32 1e-06, %v1325_v27 }
 0x451   :  { %819 = vadd.xlane.f32.xlu0 %v818_v44 }
 0x453   :  { %v765_v49 = vpop.permute.xlu1 %764 }
 0x454   :  { %v827_v63 = vsel %vm222_vm1, %v765_v49, 0.0  ;;  %v1770_v49 = vsel %vm222_vm1, %v1711_v8, 0.0  ;;  %v419_v8 = vmul.f32 %v2139_v20, %v2825_v35  ;;  %v3359_v35 = vld [vmem:[%s4016_s4] ss:$0 sm:$0xff] }
 0x455   :  { %828 = vadd.xlane.f32.xlu1 %v827_v63  ;;  %1771 = vadd.xlane.f32.xlu0 %v1770_v49  ;;  %v368_v63 = vmul.f32 0.0625, %v3256_v47  ;;  %v1417_v36 = vadd.f32 %v3359_v35, %v1394_v14  ;;  %v1343_v49 = vadd.f32 1e-06, %v1327_v19 }
 0x456   :  { %v442_v7 = vmul.f32 %v3351_v24, %v419_v8 }
 0x457   :  { %v761_v21 = vpop.permute.xlu1 %760  ;;  %v384_v60 = vadd.f32 1e-06, %v368_v63  ;;  %v1449_v9 = vmul.f32 0.70710677, %v1417_v36  ;;  %v1326_v63 = vmul.f32 0.0625, %v3268_v10  ;;  %v3387_v14 = vmul.f32 0.5, %v1417_v36 }
 0x458   :  { %v821_v3 = vsel %vm222_vm1, %v761_v21, 0.0  ;;  %v1337_v21 = vadd.f32 1e-06, %v1321_v16  ;;  %v465_v12 = vadd.f32 %v3359_v35, %v442_v7 }
 0x459   :  { %822 = vadd.xlane.f32.xlu1 %v821_v3  ;;  %1777 = vadd.xlane.f32.xlu0 %v1776_v57  ;;  %v2143_v3 = vpop.eup %2142  ;;  %v1342_v7 = vadd.f32 1e-06, %v1326_v63 }
 0x45a   :  { %v2145_v15 = vpop.eup %2144  ;;  %2148 = vrsqrt.f32 %v1337_v21  ;;  %v418_v47 = vmul.f32 %v2143_v3, %v2828_v5  ;;  %v497_v5 = vmul.f32 0.70710677, %v465_v12 }
 0x45b   :  { %2150 = vrsqrt.f32 %v384_v60  ;;  %v417_v28 = vmul.f32 %v2145_v15, %v2847_v56  ;;  %v2147_v44 = vpop.eup %2146  ;;  %v372_v60 = vmul.f32 0.0625, %v3272_v48  ;;  %v1324_v48 = vmul.f32 0.0625, %v3276_v54 }
 0x45c   :  { %v441_v61 = vmul.f32 %v3351_v24, %v418_v47  ;;  %2152 = vrsqrt.f32 %v391_v37  ;;  %v1370_v56 = vmul.f32 %v2147_v44, %v2840_v29  ;;  %v389_v29 = vadd.f32 1e-06, %v373_v0 }
 0x45d   :  { %1774 = vadd.xlane.f32.xlu1 %v1773_v30  ;;  %v1336_v30 = vadd.f32 1e-06, %v1320_v52  ;;  %v440_v34 = vmul.f32 %v3351_v24, %v417_v28  ;;  %v388_v47 = vadd.f32 1e-06, %v372_v60  ;;  %v481_v37 = vmul.f32 0.5, %v465_v12 }
 0x45e   :  { %v464_v57 = vadd.f32 %v3359_v35, %v441_v61  ;;  %v1393_v20 = vmul.f32 %v3351_v24, %v1370_v56  ;;  %v1340_v12 = vadd.f32 1e-06, %v1324_v48 }
 0x45f   :  { %2154 = vrsqrt.f32 %v1336_v30  ;;  %v463_v16 = vadd.f32 %v3359_v35, %v440_v34 }
 0x460   :  { %2156 = verf.f32 %v497_v5  ;;  %v496_v21 = vmul.f32 0.70710677, %v464_v57  ;;  %v1416_v15 = vadd.f32 %v3359_v35, %v1393_v20  ;;  %v3390_v61 = vmul.f32 0.5, %v464_v57 }
 0x461   :  { %1780 = vadd.xlane.f32.xlu1 %v1779_v58  ;;  %2158 = vrsqrt.f32 %v1343_v49  ;;  %v495_v3 = vmul.f32 0.70710677, %v463_v16  ;;  %v3394_v34 = vmul.f32 0.5, %v463_v16  ;;  %v378_v49 = vmul.f32 0.0625, %v3280_v53 }
 0x462   :  { %2160 = vrsqrt.f32 %v390_v42  ;;  %v1448_v28 = vmul.f32 0.70710677, %v1416_v15  ;;  %v3397_v36 = vmul.f32 0.5, %v1416_v15  ;;  %v1347_v16 = vadd.f32 1e-06, %v1331_v1  ;;  %v4169_v15 = vld [vmem:[#allocation14_spill] sm:$0xff] }
 0x463   :  { %2162 = verf.f32 %v1449_v9  ;;  %v1330_v9 = vmul.f32 0.0625, %v3284_v62  ;;  %v1329_v53 = vmul.f32 0.0625, %v3286_v38  ;;  %v393_v62 = vadd.f32 1e-06, %v377_v2  ;;  %v4171_v1 = vld [vmem:[#allocation16_spill] sm:$0xff] }
 0x464   :  { %v2149_v58 = vpop.eup %2148  ;;  %2164 = vrsqrt.f32 %v389_v29 }
 0x465   :  { %v2151_v6 = vpop.eup %2150  ;;  %v1369_v8 = vmul.f32 %v2149_v58, %v2860_v43  ;;  %2166 = verf.f32 %v496_v21  ;;  %v394_v21 = vadd.f32 1e-06, %v378_v49 }
 0x466   :  { %v416_v11 = vmul.f32 %v2151_v6, %v2853_v50  ;;  %v2153_v10 = vpop.eup %2152  ;;  %2168 = verf.f32 %v495_v3  ;;  %v395_v50 = vadd.f32 1e-06, %v379_v18  ;;  %v383_v3 = vmul.f32 0.0625, %v3290_v45 }
 0x467   :  { %v1392_v43 = vmul.f32 %v3351_v24, %v1369_v8  ;;  %v423_v39 = vmul.f32 %v2153_v10, %v2875_v13  ;;  %2170 = vrsqrt.f32 %v1342_v7  ;;  %v1346_v7 = vadd.f32 1e-06, %v1330_v9 }
 0x468   :  { %v439_v23 = vmul.f32 %v3351_v24, %v416_v11  ;;  %2172 = vrsqrt.f32 %v1341_v17  ;;  %v376_v11 = vmul.f32 0.0625, %v3288_v46  ;;  %v1345_v17 = vadd.f32 1e-06, %v1329_v53 }
 0x469   :  { %v2155_v52 = vpop.eup %2154  ;;  %v1415_v44 = vadd.f32 %v3359_v35, %v1392_v43  ;;  %2174 = vrsqrt.f32 %v388_v47  ;;  %v446_v56 = vmul.f32 %v3351_v24, %v423_v39  ;;  %v399_v39 = vadd.f32 1e-06, %v383_v3  ;;  %v4174_v3 = vld [vmem:[#allocation17_spill] sm:$0xff] }
 0x46a   :  { %v2157_v19 = vpop.eup %2156  ;;  %v462_v30 = vadd.f32 %v3359_v35, %v439_v23  ;;  %v1368_v13 = vmul.f32 %v2155_v52, %v2867_v41  ;;  %2176 = vrsqrt.f32 %v395_v50  ;;  %v392_v45 = vadd.f32 1e-06, %v376_v11  ;;  %v4170_v52 = vld [vmem:[#allocation13_spill] sm:$0xff] }
 0x46b   :  { %v2159_v54 = vpop.eup %2158  ;;  %2178 = verf.f32 %v1448_v28  ;;  %v529_v0 = vadd.f32 1.0, %v2157_v19  ;;  %v3401_v58 = vmul.f32 0.5, %v1415_v44  ;;  %v1447_v57 = vmul.f32 0.70710677, %v1415_v44 }
 0x46c   :  { %v2161_v5 = vpop.eup %2160  ;;  %v494_v6 = vmul.f32 0.70710677, %v462_v30  ;;  %v1375_v41 = vmul.f32 %v2159_v54, %v2888_v32  ;;  %v1391_v63 = vmul.f32 %v3351_v24, %v1368_v13  ;;  %2180 = vrsqrt.f32 %v1340_v12 }
 0x46d   :  { %v2163_v42 = vpop.eup %2162  ;;  %v422_v8 = vmul.f32 %v2161_v5, %v2881_v51  ;;  %v3409_v27 = vmul.f32 0.5, %v462_v30  ;;  %v469_v33 = vadd.f32 %v3359_v35, %v446_v56  ;;  %v3413_v60 = vmul.f32 %v529_v0, %v481_v37  ;;  %v4172_v5 = vld [vmem:[#allocation15_spill] sm:$0xff] }
 0x46e   :  { %v2165_v20 = vpop.eup %2164  ;;  %2182 = verf.f32 %v1447_v57  ;;  %v1398_v51 = vmul.f32 %v3351_v24, %v1375_v41  ;;  %v1414_v43 = vadd.f32 %v3359_v35, %v1391_v63  ;;  %v1328_v37 = vmul.f32 0.0625, %v3292_v22  ;;  %v4173_v57 = vld [vmem:[#allocation18_spill] sm:$0xff] }
 0x46f   :  { %v2167_v29 = vpop.eup %2166  ;;  %v421_v38 = vmul.f32 %v2165_v20, %v4169_v15  ;;  %2184 = vrsqrt.f32 %v1347_v16  ;;  %v445_v46 = vmul.f32 %v3351_v24, %v422_v8  ;;  %v3420_v47 = vmul.f32 0.5, %v469_v33 }
 0x470   :  { %v2169_v32 = vpop.eup %2168  ;;  %2186 = verf.f32 %v494_v6  ;;  %v501_v50 = vmul.f32 0.70710677, %v469_v33  ;;  %v1421_v19 = vadd.f32 %v3359_v35, %v1398_v51  ;;  %v1481_v13 = vadd.f32 1.0, %v2163_v42 }
 0x471   :  { %v2171_v18 = vpop.eup %2170  ;;  %2188 = vrsqrt.f32 %v394_v21  ;;  %v444_v30 = vmul.f32 %v3351_v24, %v421_v38  ;;  %v468_v12 = vadd.f32 %v3359_v35, %v445_v46  ;;  %v3429_v49 = vmul.f32 0.5, %v1414_v43 }
 0x472   :  { %v2173_v10 = vpop.eup %2172  ;;  %v1374_v28 = vmul.f32 %v2171_v18, %v4170_v52  ;;  %2190 = vrsqrt.f32 %v393_v62  ;;  %v1446_v0 = vmul.f32 0.70710677, %v1414_v43  ;;  %v528_v6 = vadd.f32 1.0, %v2167_v29 }
 0x473   :  { %v2175_v23 = vpop.eup %2174  ;;  %v1373_v54 = vmul.f32 %v2173_v10, %v4171_v1  ;;  %2192 = vrsqrt.f32 %v1346_v7  ;;  %v1344_v16 = vadd.f32 1e-06, %v1328_v37  ;;  %v1453_v9 = vmul.f32 0.70710677, %v1421_v19 }
 0x474   :  { %v2177_v48 = vpop.eup %2176  ;;  %v420_v56 = vmul.f32 %v2175_v23, %v4172_v5  ;;  %2194 = vrsqrt.f32 %v1345_v17  ;;  %v1397_v41 = vmul.f32 %v3351_v24, %v1374_v28  ;;  %v467_v42 = vadd.f32 %v3359_v35, %v444_v30  ;;  %v4175_v23 = vld [vmem:[#allocation20_spill] sm:$0xff] }
 0x475   :  { %v2179_v44 = vpop.eup %2178  ;;  %v427_v2 = vmul.f32 %v2177_v48, %v4173_v57  ;;  %2196 = vrsqrt.f32 %v392_v45  ;;  %v1396_v20 = vmul.f32 %v3351_v24, %v1373_v54  ;;  %v3436_v8 = vmul.f32 %v1481_v13, %v3387_v14 }
 0x476   :  { %v2181_v22 = vpop.eup %2180  ;;  %2198 = vrsqrt.f32 %v399_v39  ;;  %v527_v53 = vadd.f32 1.0, %v2169_v32  ;;  %v500_v33 = vmul.f32 0.70710677, %v468_v12  ;;  %v443_v21 = vmul.f32 %v3351_v24, %v420_v56 }
 0x477   :  { %2200 = verf.f32 %v501_v50  ;;  %v1480_v29 = vadd.f32 1.0, %v2179_v44  ;;  %v450_v62 = vmul.f32 %v3351_v24, %v427_v2  ;;  %v1372_v18 = vmul.f32 %v2181_v22, %v4174_v3  ;;  %v4178_v2 = vld [vmem:[#allocation21_spill] sm:$0xff] }
 0x478   :  { %v2183_v63 = vpop.eup %2182  ;;  %2202 = verf.f32 %v1446_v0  ;;  %v3442_v15 = vmul.f32 %v528_v6, %v3390_v61  ;;  %v3444_v38 = vmul.f32 0.5, %v1421_v19  ;;  %v3447_v14 = vadd.f32 %v3359_v35, %v1397_v41  ;;  %v4176_v19 = vld [vmem:[#allocation19_spill] sm:$0xff] }
 0x479   :  { %v2185_v11 = vpop.eup %2184  ;;  %2204 = vrsqrt.f32 %v1344_v16  ;;  %v3449_v7 = vmul.f32 0.5, %v468_v12  ;;  %v499_v10 = vmul.f32 0.70710677, %v467_v42  ;;  %v3452_v43 = vadd.f32 %v3359_v35, %v1396_v20  ;;  %v4177_v12 = vld [vmem:[#allocation22_spill] sm:$0xff] }
 0x47a   :  { %v2187_v51 = vpop.eup %2186  ;;  %2206 = verf.f32 %v1453_v9  ;;  %v3455_v17 = vmul.f32 %v527_v53, %v3394_v34  ;;  %v3458_v61 = vadd.f32 %v3359_v35, %v443_v21  ;;  %v1379_v50 = vmul.f32 %v2185_v11, %v4175_v23  ;;  %v4180_v53 = vld [vmem:[#allocation2_spill] sm:$0xff] }
 0x47b   :  { %v2189_v32 = vpop.eup %2188  ;;  %2208 = verf.f32 %v500_v33  ;;  %v3462_v48 = vmul.f32 %v1480_v29, %v3397_v36  ;;  %v1479_v52 = vadd.f32 1.0, %v2183_v63  ;;  %v3465_v28 = vadd.f32 %v3359_v35, %v450_v62  ;;  %v4181_v29 = vld [vmem:[#allocation3_spill] sm:$0xff] }
 0x47c   :  { %v2191_v46 = vpop.eup %2190  ;;  %v1395_v39 = vmul.f32 %v3351_v24, %v1372_v18  ;;  %v3468_v44 = vmul.f32 0.5, %v467_v42  ;;  %v1452_v34 = vmul.f32 0.70710677, %v3447_v14  ;;  %v426_v30 = vmul.f32 %v2189_v32, %v4176_v19  ;;  %v4179_v42 = vld [vmem:[#allocation12_spill] sm:$0xff] }
 0x47d   :  { %v2193_v45 = vpop.eup %2192  ;;  %v1335_v1 = vmul.f32 0.0625, %v3294_v55  ;;  %v526_v13 = vadd.f32 1.0, %v2187_v51  ;;  %2210 = verf.f32 %v499_v10  ;;  %v1451_v36 = vmul.f32 0.70710677, %v3452_v43  ;;  %v4182_v19 = vld [vmem:[#allocation4_spill] sm:$0xff] }
 0x47e   :  { %v2195_v37 = vpop.eup %2194  ;;  %v425_v5 = vmul.f32 %v2191_v46, %v4177_v12  ;;  %v498_v0 = vmul.f32 0.70710677, %v3458_v61  ;;  %v1402_v57 = vmul.f32 %v3351_v24, %v1379_v50  ;;  %v1378_v22 = vmul.f32 %v2193_v45, %v4178_v2 }
 0x47f   :  { %v2197_v54 = vpop.eup %2196  ;;  %v382_v6 = vmul.f32 0.0625, %v3296_v4  ;;  %v3480_v16 = vmul.f32 %v1479_v52, %v3401_v58  ;;  %v505_v55 = vmul.f32 0.70710677, %v3465_v28  ;;  %v3484_v9 = vadd.f32 %v3359_v35, %v1395_v39 }
 0x480   :  { %v2199_v56 = vpop.eup %2198  ;;  %v1377_v20 = vmul.f32 %v2195_v37, %v4179_v42  ;;  %2212 = verf.f32 %v1452_v34  ;;  %v449_v63 = vmul.f32 %v3351_v24, %v426_v30  ;;  %v424_v33 = vmul.f32 %v2197_v54, %v4180_v53 }
 0x481   :  { %v2201_v41 = vpop.eup %2200  ;;  %v1351_v21 = vadd.f32 1e-06, %v1335_v1  ;;  %2214 = verf.f32 %v1451_v36  ;;  %v448_v4 = vmul.f32 %v3351_v24, %v425_v5  ;;  %v431_v58 = vmul.f32 %v2199_v56, %v4181_v29 }
 0x482   :  { %v2203_v11 = vpop.eup %2202  ;;  %v381_v62 = vmul.f32 0.0625, %v3298_v25  ;;  %2216 = verf.f32 %v498_v0  ;;  %v3493_v18 = vadd.f32 %v3359_v35, %v1402_v57  ;;  %v1401_v51 = vmul.f32 %v3351_v24, %v1378_v22 }
 0x483   :  { %v2205_v3 = vpop.eup %2204  ;;  %v398_v32 = vadd.f32 1e-06, %v382_v6  ;;  %v533_v46 = vadd.f32 1.0, %v2201_v41  ;;  %2218 = verf.f32 %v505_v55  ;;  %v1450_v23 = vmul.f32 0.70710677, %v3484_v9 }
 0x484   :  { %v2207_v10 = vpop.eup %2206  ;;  %v1400_v50 = vmul.f32 %v3351_v24, %v1377_v20  ;;  %v3499_v52 = vmul.f32 %v526_v13, %v3409_v27  ;;  %v3502_v25 = vadd.f32 %v3359_v35, %v449_v63  ;;  %v447_v39 = vmul.f32 %v3351_v24, %v424_v33 }
 0x485   :  { %v2209_v45 = vpop.eup %2208  ;;  %2220 = vrsqrt.f32 %v1351_v21  ;;  %v3506_v37 = vadd.f32 %v3359_v35, %v448_v4  ;;  %v454_v34 = vmul.f32 %v3351_v24, %v431_v58  ;;  %v1376_v30 = vmul.f32 %v2205_v3, %v4182_v19 }
 0x486   :  { %v397_v1 = vadd.f32 1e-06, %v381_v62  ;;  %v1478_v54 = vadd.f32 1.0, %v2203_v11  ;;  %v1457_v36 = vmul.f32 0.70710677, %v3493_v18  ;;  %v3512_v27 = vadd.f32 %v3359_v35, %v1401_v51 }
 0x487   :  { %2222 = vrsqrt.f32 %v398_v32  ;;  %v2211_v13 = vpop.eup %2210  ;;  %v3515_v12 = vmul.f32 %v533_v46, %v3420_v47  ;;  %v1436_v5 = vmul.f32 0.5, %v3447_v14  ;;  %v3519_v56 = vadd.f32 %v3359_v35, %v1400_v50 }
 0x488   :  { %2224 = verf.f32 %v1450_v23  ;;  %v1485_v0 = vadd.f32 1.0, %v2207_v10  ;;  %v532_v57 = vadd.f32 1.0, %v2209_v45  ;;  %v504_v2 = vmul.f32 0.70710677, %v3502_v25 }
 0x489   :  { %v3523_v22 = vadd.f32 %v3359_v35, %v447_v39  ;;  %v503_v6 = vmul.f32 0.70710677, %v3506_v37  ;;  %v3527_v41 = vadd.f32 %v3359_v35, %v454_v34  ;;  %v1399_v47 = vmul.f32 %v3351_v24, %v1376_v30 }
 0x48a   :  { %2226 = vrsqrt.f32 %v397_v1  ;;  %v2213_v14 = vpop.eup %2212  ;;  %v3531_v55 = vmul.f32 %v1478_v54, %v3429_v49  ;;  %v1456_v42 = vmul.f32 0.70710677, %v3512_v27  ;;  %v380_v20 = vmul.f32 0.0625, %v3304_v26 }
 0x48b   :  { %2228 = verf.f32 %v1457_v36  ;;  %v2215_v63 = vpop.eup %2214  ;;  %v531_v53 = vadd.f32 1.0, %v2211_v13  ;;  %v1435_v33 = vmul.f32 0.5, %v3452_v43  ;;  %v1455_v21 = vmul.f32 0.70710677, %v3519_v56  ;;  %v4184_v13 = vld [vmem:[#allocation11_spill] sm:$0xff] }
 0x48c   :  { %v1334_v11 = vmul.f32 0.0625, %v3300_v59  ;;  %v2217_v4 = vpop.eup %2216  ;;  %v3539_v29 = vmul.f32 %v1485_v0, %v3444_v38  ;;  %2230 = verf.f32 %v504_v2  ;;  %v502_v49 = vmul.f32 0.70710677, %v3523_v22 }
 0x48d   :  { %v1332_v58 = vmul.f32 0.0625, %v3306_v31  ;;  %v2219_v62 = vpop.eup %2218  ;;  %v3544_v26 = vmul.f32 %v532_v57, %v3449_v7  ;;  %2232 = verf.f32 %v503_v6  ;;  %v509_v43 = vmul.f32 0.70710677, %v3527_v41 }
 0x48e   :  { %v3548_v3 = vadd.f32 %v3359_v35, %v1399_v47  ;;  %v1484_v51 = vadd.f32 1.0, %v2213_v14  ;;  %v482_v38 = vmul.f32 0.5, %v3458_v61  ;;  %2234 = verf.f32 %v1456_v42  ;;  %v4183_v61 = vld [vmem:[#allocation5_spill] sm:$0xff] }
 0x48f   :  { %v2221_v59 = vpop.eup %2220  ;;  %v396_v32 = vadd.f32 1e-06, %v380_v20  ;;  %v3552_v10 = vmul.f32 %v531_v53, %v3468_v44  ;;  %v1483_v31 = vadd.f32 1.0, %v2215_v63  ;;  %2236 = verf.f32 %v1455_v21  ;;  %v4185_v63 = vld [vmem:[#allocation6_spill] sm:$0xff] }
 0x490   :  { %v1350_v46 = vadd.f32 1e-06, %v1334_v11  ;;  %v489_v23 = vmul.f32 0.5, %v3465_v28  ;;  %v1434_v50 = vmul.f32 0.5, %v3484_v9  ;;  %2238 = verf.f32 %v502_v49 }
 0x491   :  { %v2223_v7 = vpop.eup %2222  ;;  %v1348_v45 = vadd.f32 1e-06, %v1332_v58  ;;  %2240 = verf.f32 %v509_v43  ;;  %v1454_v34 = vmul.f32 0.70710677, %v3548_v3  ;;  %v1383_v19 = vmul.f32 %v2221_v59, %v4183_v61 }
 0x492   :  { %v2225_v39 = vpop.eup %2224  ;;  %v1333_v30 = vmul.f32 0.0625, %v3302_v40  ;;  %v3559_v44 = vmul.f32 %v1484_v51, %v1436_v5  ;;  %v530_v1 = vadd.f32 1.0, %v2217_v4  ;;  %v1441_v54 = vmul.f32 0.5, %v3493_v18 }
 0x493   :  { %2242 = vrsqrt.f32 %v396_v32  ;;  %v3562_v28 = vmul.f32 %v1483_v31, %v1435_v33  ;;  %v488_v9 = vmul.f32 0.5, %v3502_v25  ;;  %v430_v0 = vmul.f32 %v2223_v7, %v4184_v13 }
 0x494   :  { %v2227_v36 = vpop.eup %2226  ;;  %2244 = vrsqrt.f32 %v1350_v46  ;;  %v537_v6 = vadd.f32 1.0, %v2219_v62  ;;  %v1482_v47 = vadd.f32 1.0, %v2225_v39  ;;  %v487_v5 = vmul.f32 0.5, %v3506_v37 }
 0x495   :  { %v2229_v2 = vpop.eup %2228  ;;  %2246 = vrsqrt.f32 %v1348_v45  ;;  %v1406_v18 = vmul.f32 %v3351_v24, %v1383_v19  ;;  %v1349_v14 = vadd.f32 1e-06, %v1333_v30  ;;  %v3568_v20 = vmul.f32 %v530_v1, %v482_v38 }
 0x496   :  { %2248 = verf.f32 %v1454_v34  ;;  %v2231_v42 = vpop.eup %2230  ;;  %v1440_v25 = vmul.f32 0.5, %v3512_v27  ;;  %v429_v53 = vmul.f32 %v2227_v36, %v4185_v63  ;;  %v1489_v11 = vadd.f32 1.0, %v2229_v2 }
 0x497   :  { %v2233_v21 = vpop.eup %2232  ;;  %v1439_v4 = vmul.f32 0.5, %v3519_v56  ;;  %v486_v49 = vmul.f32 0.5, %v3523_v22  ;;  %v453_v37 = vmul.f32 %v3351_v24, %v430_v0  ;;  %v3575_v43 = vmul.f32 %v537_v6, %v489_v23 }
 0x498   :  { %v2235_v62 = vpop.eup %2234  ;;  %v3577_v59 = vmul.f32 %v1482_v47, %v1434_v50  ;;  %v3580_v32 = vmul.f32 0.5, %v3527_v41  ;;  %v3583_v31 = vadd.f32 %v3359_v35, %v1406_v18  ;;  %v536_v46 = vadd.f32 1.0, %v2231_v42 }
 0x499   :  { %v2237_v38 = vpop.eup %2236  ;;  %v535_v7 = vadd.f32 1.0, %v2233_v21  ;;  %v452_v23 = vmul.f32 %v3351_v24, %v429_v53  ;;  %v3586_v39 = vmul.f32 %v1489_v11, %v1441_v54  ;;  %v1488_v34 = vadd.f32 1.0, %v2235_v62  ;;  %v4190_v62 = vld [vmem:[#allocation9_spill] sm:$0xff] }
 0x49a   :  { %4186 = vst [vmem:[#allocation14_spill] sm:$0xff] %v3583_v31  ;;  %v2239_v22 = vpop.eup %2238  ;;  %v476_v61 = vadd.f32 %v3359_v35, %v453_v37  ;;  %v1487_v1 = vadd.f32 1.0, %v2237_v38  ;;  %v1438_v36 = vmul.f32 0.5, %v3548_v3  ;;  %v3591_v6 = vmul.f32 0.70710677, %v3583_v31  ;;  %v4191_v38 = vld [vmem:[#allocation8_spill] sm:$0xff] }
 0x49b   :  { %v2241_v50 = vpop.eup %2240  ;;  %v534_v2 = vadd.f32 1.0, %v2239_v22  ;;  %v3595_v18 = vmul.f32 %v535_v7, %v487_v5  ;;  %v3600_v63 = vmul.f32 %v1488_v34, %v1440_v25 }
 0x49c   :  { %4187 = vst [vmem:[#allocation13_spill] sm:$0xff] %v3591_v6  ;;  %v508_v53 = vmul.f32 0.70710677, %v476_v61 }
 0x49d   :  { %v2243_v30 = vpop.eup %2242 }
 0x4a2   :  { %v790_v57 = vpop.xlane.xlu0 %789 }
 0x4a3   :  { %v832_v40 = vmul.f32 0.0625, %v790_v57  ;;  %v2245_v57 = vpop.eup %2244 }
 0x4a4   :  { %v2247_v47 = vpop.eup %2246 }
 0x4a5   :  { %v848_v33 = vadd.f32 1e-06, %v832_v40  ;;  %v3593_v40 = vmul.f32 %v536_v46, %v488_v9  ;;  %v2249_v3 = vpop.eup %2248  ;;  %v3609_v46 = vadd.f32 1.0, %v2241_v50 }
 0x4a6   :  { %v1742_v58 = vpop.xlane.xlu0 %1741  ;;  %v1486_v7 = vadd.f32 1.0, %v2249_v3  ;;  %v4194_v3 = vld [vmem:[#allocation10_spill] sm:$0xff] }
 0x4a7   :  { %2250 = vrsqrt.f32 %v848_v33  ;;  %v1784_v51 = vmul.f32 0.0625, %v1742_v58  ;;  %v4189_v33 = vld [vmem:[#allocation7_spill] sm:$0xff]  ;;  %v3603_v58 = vmul.f32 %v1487_v1, %v1439_v4  ;;  %v3614_v1 = vmul.f32 0.5, %v476_v61 }
 0x4a8   :  { %2252 = vrsqrt.f32 %v1349_v14  ;;  %v3598_v14 = vadd.f32 %v3359_v35, %v452_v23  ;;  %v428_v21 = vmul.f32 %v2243_v30, %v4189_v33 }
 0x4a9   :  { %v1800_v45 = vadd.f32 1e-06, %v1784_v51  ;;  %v1382_v51 = vmul.f32 %v2245_v57, %v4190_v62  ;;  %4193 = vst [vmem:[#allocation15_spill] sm:$0xff] %v3614_v1 }
 0x4aa   :  { %v784_v19 = vpop.xlane.xlu0 %783  ;;  %4188 = vst [vmem:[#allocation16_spill] sm:$0xff] %v3598_v14  ;;  %v507_v23 = vmul.f32 0.70710677, %v3598_v14  ;;  %v451_v34 = vmul.f32 %v3351_v24, %v428_v21 }
 0x4ab   :  { %2254 = vrsqrt.f32 %v1800_v45  ;;  %v830_v13 = vmul.f32 0.0625, %v784_v19  ;;  %v4192_v19 = vld [vmem:[#allocation23_spill] sm:$0xff] }
 0x4ac   :  { %v3623_v21 = vadd.f32 %v3359_v35, %v451_v34 }
 0x4ad   :  { %v846_v42 = vadd.f32 1e-06, %v830_v13  ;;  %v1405_v13 = vmul.f32 %v3351_v24, %v1382_v51 }
 0x4ae   :  { %v793_v27 = vpop.xlane.xlu1 %792  ;;  %v1736_v11 = vpop.xlane.xlu0 %1735 }
 0x4af   :  { %v833_v56 = vmul.f32 0.0625, %v793_v27  ;;  %v1782_v9 = vmul.f32 0.0625, %v1736_v11  ;;  %v3606_v27 = vmul.f32 %v534_v2, %v486_v49 }
 0x4b1   :  { %v849_v41 = vadd.f32 1e-06, %v833_v56  ;;  %v1380_v56 = vmul.f32 %v2247_v47, %v4191_v38  ;;  %v2251_v25 = vpop.eup %2250  ;;  %v1798_v45 = vadd.f32 1e-06, %v1782_v9  ;;  %v4196_v38 = vld [vmem:[#allocation27_spill] sm:$0xff] }
 0x4b2   :  { %v1745_v0 = vpop.xlane.xlu1 %1744  ;;  %v2253_v4 = vpop.eup %2252 }
 0x4b3   :  { %2256 = vrsqrt.f32 %v849_v41  ;;  %v1785_v54 = vmul.f32 0.0625, %v1745_v0  ;;  %v880_v41 = vmul.f32 %v2251_v25, %v4192_v19  ;;  %v802_v30 = vpop.xlane.xlu0 %801  ;;  %v1403_v57 = vmul.f32 %v3351_v24, %v1380_v56 }
 0x4b4   :  { %2258 = vrsqrt.f32 %v846_v42  ;;  %v836_v0 = vmul.f32 0.0625, %v802_v30  ;;  %v3619_v42 = vmul.f32 %v1486_v7, %v1438_v36 }
 0x4b5   :  { %v1801_v37 = vadd.f32 1e-06, %v1785_v54  ;;  %v896_v2 = vmul.f32 %v3351_v24, %v880_v41  ;;  %v2255_v47 = vpop.eup %2254  ;;  %v3632_v25 = vadd.f32 %v3359_v35, %v1403_v57 }
 0x4b6   :  { %v787_v5 = vpop.xlane.xlu1 %786  ;;  %v852_v33 = vadd.f32 1e-06, %v836_v0  ;;  %v4198_v0 = vld [vmem:[#allocation26_spill] sm:$0xff] }
 0x4b7   :  { %2260 = vrsqrt.f32 %v1801_v37  ;;  %v831_v22 = vmul.f32 0.0625, %v787_v5  ;;  %v912_v11 = vadd.f32 %v3359_v35, %v896_v2  ;;  %v4195_v37 = vld [vmem:[#allocation24_spill] sm:$0xff]  ;;  %v3628_v5 = vadd.f32 %v3359_v35, %v1405_v13  ;;  %4197 = vst [vmem:[#allocation18_spill] sm:$0xff] %v3632_v25 }
 0x4b8   :  { %2262 = verf.f32 %v508_v53  ;;  %v1381_v53 = vmul.f32 %v2253_v4, %v4194_v3  ;;  %v1832_v62 = vmul.f32 %v2255_v47, %v4195_v37 }
 0x4b9   :  { %v847_v49 = vadd.f32 1e-06, %v831_v22  ;;  %2264 = vrsqrt.f32 %v1798_v45  ;;  %v944_v7 = vmul.f32 0.70710677, %v912_v11 }
 0x4ba   :  { %v1739_v50 = vpop.xlane.xlu1 %1738  ;;  %v1754_v9 = vpop.xlane.xlu0 %1753  ;;  %v3636_v4 = vmul.f32 %v3351_v24, %v1381_v53 }
 0x4bb   :  { %2266 = vrsqrt.f32 %v847_v49  ;;  %v1783_v54 = vmul.f32 0.0625, %v1739_v50  ;;  %v1788_v56 = vmul.f32 0.0625, %v1754_v9  ;;  %v3640_v49 = vmul.f32 0.70710677, %v3623_v21 }
 0x4bc   :  { %2268 = verf.f32 %v507_v23  ;;  %v1848_v23 = vmul.f32 %v3351_v24, %v1832_v62 }
 0x4bd   :  { %v2257_v61 = vpop.eup %2256  ;;  %v1799_v51 = vadd.f32 1e-06, %v1783_v54  ;;  %2270 = vrsqrt.f32 %v852_v33  ;;  %v1804_v19 = vadd.f32 1e-06, %v1788_v56  ;;  %v4199_v54 = vld [vmem:[#allocation29_spill] sm:$0xff] }
 0x4be   :  { %v881_v36 = vmul.f32 %v2257_v61, %v4196_v38  ;;  %v2259_v45 = vpop.eup %2258  ;;  %v1864_v13 = vadd.f32 %v3359_v35, %v1848_v23  ;;  %v796_v57 = vpop.xlane.xlu0 %795  ;;  %v3649_v33 = vmul.f32 0.70710677, %v3632_v25  ;;  %v928_v61 = vmul.f32 0.5, %v912_v11 }
 0x4bf   :  { %2272 = vrsqrt.f32 %v1799_v51  ;;  %v878_v50 = vmul.f32 %v2259_v45, %v4198_v0  ;;  %v834_v3 = vmul.f32 0.0625, %v796_v57 }
 0x4c0   :  { %v897_v34 = vmul.f32 %v3351_v24, %v881_v36  ;;  %2274 = verf.f32 %v944_v7  ;;  %v1896_v37 = vmul.f32 0.70710677, %v1864_v13  ;;  %v3653_v23 = vmul.f32 0.5, %v1864_v13 }
 0x4c1   :  { %v2261_v30 = vpop.eup %2260  ;;  %2276 = vrsqrt.f32 %v1804_v19  ;;  %v894_v62 = vmul.f32 %v3351_v24, %v878_v50  ;;  %v850_v36 = vadd.f32 1e-06, %v834_v3  ;;  %v4202_v50 = vld [vmem:[#allocation31_spill] sm:$0xff] }
 0x4c2   :  { %v805_v22 = vpop.xlane.xlu1 %804  ;;  %v913_v2 = vadd.f32 %v3359_v35, %v897_v34  ;;  %v1833_v47 = vmul.f32 %v2261_v30, %v4199_v54  ;;  %v3646_v53 = vpop.eup %2262  ;;  %2278 = verf.f32 %v1896_v37  ;;  %v4200_v34 = vld [vmem:[#allocation25_spill] sm:$0xff] }
 0x4c3   :  { %v837_v41 = vmul.f32 0.0625, %v805_v22  ;;  %v2265_v51 = vpop.eup %2264  ;;  %v910_v45 = vadd.f32 %v3359_v35, %v894_v62  ;;  %v1748_v30 = vpop.xlane.xlu0 %1747 }
 0x4c4   :  { %v945_v9 = vmul.f32 0.70710677, %v913_v2  ;;  %v1849_v38 = vmul.f32 %v3351_v24, %v1833_v47  ;;  %v1830_v19 = vmul.f32 %v2265_v51, %v4200_v34  ;;  %v1786_v54 = vmul.f32 0.0625, %v1748_v30 }
 0x4c5   :  { %v853_v56 = vadd.f32 1e-06, %v837_v41  ;;  %v2267_v7 = vpop.eup %2266  ;;  %v942_v47 = vmul.f32 0.70710677, %v910_v45  ;;  %v929_v37 = vmul.f32 0.5, %v913_v2 }
 0x4c6   :  { %v1757_v22 = vpop.xlane.xlu1 %1756  ;;  %v3657_v11 = vpop.eup %2268  ;;  %2280 = verf.f32 %v945_v9  ;;  %v1865_v0 = vadd.f32 %v3359_v35, %v1849_v38  ;;  %v879_v57 = vmul.f32 %v2267_v7, %v4202_v50  ;;  %v1846_v41 = vmul.f32 %v3351_v24, %v1830_v19  ;;  %v4203_v38 = vld [vmem:[#allocation30_spill] sm:$0xff] }
 0x4c7   :  { %4201 = vst [vmem:[#allocation17_spill] sm:$0xff] %v3657_v11  ;;  %2282 = vrsqrt.f32 %v850_v36  ;;  %v1789_v13 = vmul.f32 0.0625, %v1757_v22  ;;  %v2271_v3 = vpop.eup %2270  ;;  %v1802_v7 = vadd.f32 1e-06, %v1786_v54  ;;  %v814_v30 = vpop.xlane.xlu0 %813  ;;  %v3665_v50 = vmul.f32 0.5, %v910_v45  ;;  %v4204_v22 = vld [vmem:[#allocation28_spill] sm:$0xff] }
 0x4c8   :  { %v1897_v62 = vmul.f32 0.70710677, %v1865_v0  ;;  %v895_v51 = vmul.f32 %v3351_v24, %v879_v57  ;;  %2284 = vrsqrt.f32 %v853_v56  ;;  %v1862_v9 = vadd.f32 %v3359_v35, %v1846_v41 }
 0x4c9   :  { %v2273_v34 = vpop.eup %2272  ;;  %2286 = verf.f32 %v942_v47  ;;  %v884_v31 = vmul.f32 %v2271_v3, %v4203_v38  ;;  %v1805_v56 = vadd.f32 1e-06, %v1789_v13  ;;  %v1881_v41 = vmul.f32 0.5, %v1865_v0 }
 0x4ca   :  { %2288 = verf.f32 %v1897_v62  ;;  %v911_v36 = vadd.f32 %v3359_v35, %v895_v51  ;;  %v1831_v19 = vmul.f32 %v2273_v34, %v4204_v22  ;;  %v2275_v2 = vpop.eup %2274  ;;  %v1894_v14 = vmul.f32 0.70710677, %v1862_v9  ;;  %v4205_v62 = vld [vmem:[#allocation33_spill] sm:$0xff]  ;;  %v799_v34 = vpop.xlane.xlu1 %798 }
 0x4cb   :  { %v900_v57 = vmul.f32 %v3351_v24, %v884_v31  ;;  %2290 = vrsqrt.f32 %v1802_v7  ;;  %v2277_v47 = vpop.eup %2276  ;;  %v976_v11 = vadd.f32 1.0, %v2275_v2  ;;  %v3671_v3 = vmul.f32 0.5, %v1862_v9  ;;  %v3675_v38 = vpop.xlane.xlu0 %1765 }
 0x4cc   :  { %v943_v6 = vmul.f32 0.70710677, %v911_v36  ;;  %v1847_v54 = vmul.f32 %v3351_v24, %v1831_v19  ;;  %2292 = verf.f32 %v1894_v14  ;;  %v1836_v51 = vmul.f32 %v2277_v47, %v4205_v62  ;;  %v2279_v7 = vpop.eup %2278 }
 0x4cd   :  { %v916_v45 = vadd.f32 %v3359_v35, %v900_v57  ;;  %v992_v22 = vmul.f32 %v976_v11, %v928_v61  ;;  %v840_v13 = vmul.f32 0.0625, %v814_v30  ;;  %v3678_v2 = vmul.f32 0.5, %v911_v36 }
 0x4ce   :  { %2294 = verf.f32 %v943_v6  ;;  %v1863_v31 = vadd.f32 %v3359_v35, %v1847_v54  ;;  %v1852_v9 = vmul.f32 %v3351_v24, %v1836_v51  ;;  %v1928_v57 = vadd.f32 1.0, %v2279_v7  ;;  %v4206_v24 = vld [vmem:[#allocation32_spill] sm:$0xff]  ;;  %v4207_v7 = vld [vmem:[#allocation37_spill] sm:$0xff] }
 0x4cf   :  { %v948_v0 = vmul.f32 0.70710677, %v916_v45  ;;  %2296 = vrsqrt.f32 %v1805_v56  ;;  %v1008_v19 = vsel %vm222_vm1, %v3442_v15, %v992_v22  ;;  %v835_v62 = vmul.f32 0.0625, %v799_v34  ;;  %v3684_v30 = vpop.xlane.xlu0 %807 }
 0x4d0   :  { %v2281_v14 = vpop.eup %2280  ;;  %v1895_v47 = vmul.f32 0.70710677, %v1863_v31  ;;  %v1024_v61 = vpack.c.bf16 %v1008_v19, %v1008_v19  ;;  %v1868_v11 = vadd.f32 %v3359_v35, %v1852_v9  ;;  %v1944_v54 = vmul.f32 %v1928_v57, %v3653_v23 }
 0x4d1   :  { %v2283_v25 = vpop.eup %2282  ;;  %v977_v6 = vadd.f32 1.0, %v2281_v14  ;;  %2298 = verf.f32 %v948_v0  ;;  %v856_v51 = vadd.f32 1e-06, %v840_v13  ;;  %v932_v34 = vmul.f32 0.5, %v916_v45  ;;  %v3693_v0 = vpop.xlane.xlu1 %1750 }
 0x4d2   :  { %v2285_v36 = vpop.eup %2284  ;;  %2300 = verf.f32 %v1895_v47  ;;  %v882_v56 = vmul.f32 %v2283_v25, %v4206_v24  ;;  %1041 = vst.msk [vmem:[%s4017_s5 + $0x10] sm:$0xf] %vm1038_vm2, %v1024_v61  ;;  %v1900_v22 = vmul.f32 0.70710677, %v1868_v11  ;;  %v1960_v23 = vsel %vm222_vm1, %v3462_v48, %v1944_v54  ;;  %v3700_v25 = vld [vmem:[%s4015_s3] ss:$0 sm:$0xff] }
 0x4d3   :  { %v2287_v1 = vpop.eup %2286  ;;  %v993_v15 = vmul.f32 %v977_v6, %v929_v37  ;;  %v885_v35 = vmul.f32 %v2285_v36, %v4207_v7  ;;  %2302 = vrsqrt.f32 %v856_v51  ;;  %v1976_v45 = vpack.c.bf16 %v1960_v23, %v1960_v23  ;;  %v3709_v48 = vld [vmem:[%s4016_s4] ss:$0 sm:$0xff]  ;;  %v3713_v36 = vpop.xlane.xlu0 %1759 }
 0x4d4   :  { %v2289_v9 = vpop.eup %2288  ;;  %v974_v14 = vadd.f32 1.0, %v2287_v1  ;;  %v898_v13 = vmul.f32 %v3700_v25, %v882_v56  ;;  %2304 = verf.f32 %v1900_v22  ;;  %v1884_v24 = vmul.f32 0.5, %v1868_v11  ;;  %v4208_v56 = vld [vmem:[#allocation35_spill] sm:$0xff] }
 0x4d5   :  { %v2291_v37 = vpop.eup %2290  ;;  %v1009_v19 = vsel %vm222_vm1, %v3413_v60, %v993_v15  ;;  %v1929_v57 = vadd.f32 1.0, %v2289_v9  ;;  %v901_v6 = vmul.f32 %v3700_v25, %v885_v35  ;;  %2051 = vst.msk [vmem:[%s4017_s5 + $0x14] sm:$0xf] %vm1038_vm2, %v1976_v45  ;;  %v851_v9 = vadd.f32 1e-06, %v835_v62 }
 0x4d6   :  { %v990_v47 = vmul.f32 %v974_v14, %v3665_v50  ;;  %v1025_v61 = vpack.c.bf16 %v1009_v19, %v1009_v19  ;;  %v914_v1 = vadd.f32 %v3709_v48, %v898_v13  ;;  %v2293_v54 = vpop.eup %2292  ;;  %v1879_v50 = vmul.f32 0.5, %v1863_v31  ;;  %v817_v13 = vpop.xlane.xlu1 %816 }
 0x4d7   :  { %v1945_v60 = vmul.f32 %v1929_v57, %v1881_v41  ;;  %v1834_v51 = vmul.f32 %v2291_v37, %v4208_v56  ;;  %v1926_v7 = vadd.f32 1.0, %v2293_v54  ;;  %v917_v11 = vadd.f32 %v3709_v48, %v901_v6  ;;  %v811_v56 = vpop.xlane.xlu0 %810 }
 0x4d8   :  { %v2295_v15 = vpop.eup %2294  ;;  %v1006_v22 = vsel %vm222_vm1, %v3499_v52, %v990_v47  ;;  %1042 = vst.msk [vmem:[%s4017_s5 + $0x18] sm:$0xf] %vm1038_vm2, %v1025_v61  ;;  %v946_v35 = vmul.f32 0.70710677, %v914_v1  ;;  %v1792_v61 = vmul.f32 0.0625, %v3675_v38 }
 0x4d9   :  { %v2297_v23 = vpop.eup %2296  ;;  %v1022_v14 = vpack.c.bf16 %v1006_v22, %v1006_v22  ;;  %v1961_v41 = vsel %vm222_vm1, %v3436_v8, %v1945_v60  ;;  %v975_v31 = vadd.f32 1.0, %v2295_v15  ;;  %v1942_v37 = vmul.f32 %v1926_v7, %v3671_v3  ;;  %v4209_v8 = vld [vmem:[#allocation34_spill] sm:$0xff] }
 0x4da   :  { %v1977_v52 = vpack.c.bf16 %v1961_v41, %v1961_v41  ;;  %2306 = verf.f32 %v946_v35  ;;  %v1850_v45 = vmul.f32 %v3700_v25, %v1834_v51  ;;  %v949_v57 = vmul.f32 0.70710677, %v917_v11  ;;  %v4210_v41 = vld [vmem:[#allocation38_spill] sm:$0xff] }
 0x4db   :  { %v2299_v19 = vpop.eup %2298  ;;  %1039 = vst.msk [vmem:[%s4017_s5] sm:$0xf] %vm1038_vm2, %v1022_v14  ;;  %v991_v62 = vmul.f32 %v975_v31, %v3678_v2  ;;  %v1837_v47 = vmul.f32 %v2297_v23, %v4209_v8  ;;  %v1958_v3 = vsel %vm222_vm1, %v3531_v55, %v1942_v37  ;;  %2308 = vrsqrt.f32 %v851_v9 }
 0x4dc   :  { %v2301_v6 = vpop.eup %2300  ;;  %2052 = vst.msk [vmem:[%s4017_s5 + $0x1c] sm:$0xf] %vm1038_vm2, %v1977_v52  ;;  %v980_v54 = vadd.f32 1.0, %v2299_v19  ;;  %v1866_v60 = vadd.f32 %v3709_v48, %v1850_v45  ;;  %v1974_v2 = vpack.c.bf16 %v1958_v3, %v1958_v3  ;;  %2310 = verf.f32 %v949_v57 }
 0x4dd   :  { %v1007_v51 = vsel %vm222_vm1, %v3455_v17, %v991_v62  ;;  %v1927_v15 = vadd.f32 1.0, %v2301_v6  ;;  %v2303_v38 = vpop.eup %2302  ;;  %v930_v55 = vmul.f32 0.5, %v914_v1  ;;  %v1853_v9 = vmul.f32 %v3700_v25, %v1837_v47  ;;  %v1769_v17 = vpop.xlane.xlu1 %1768 }
 0x4de   :  { %v996_v22 = vmul.f32 %v980_v54, %v932_v34  ;;  %v1023_v7 = vpack.c.bf16 %v1007_v51, %v1007_v51  ;;  %v1898_v35 = vmul.f32 0.70710677, %v1866_v60  ;;  %v2305_v23 = vpop.eup %2304  ;;  %2049 = vst.msk [vmem:[%s4017_s5 + $0x4] sm:$0xf] %vm1038_vm2, %v1974_v2  ;;  %v888_v31 = vmul.f32 %v2303_v38, %v4210_v41  ;;  %v826_v47 = vpop.xlane.xlu0 %825 }
 0x4df   :  { %v1943_v14 = vmul.f32 %v1927_v15, %v1879_v50  ;;  %v1808_v37 = vadd.f32 1e-06, %v1792_v61  ;;  %v1932_v34 = vadd.f32 1.0, %v2305_v23  ;;  %v1787_v1 = vmul.f32 0.0625, %v3693_v0 }
 0x4e0   :  { %v1012_v52 = vsel %vm222_vm1, %v3544_v26, %v996_v22  ;;  %1040 = vst.msk [vmem:[%s4017_s5 + $0x8] sm:$0xf] %vm1038_vm2, %v1023_v7  ;;  %2312 = verf.f32 %v1898_v35  ;;  %v1869_v19 = vadd.f32 %v3709_v48, %v1853_v9  ;;  %v904_v62 = vmul.f32 %v3700_v25, %v888_v31 }
 0x4e1   :  { %v1028_v45 = vpack.c.bf16 %v1012_v52, %v1012_v52  ;;  %v1959_v50 = vsel %vm222_vm1, %v3480_v16, %v1943_v14  ;;  %v1948_v8 = vmul.f32 %v1932_v34, %v1884_v24  ;;  %2314 = vrsqrt.f32 %v1808_v37  ;;  %v1763_v38 = vpop.xlane.xlu1 %1762 }
 0x4e2   :  { %v1975_v57 = vpack.c.bf16 %v1959_v50, %v1959_v50  ;;  %v1803_v26 = vadd.f32 1e-06, %v1787_v1  ;;  %v933_v61 = vmul.f32 0.5, %v917_v11  ;;  %v1901_v0 = vmul.f32 0.70710677, %v1869_v19 }
 0x4e3   :  { %1045 = vst.msk [vmem:[%s4017_s5 + $0x30] sm:$0xf] %vm1038_vm2, %v1028_v45  ;;  %v3769_v6 = vadd.f32 %v3709_v48, %v904_v62  ;;  %v838_v16 = vmul.f32 0.0625, %v3684_v30  ;;  %v1964_v24 = vsel %vm222_vm1, %v3559_v44, %v1948_v8  ;;  %v841_v54 = vmul.f32 0.0625, %v817_v13 }
 0x4e4   :  { %v2307_v3 = vpop.eup %2306  ;;  %2050 = vst.msk [vmem:[%s4017_s5 + $0xc] sm:$0xf] %vm1038_vm2, %v1975_v57  ;;  %2316 = vrsqrt.f32 %v1803_v26  ;;  %v1790_v2 = vmul.f32 0.0625, %v3713_v36  ;;  %v1980_v11 = vpack.c.bf16 %v1964_v24, %v1964_v24  ;;  %v1882_v15 = vmul.f32 0.5, %v1866_v60  ;;  %v4211_v36 = vld [vmem:[#allocation39_spill] sm:$0xff] }
 0x4e5   :  { %v978_v51 = vadd.f32 1.0, %v2307_v3  ;;  %2318 = verf.f32 %v1901_v0  ;;  %v2309_v22 = vpop.eup %2308  ;;  %v952_v30 = vmul.f32 0.70710677, %v3769_v6  ;;  %v854_v7 = vadd.f32 1e-06, %v838_v16 }
 0x4e6   :  { %2320 = verf.f32 %v3640_v49  ;;  %v857_v35 = vadd.f32 1e-06, %v841_v54  ;;  %v2311_v23 = vpop.eup %2310  ;;  %2055 = vst.msk [vmem:[%s4017_s5 + $0x34] sm:$0xf] %vm1038_vm2, %v1980_v11  ;;  %v883_v13 = vmul.f32 %v2309_v22, %v4211_v36  ;;  %v1806_v14 = vadd.f32 1e-06, %v1790_v2  ;;  %v820_v49 = vpop.xlane.xlu0 %819 }
 0x4e7   :  { %v994_v44 = vmul.f32 %v978_v51, %v930_v55  ;;  %v1793_v60 = vmul.f32 0.0625, %v1769_v17  ;;  %v981_v9 = vadd.f32 1.0, %v2311_v23  ;;  %2322 = verf.f32 %v952_v30  ;;  %v4212_v2 = vld [vmem:[#allocation41_spill] sm:$0xff] }
 0x4e8   :  { %v839_v41 = vmul.f32 0.0625, %v811_v56  ;;  %v1791_v31 = vmul.f32 0.0625, %v1763_v38  ;;  %v899_v52 = vmul.f32 %v3700_v25, %v883_v13  ;;  %2324 = vrsqrt.f32 %v854_v7 }
 0x4e9   :  { %v1010_v37 = vsel %vm222_vm1, %v3568_v20, %v994_v44  ;;  %v1809_v34 = vadd.f32 1e-06, %v1793_v60  ;;  %v997_v50 = vmul.f32 %v981_v9, %v933_v61  ;;  %2326 = vrsqrt.f32 %v857_v35  ;;  %v829_v61 = vpop.xlane.xlu1 %828 }
 0x4ea   :  { %v2313_v1 = vpop.eup %2312  ;;  %v1026_v45 = vpack.c.bf16 %v1010_v37, %v1010_v37  ;;  %v855_v55 = vadd.f32 1e-06, %v839_v41  ;;  %v3790_v17 = vadd.f32 %v3709_v48, %v899_v52  ;;  %2328 = vrsqrt.f32 %v1806_v14  ;;  %v1772_v22 = vpop.xlane.xlu0 %1771 }
 0x4eb   :  { %v1930_v62 = vadd.f32 1.0, %v2313_v1  ;;  %v1807_v56 = vadd.f32 1e-06, %v1791_v31  ;;  %v2315_v57 = vpop.eup %2314  ;;  %v1013_v20 = vsel %vm222_vm1, %v3515_v12, %v997_v50  ;;  %2330 = vrsqrt.f32 %v1809_v34  ;;  %v4214_v50 = vld [vmem:[#allocation40_spill] sm:$0xff] }
 0x4ec   :  { %1043 = vst.msk [vmem:[%s4017_s5 + $0x20] sm:$0xf] %vm1038_vm2, %v1026_v45  ;;  %v844_v8 = vmul.f32 0.0625, %v826_v47  ;;  %v842_v26 = vmul.f32 0.0625, %v820_v49  ;;  %v1029_v0 = vpack.c.bf16 %v1013_v20, %v1013_v20  ;;  %v1885_v3 = vmul.f32 0.5, %v1869_v19  ;;  %v4213_v19 = vld [vmem:[#allocation36_spill] sm:$0xff] }
 0x4ed   :  { %v1946_v16 = vmul.f32 %v1930_v62, %v1882_v15  ;;  %v947_v24 = vmul.f32 0.70710677, %v3790_v17  ;;  %v1840_v11 = vmul.f32 %v2315_v57, %v4212_v2  ;;  %2332 = vrsqrt.f32 %v855_v55  ;;  %v823_v62 = vpop.xlane.xlu1 %822 }
 0x4ee   :  { %v2317_v54 = vpop.eup %2316  ;;  %v860_v51 = vadd.f32 1e-06, %v844_v8  ;;  %v858_v38 = vadd.f32 1e-06, %v842_v26  ;;  %1046 = vst.msk [vmem:[%s4017_s5 + $0x38] sm:$0xf] %vm1038_vm2, %v1029_v0 }
 0x4ef   :  { %v2319_v30 = vpop.eup %2318  ;;  %v1962_v12 = vsel %vm222_vm1, %v3577_v59, %v1946_v16  ;;  %2334 = verf.f32 %v947_v24  ;;  %v1835_v47 = vmul.f32 %v2317_v54, %v4213_v19  ;;  %v845_v15 = vmul.f32 0.0625, %v829_v61  ;;  %v4215_v61 = vld [vmem:[#allocation45_spill] sm:$0xff]  ;;  %v4216_v16 = vld [vmem:[#allocation43_spill] sm:$0xff]  ;;  %v4217_v24 = vld [vmem:[#allocation42_spill] sm:$0xff] }
 0x4f0   :  { %v3807_v7 = vpop.eup %2320  ;;  %v1978_v35 = vpack.c.bf16 %v1962_v12, %v1962_v12  ;;  %v1933_v23 = vadd.f32 1.0, %v2319_v30  ;;  %v1856_v44 = vmul.f32 %v3700_v25, %v1840_v11  ;;  %2336 = vrsqrt.f32 %v1807_v56 }
 0x4f1   :  { %v1851_v36 = vmul.f32 %v3700_v25, %v1835_v47  ;;  %2338 = vrsqrt.f32 %v860_v51  ;;  %v861_v13 = vadd.f32 1e-06, %v845_v15  ;;  %v1794_v14 = vmul.f32 0.0625, %v1772_v22  ;;  %v2323_v60 = vpop.eup %2322  ;;  %v4218_v15 = vld [vmem:[#allocation47_spill] sm:$0xff] }
 0x4f2   :  { %v3812_v9 = vmul.f32 0.70710677, %v3628_v5  ;;  %2053 = vst.msk [vmem:[%s4017_s5 + $0x24] sm:$0xf] %vm1038_vm2, %v1978_v35  ;;  %v1949_v59 = vmul.f32 %v1933_v23, %v1885_v3  ;;  %v1872_v41 = vadd.f32 %v3709_v48, %v1856_v44  ;;  %2340 = vrsqrt.f32 %v858_v38  ;;  %v2325_v31 = vpop.eup %2324 }
 0x4f3   :  { %2342 = verf.f32 %v3649_v33  ;;  %v936_v49 = vmul.f32 0.5, %v3769_v6  ;;  %v984_v37 = vadd.f32 1.0, %v2323_v60  ;;  %v1867_v52 = vadd.f32 %v3709_v48, %v1851_v36  ;;  %v2327_v34 = vpop.eup %2326 }
 0x4f4   :  { %v1965_v1 = vsel %vm222_vm1, %v3539_v29, %v1949_v59  ;;  %v1904_v45 = vmul.f32 0.70710677, %v1872_v41  ;;  %v886_v55 = vmul.f32 %v2325_v31, %v4214_v50  ;;  %2344 = vrsqrt.f32 %v861_v13  ;;  %v2329_v56 = vpop.eup %2328 }
 0x4f5   :  { %v1981_v57 = vpack.c.bf16 %v1965_v1, %v1965_v1  ;;  %v1000_v20 = vmul.f32 %v984_v37, %v936_v49  ;;  %v1899_v8 = vmul.f32 0.70710677, %v1867_v52  ;;  %v1810_v26 = vadd.f32 1e-06, %v1794_v14  ;;  %v2331_v33 = vpop.eup %2330  ;;  %v1778_v14 = vpop.xlane.xlu0 %1777  ;;  %v4219_v49 = vld [vmem:[#allocation44_spill] sm:$0xff] }
 0x4f6   :  { %2346 = verf.f32 %v1904_v45  ;;  %v902_v6 = vmul.f32 %v3700_v25, %v886_v55  ;;  %v889_v0 = vmul.f32 %v2327_v34, %v4215_v61  ;;  %v1838_v3 = vmul.f32 %v2329_v56, %v4216_v16  ;;  %v4220_v61 = vld [vmem:[#allocation46_spill] sm:$0xff]  ;;  %v4221_v16 = vld [vmem:[#allocation48_spill] sm:$0xff] }
 0x4f7   :  { %2056 = vst.msk [vmem:[%s4017_s5 + $0x3c] sm:$0xf] %vm1038_vm2, %v1981_v57  ;;  %v1016_v29 = vsel %vm222_vm1, %v3593_v40, %v1000_v20  ;;  %2348 = verf.f32 %v1899_v8  ;;  %v1841_v54 = vmul.f32 %v2331_v33, %v4217_v24  ;;  %v843_v2 = vmul.f32 0.0625, %v823_v62  ;;  %v2333_v11 = vpop.eup %2332 }
 0x4f8   :  { %v1032_v51 = vpack.c.bf16 %v1016_v29, %v1016_v29  ;;  %v918_v38 = vadd.f32 %v3709_v48, %v902_v6  ;;  %v905_v22 = vmul.f32 %v3700_v25, %v889_v0  ;;  %v1854_v30 = vmul.f32 %v3700_v25, %v1838_v3 }
 0x4f9   :  { %v2335_v12 = vpop.eup %2334  ;;  %v931_v19 = vmul.f32 0.5, %v3790_v17  ;;  %v1857_v47 = vmul.f32 %v3700_v25, %v1841_v54  ;;  %v887_v35 = vmul.f32 %v2333_v11, %v4218_v15  ;;  %2350 = vrsqrt.f32 %v1810_v26 }
 0x4fa   :  { %v2337_v40 = vpop.eup %2336  ;;  %1049 = vst.msk [vmem:[%s4017_s5 + $0x50] sm:$0xf] %vm1038_vm2, %v1032_v51  ;;  %v979_v23 = vadd.f32 1.0, %v2335_v12  ;;  %v1888_v44 = vmul.f32 0.5, %v1872_v41  ;;  %v950_v36 = vmul.f32 0.70710677, %v918_v38  ;;  %v921_v13 = vadd.f32 %v3709_v48, %v905_v22  ;;  %v1775_v12 = vpop.xlane.xlu1 %1774 }
 0x4fb   :  { %v2339_v60 = vpop.eup %2338  ;;  %v1870_v17 = vadd.f32 %v3709_v48, %v1854_v30  ;;  %v1873_v59 = vadd.f32 %v3709_v48, %v1857_v47  ;;  %v903_v31 = vmul.f32 %v3700_v25, %v887_v35  ;;  %v1839_v37 = vmul.f32 %v2337_v40, %v4219_v49  ;;  %v4222_v22 = vld [vmem:[#allocation52_spill] sm:$0xff] }
 0x4fc   :  { %v2341_v34 = vpop.eup %2340  ;;  %v995_v1 = vmul.f32 %v979_v23, %v931_v19  ;;  %2352 = verf.f32 %v950_v36  ;;  %v953_v45 = vmul.f32 0.70710677, %v921_v13  ;;  %v3850_v50 = vadd.f32 1e-06, %v843_v2 }
 0x4fd   :  { %v3852_v41 = vpop.eup %2342  ;;  %v1883_v55 = vmul.f32 0.5, %v1867_v52  ;;  %v1902_v62 = vmul.f32 0.70710677, %v1870_v17  ;;  %v1905_v56 = vmul.f32 0.70710677, %v1873_v59  ;;  %v1796_v57 = vmul.f32 0.0625, %v1778_v14 }
 0x4fe   :  { %v2345_v20 = vpop.eup %2344  ;;  %v1011_v8 = vsel %vm222_vm1, %v3552_v10, %v995_v1  ;;  %2354 = verf.f32 %v953_v45  ;;  %v919_v26 = vadd.f32 %v3709_v48, %v903_v31  ;;  %v1855_v33 = vmul.f32 %v3700_v25, %v1839_v37  ;;  %v4223_v31 = vld [vmem:[#allocation51_spill] sm:$0xff] }
 0x4ff   :  { %v1027_v6 = vpack.c.bf16 %v1011_v8, %v1011_v8  ;;  %2356 = verf.f32 %v1902_v62  ;;  %v892_v0 = vmul.f32 %v2339_v60, %v4220_v61  ;;  %v890_v3 = vmul.f32 %v2341_v34, %v4221_v16 }
 0x500   :  { %v2347_v29 = vpop.eup %2346  ;;  %v934_v52 = vmul.f32 0.5, %v918_v38  ;;  %2358 = verf.f32 %v1905_v56  ;;  %v951_v24 = vmul.f32 0.70710677, %v919_v26  ;;  %v1871_v54 = vadd.f32 %v3709_v48, %v1855_v33 }
 0x501   :  { %v2349_v2 = vpop.eup %2348  ;;  %1044 = vst.msk [vmem:[%s4017_s5 + $0x28] sm:$0xf] %vm1038_vm2, %v1027_v6  ;;  %v1936_v10 = vadd.f32 1.0, %v2347_v29  ;;  %v908_v11 = vmul.f32 %v3700_v25, %v892_v0  ;;  %v906_v51 = vmul.f32 %v3700_v25, %v890_v3  ;;  %v893_v30 = vmul.f32 %v2345_v20, %v4222_v22 }
 0x502   :  { %v1931_v19 = vadd.f32 1.0, %v2349_v2  ;;  %v937_v38 = vmul.f32 0.5, %v921_v13  ;;  %2360 = verf.f32 %v951_v24  ;;  %v1903_v47 = vmul.f32 0.70710677, %v1871_v54 }
 0x503   :  { %v2351_v15 = vpop.eup %2350  ;;  %v1952_v35 = vmul.f32 %v1936_v10, %v1888_v44  ;;  %v3869_v40 = vadd.f32 %v3709_v48, %v908_v11  ;;  %v3872_v23 = vadd.f32 %v3709_v48, %v906_v51  ;;  %v909_v36 = vmul.f32 %v3700_v25, %v893_v30 }
 0x504   :  { %v1947_v14 = vmul.f32 %v1931_v19, %v1883_v55  ;;  %v1886_v60 = vmul.f32 0.5, %v1870_v17  ;;  %2362 = verf.f32 %v1903_v47  ;;  %v1842_v49 = vmul.f32 %v2351_v15, %v4223_v31 }
 0x505   :  { %v1968_v13 = vsel %vm222_vm1, %v3600_v63, %v1952_v35  ;;  %v1889_v37 = vmul.f32 0.5, %v1873_v59  ;;  %v935_v34 = vmul.f32 0.5, %v919_v26  ;;  %v956_v44 = vmul.f32 0.70710677, %v3869_v40  ;;  %v1781_v63 = vpop.xlane.xlu1 %1780 }
 0x506   :  { %v2353_v1 = vpop.eup %2352  ;;  %v1984_v45 = vpack.c.bf16 %v1968_v13, %v1968_v13  ;;  %v1963_v62 = vsel %vm222_vm1, %v3562_v28, %v1947_v14  ;;  %v954_v56 = vmul.f32 0.70710677, %v3872_v23  ;;  %v3883_v55 = vadd.f32 %v3709_v48, %v909_v36 }
 0x507   :  { %v1979_v17 = vpack.c.bf16 %v1963_v62, %v1963_v62  ;;  %v982_v20 = vadd.f32 1.0, %v2353_v1  ;;  %2364 = verf.f32 %v956_v44  ;;  %v1858_v8 = vmul.f32 %v3700_v25, %v1842_v49 }
 0x508   :  { %v2355_v59 = vpop.eup %2354  ;;  %2059 = vst.msk [vmem:[%s4017_s5 + $0x54] sm:$0xf] %vm1038_vm2, %v1984_v45  ;;  %2366 = verf.f32 %v954_v56  ;;  %v957_v28 = vmul.f32 0.70710677, %v3883_v55  ;;  %v1812_v26 = vadd.f32 1e-06, %v1796_v57  ;;  %v3921_v13 = vadd.f32 %v3709_v48, %v3636_v4 }
 0x509   :  { %v1795_v33 = vmul.f32 0.0625, %v1775_v12  ;;  %v2357_v6 = vpop.eup %2356  ;;  %2054 = vst.msk [vmem:[%s4017_s5 + $0x2c] sm:$0xf] %vm1038_vm2, %v1979_v17  ;;  %v998_v61 = vmul.f32 %v982_v20, %v934_v52  ;;  %v985_v0 = vadd.f32 1.0, %v2355_v59  ;;  %v3896_v16 = vadd.f32 %v3709_v48, %v1858_v8  ;;  %v4225_v20 = vld [vmem:[#allocation53_spill] sm:$0xff] }
 0x50a   :  { %2368 = vrsqrt.f32 %v3850_v50  ;;  %v2359_v3 = vpop.eup %2358  ;;  %v1934_v29 = vadd.f32 1.0, %v2357_v6  ;;  %v1797_v2 = vmul.f32 0.0625, %v1781_v63  ;;  %v1887_v51 = vmul.f32 0.5, %v1871_v54 }
 0x50b   :  { %2370 = verf.f32 %v957_v28  ;;  %v1811_v24 = vadd.f32 1e-06, %v1795_v33  ;;  %v1014_v57 = vsel %vm222_vm1, %v3606_v27, %v998_v61  ;;  %v1001_v10 = vmul.f32 %v985_v0, %v937_v38 }
 0x50c   :  { %v1937_v11 = vadd.f32 1.0, %v2359_v3  ;;  %v2361_v22 = vpop.eup %2360  ;;  %v1030_v30 = vpack.c.bf16 %v1014_v57, %v1014_v57  ;;  %v1950_v52 = vmul.f32 %v1934_v29, %v1886_v60  ;;  %v1906_v12 = vmul.f32 0.70710677, %v3896_v16  ;;  %v4226_v29 = vld [vmem:[#allocation49_spill] sm:$0xff]  ;;  %v4227_v57 = vld [vmem:[#allocation18_spill] sm:$0xff] }
 0x50d   :  { %2372 = vrsqrt.f32 %v1812_v26  ;;  %v1017_v50 = vsel %vm222_vm1, %v3575_v43, %v1001_v10  ;;  %v983_v47 = vadd.f32 1.0, %v2361_v22  ;;  %v1813_v38 = vadd.f32 1e-06, %v1797_v2 }
 0x50e   :  { %v1953_v19 = vmul.f32 %v1937_v11, %v1889_v37  ;;  %2374 = vrsqrt.f32 %v1811_v24  ;;  %v2363_v15 = vpop.eup %2362  ;;  %1047 = vst.msk [vmem:[%s4017_s5 + $0x40] sm:$0xf] %vm1038_vm2, %v1030_v30  ;;  %v1033_v27 = vpack.c.bf16 %v1017_v50, %v1017_v50  ;;  %v1966_v54 = vsel %vm222_vm1, %v3619_v42, %v1950_v52 }
 0x50f   :  { %2376 = verf.f32 %v1906_v12  ;;  %v1982_v35 = vpack.c.bf16 %v1966_v54, %v1966_v54  ;;  %v999_v43 = vmul.f32 %v983_v47, %v935_v34  ;;  %v1935_v14 = vadd.f32 1.0, %v2363_v15 }
 0x510   :  { %v1969_v36 = vsel %vm222_vm1, %v3586_v39, %v1953_v19  ;;  %v557_v60 = vmul.f32 %v3609_v46, %v3580_v32  ;;  %v540_v31 = vadd.f32 1.0, %v3646_v53  ;;  %1050 = vst.msk [vmem:[%s4017_s5 + $0x58] sm:$0xf] %vm1038_vm2, %v1033_v27  ;;  %2378 = vrsqrt.f32 %v1813_v38 }
 0x511   :  { %v1985_v49 = vpack.c.bf16 %v1969_v36, %v1969_v36  ;;  %v2365_v42 = vpop.eup %2364  ;;  %v538_v39 = vadd.f32 1.0, %v3807_v7  ;;  %2057 = vst.msk [vmem:[%s4017_s5 + $0x44] sm:$0xf] %vm1038_vm2, %v1982_v35  ;;  %v1015_v32 = vsel %vm222_vm1, %v3595_v18, %v999_v43  ;;  %v1951_v46 = vmul.f32 %v1935_v14, %v1887_v51  ;;  %v4228_v51 = vld [vmem:[#allocation54_spill] sm:$0xff] }
 0x512   :  { %v2367_v53 = vpop.eup %2366  ;;  %2380 = verf.f32 %v3812_v9  ;;  %v1031_v4 = vpack.c.bf16 %v1015_v32, %v1015_v32  ;;  %v940_v7 = vmul.f32 0.5, %v3869_v40  ;;  %v988_v37 = vadd.f32 1.0, %v2365_v42  ;;  %v4224_v9 = vld [vmem:[#allocation15_spill] sm:$0xff]  ;;  %v4229_v36 = vld [vmem:[#allocation50_spill] sm:$0xff]  ;;  %v4230_v42 = vld [vmem:[#allocation13_spill] sm:$0xff] }
 0x513   :  { %2060 = vst.msk [vmem:[%s4017_s5 + $0x5c] sm:$0xf] %vm1038_vm2, %v1985_v49  ;;  %v490_v44 = vmul.f32 0.5, %v3623_v21  ;;  %v1967_v1 = vsel %vm222_vm1, %v3603_v58, %v1951_v46  ;;  %v938_v18 = vmul.f32 0.5, %v3872_v23  ;;  %v986_v45 = vadd.f32 1.0, %v2367_v53 }
 0x514   :  { %v2369_v34 = vpop.eup %2368  ;;  %v556_v56 = vmul.f32 %v540_v31, %v4224_v9  ;;  %1048 = vst.msk [vmem:[%s4017_s5 + $0x48] sm:$0xf] %vm1038_vm2, %v1031_v4  ;;  %v1983_v17 = vpack.c.bf16 %v1967_v1, %v1967_v1  ;;  %v1004_v40 = vmul.f32 %v988_v37, %v940_v7  ;;  %v941_v59 = vmul.f32 0.5, %v3883_v55  ;;  %v4231_v7 = vld [vmem:[#allocation17_spill] sm:$0xff] }
 0x515   :  { %v2371_v62 = vpop.eup %2370  ;;  %v891_v8 = vmul.f32 %v2369_v34, %v4225_v20  ;;  %v554_v63 = vmul.f32 %v538_v39, %v490_v44  ;;  %v1002_v21 = vmul.f32 %v986_v45, %v938_v18  ;;  %v1459_v23 = vmul.f32 0.70710677, %v3921_v13 }
 0x516   :  { %v989_v58 = vadd.f32 1.0, %v2371_v62  ;;  %v1490_v26 = vadd.f32 1.0, %v3852_v41  ;;  %2058 = vst.msk [vmem:[%s4017_s5 + $0x4c] sm:$0xf] %vm1038_vm2, %v1983_v17  ;;  %v1020_v33 = vsel %vm222_vm1, %v556_v56, %v1004_v40  ;;  %v1442_v10 = vmul.f32 0.5, %v4227_v57 }
 0x517   :  { %v2373_v28 = vpop.eup %2372  ;;  %v907_v6 = vmul.f32 %v3700_v25, %v891_v8  ;;  %v1036_v0 = vpack.c.bf16 %v1020_v33, %v1020_v33  ;;  %v1018_v3 = vsel %vm222_vm1, %v554_v63, %v1002_v21  ;;  %v1890_v52 = vmul.f32 0.5, %v3896_v16 }
 0x518   :  { %v2375_v61 = vpop.eup %2374  ;;  %v1005_v55 = vmul.f32 %v989_v58, %v941_v59  ;;  %v1844_v24 = vmul.f32 %v2373_v28, %v4226_v29  ;;  %v1034_v41 = vpack.c.bf16 %v1018_v3, %v1018_v3  ;;  %2382 = verf.f32 %v1459_v23 }
 0x519   :  { %v2377_v2 = vpop.eup %2376  ;;  %v923_v11 = vadd.f32 %v3709_v48, %v907_v6  ;;  %v1843_v22 = vmul.f32 %v2375_v61, %v4228_v51  ;;  %1053 = vst.msk [vmem:[%s4017_s5 + $0x70] sm:$0xf] %vm1038_vm2, %v1036_v0  ;;  %v1506_v54 = vmul.f32 %v1490_v26, %v1442_v10  ;;  %v539_v37 = vadd.f32 1.0, %v4231_v7 }
 0x51a   :  { %v1021_v30 = vsel %vm222_vm1, %v557_v60, %v1005_v55  ;;  %v1938_v12 = vadd.f32 1.0, %v2377_v2  ;;  %v1860_v50 = vmul.f32 %v3700_v25, %v1844_v24  ;;  %v2379_v19 = vpop.eup %2378  ;;  %1051 = vst.msk [vmem:[%s4017_s5 + $0x60] sm:$0xf] %vm1038_vm2, %v1034_v41  ;;  %v1444_v20 = vmul.f32 0.5, %v3628_v5  ;;  %v4233_v55 = vld [vmem:[#allocation14_spill] sm:$0xff] }
 0x51b   :  { %v1037_v47 = vpack.c.bf16 %v1021_v30, %v1021_v30  ;;  %v955_v15 = vmul.f32 0.70710677, %v923_v11  ;;  %v1859_v27 = vmul.f32 %v3700_v25, %v1843_v22  ;;  %v1845_v16 = vmul.f32 %v2379_v19, %v4229_v36 }
 0x51c   :  { %v1954_v38 = vmul.f32 %v1938_v12, %v1890_v52  ;;  %v1876_v35 = vadd.f32 %v3709_v48, %v1860_v50  ;;  %v2381_v43 = vpop.eup %2380  ;;  %v939_v1 = vmul.f32 0.5, %v923_v11  ;;  %v1443_v21 = vmul.f32 0.5, %v3921_v13 }
 0x51d   :  { %1054 = vst.msk [vmem:[%s4017_s5 + $0x78] sm:$0xf] %vm1038_vm2, %v1037_v47  ;;  %2384 = verf.f32 %v955_v15  ;;  %v1875_v14 = vadd.f32 %v3709_v48, %v1859_v27  ;;  %v1861_v49 = vmul.f32 %v3700_v25, %v1845_v16  ;;  %v4232_v25 = vld [vmem:[#allocation16_spill] sm:$0xff]  ;;  %v1492_v62 = vadd.f32 1.0, %v2381_v43 }
 0x51e   :  { %v1970_v60 = vsel %vm222_vm1, %v1506_v54, %v1954_v38  ;;  %v1908_v31 = vmul.f32 0.70710677, %v1876_v35  ;;  %2386 = verf.f32 %v4230_v42  ;;  %v491_v44 = vmul.f32 0.5, %v4232_v25 }
 0x51f   :  { %v1986_v39 = vpack.c.bf16 %v1970_v60, %v1970_v60  ;;  %v1907_v32 = vmul.f32 0.70710677, %v1875_v14  ;;  %v1877_v46 = vadd.f32 %v3709_v48, %v1861_v49  ;;  %v1892_v8 = vmul.f32 0.5, %v1876_v35 }
 0x520   :  { %2388 = verf.f32 %v1908_v31  ;;  %v555_v48 = vmul.f32 %v539_v37, %v491_v44  ;;  %v1891_v58 = vmul.f32 0.5, %v1875_v14  ;;  %v1508_v26 = vmul.f32 %v1492_v62, %v1444_v20 }
 0x521   :  { %2061 = vst.msk [vmem:[%s4017_s5 + $0x64] sm:$0xf] %vm1038_vm2, %v1986_v39  ;;  %2390 = verf.f32 %v1907_v32  ;;  %v1909_v53 = vmul.f32 0.70710677, %v1877_v46  ;;  %v1445_v29 = vmul.f32 0.5, %v4233_v55  ;;  %v1893_v13 = vmul.f32 0.5, %v1877_v46 }
 0x522   :  { %v2383_v4 = vpop.eup %2382 }
 0x523   :  { %2392 = verf.f32 %v1909_v53  ;;  %v1491_v56 = vadd.f32 1.0, %v2383_v4 }
 0x525   :  { %v1507_v0 = vmul.f32 %v1491_v56, %v1443_v21 }
 0x527   :  { %v2385_v34 = vpop.eup %2384 }
 0x528   :  { %v987_v18 = vadd.f32 1.0, %v2385_v34  ;;  %v2387_v45 = vpop.eup %2386 }
 0x529   :  { %v1493_v23 = vadd.f32 1.0, %v2387_v45 }
 0x52a   :  { %v2389_v9 = vpop.eup %2388  ;;  %v1003_v17 = vmul.f32 %v987_v18, %v939_v1 }
 0x52b   :  { %v2391_v40 = vpop.eup %2390  ;;  %v1940_v63 = vadd.f32 1.0, %v2389_v9  ;;  %v1509_v10 = vmul.f32 %v1493_v23, %v1445_v29 }
 0x52c   :  { %v1019_v59 = vsel %vm222_vm1, %v555_v48, %v1003_v17  ;;  %v1939_v28 = vadd.f32 1.0, %v2391_v40 }
 0x52d   :  { %v1035_v33 = vpack.c.bf16 %v1019_v59, %v1019_v59  ;;  %v1956_v6 = vmul.f32 %v1940_v63, %v1892_v8  ;;  %v2393_v61 = vpop.eup %2392 }
 0x52e   :  { %v1955_v3 = vmul.f32 %v1939_v28, %v1891_v58  ;;  %v1941_v24 = vadd.f32 1.0, %v2393_v61 }
 0x52f   :  { %1052 = vst.msk [vmem:[%s4017_s5 + $0x68] sm:$0xf] %vm1038_vm2, %v1035_v33  ;;  %v1972_v5 = vsel %vm222_vm1, %v1508_v26, %v1956_v6 }
 0x530   :  { %v1988_v2 = vpack.c.bf16 %v1972_v5, %v1972_v5  ;;  %v1971_v57 = vsel %vm222_vm1, %v1507_v0, %v1955_v3  ;;  %v1957_v11 = vmul.f32 %v1941_v24, %v1893_v13 }
 0x531   :  { %v1987_v41 = vpack.c.bf16 %v1971_v57, %v1971_v57 }
 0x532   :  { %2063 = vst.msk [vmem:[%s4017_s5 + $0x74] sm:$0xf] %vm1038_vm2, %v1988_v2  ;;  %v1973_v51 = vsel %vm222_vm1, %v1509_v10, %v1957_v11 }
 0x533   :  { %2062 = vst.msk [vmem:[%s4017_s5 + $0x6c] sm:$0xf] %vm1038_vm2, %v1987_v41  ;;  %v1989_v22 = vpack.c.bf16 %v1973_v51, %v1973_v51 }
 0x535   :  { %2064 = vst.msk [vmem:[%s4017_s5 + $0x7c] sm:$0xf] %vm1038_vm2, %v1989_v22 }

</bundles_post_ra>
